<compile_context>
chip_gen: v7x
topology: tpu7x:2x2x1
jax: 0.10.0
libtpu: 0.0.40
codegen_flags: <defaults>
</compile_context>

<pallas_src>
import functools

import jax
import jax.numpy as jnp
from jax.experimental import pallas as pl
from jax.experimental.pallas import tpu as pltpu


# ----------------------------------------------------------------------------
# Feature extractor kernel
# ----------------------------------------------------------------------------
def _feat_kernel(x_ref, w1_ref, b1_ref, w2_ref, b2_ref, mask_ref, pool_ref,
                 out_ref, stk1_ref, stk2_ref):
    # x_ref    : (1, Cin_p, L + 4*marg)  bf16  (channel-padded, zero-margined)
    # w1_ref   : (Cmid, 9*Cin_p)         bf16  (BN scale folded in)
    # b1_ref   : (Cmid, 1)               f32
    # w2_ref   : (Chid, 9*Cmid)          bf16  (BN scale folded in)
    # b2_ref   : (Chid, 1)               f32
    # mask_ref : (1, L + 2*marg)         f32   (1 at true interior pixels)
    # pool_ref : (L, Nb)                 bf16  (per-image mean-pool weights)
    # out_ref  : (1, Chid, Nb)           f32
    # stk1_ref : (9*Cin_p, L + 2*marg)   bf16  VMEM scratch (stacked taps)
    # stk2_ref : (9*Cmid, L)             bf16  VMEM scratch (stacked taps)
    cin_p = x_ref.shape[1]
    cmid = w1_ref.shape[0]
    L = pool_ref.shape[0]            # core positions (Nb * Hp * Wp) of block
    L2 = mask_ref.shape[1]           # conv1 output range: core +- marg
    marg = (L2 - L) // 2             # = Wp + 1 = largest |tap shift|
    wp = marg - 1                    # padded image width
    shifts = [dy * wp + dx for dy in (-1, 0, 1) for dx in (-1, 0, 1)]

    # ---- conv1: stack the 9 shifted lane slices along the contraction dim,
    # then ONE MXU matmul with K = 9*Cin_p.
    for k, s in enumerate(shifts):
        stk1_ref[k * cin_p:(k + 1) * cin_p, :] = (
            x_ref[0, :, marg + s: marg + s + L2])
    acc1 = jnp.dot(w1_ref[...], stk1_ref[...],
                   preferred_element_type=jnp.float32)          # (Cmid, L2)
    # Folded BN (scale already in weights) -> bias + ReLU.  Dropout2d = id.
    y1 = jnp.maximum(acc1 + b1_ref[...], 0.0)
    # Zero everything outside the true interior: the padded ring becomes
    # conv2's zero padding; margins / neighbouring-image garbage is wiped.
    y1 = (y1 * mask_ref[...]).astype(jnp.bfloat16)              # (Cmid, L2)

    # ---- conv2: same tap-fusion, K = 9*Cmid.
    for k, s in enumerate(shifts):
        stk2_ref[k * cmid:(k + 1) * cmid, :] = y1[:, marg + s: marg + s + L]
    acc2 = jnp.dot(w2_ref[...], stk2_ref[...],
                   preferred_element_type=jnp.float32)          # (Chid, L)
    y2 = jnp.maximum(acc2 + b2_ref[...], 0.0)

    # AdaptiveAvgPool2d((1,1)) + Flatten for all Nb images in one matmul.
    # Non-interior columns of y2 are garbage-but-finite and get weight 0.
    out_ref[0] = jnp.dot(y2.astype(jnp.bfloat16), pool_ref[...],
                         preferred_element_type=jnp.float32)    # (Chid, Nb)


def feature_extractor(x_imgs, w1_flat, b1, w2_flat, b2, images_per_block=8):
    """x_imgs: (BS, Cin, H, W) f32  ->  features (BS, Chid) f32."""
    BS, Cin, H, W = x_imgs.shape
    cin_p = w1_flat.shape[1] // 9          # channel-padded Cin (multiple of 8)
    Cmid = w1_flat.shape[0]
    Chid = w2_flat.shape[0]
    assert Cmid % 8 == 0, "hidden_dim//2 must be a multiple of 8"
    Hp, Wp = H + 2, W + 2
    P = Hp * Wp                            # flattened padded frame per image
    marg = Wp + 1                          # largest |tap shift| = 1*Wp + 1

    # nb=8 with BS=16 -> nblk=2: one block per v7x TensorCore ("parallel").
    # (At production sizes keep nblk >= 4 on v6e so DMA hides behind compute.)
    nb = min(images_per_block, BS)
    while BS % nb:
        nb -= 1
    nblk = BS // nb
    L = nb * P
    L2 = L + 2 * marg
    Lx = L + 4 * marg

    # Lane-dense, channel-padded, zero-margined input (under jit this fuses).
    xp = jnp.pad(x_imgs, ((0, 0), (0, cin_p - Cin), (1, 1), (1, 1)))
    xf = xp.reshape(BS, cin_p, P)
    xb = (xf.reshape(nblk, nb, cin_p, P)
          .transpose(0, 2, 1, 3).reshape(nblk, cin_p, L))
    x_ext = jnp.pad(xb, ((0, 0), (0, 0), (2 * marg, 2 * marg))).astype(
        jnp.bfloat16)

    # Interior mask (conv2's zero padding) and pooling matrix — pure functions
    # of static shapes: constant-folded under jit.
    yy, xx = jnp.meshgrid(jnp.arange(Hp), jnp.arange(Wp), indexing="ij")
    interior = ((yy >= 1) & (yy <= H) & (xx >= 1) & (xx <= W)).astype(
        jnp.float32).reshape(P)                                   # (P,)
    core_mask = jnp.tile(interior, (nb,))                         # (L,)
    mask1 = jnp.pad(core_mask, (marg, marg))[None, :]             # (1, L2)
    pool = (jnp.kron(jnp.eye(nb, dtype=jnp.float32), interior[:, None])
            / float(H * W)).astype(jnp.bfloat16)                  # (L, nb)

    out = pl.pallas_call(
        _feat_kernel,
        out_shape=jax.ShapeDtypeStruct((nblk, Chid, nb), jnp.float32),
        grid_spec=pltpu.PrefetchScalarGridSpec(
            num_scalar_prefetch=0,
            grid=(nblk,),
            in_specs=[
                pl.BlockSpec((1, cin_p, Lx), lambda j: (j, 0, 0)),
                pl.BlockSpec((Cmid, 9 * cin_p), lambda j: (0, 0)),
                pl.BlockSpec((Cmid, 1), lambda j: (0, 0)),
                pl.BlockSpec((Chid, 9 * Cmid), lambda j: (0, 0)),
                pl.BlockSpec((Chid, 1), lambda j: (0, 0)),
                pl.BlockSpec((1, L2), lambda j: (0, 0)),
                pl.BlockSpec((L, nb), lambda j: (0, 0)),
            ],
            out_specs=pl.BlockSpec((1, Chid, nb), lambda j: (j, 0, 0)),
            scratch_shapes=[
                pltpu.VMEM((9 * cin_p, L2), jnp.bfloat16),
                pltpu.VMEM((9 * Cmid, L), jnp.bfloat16),
            ]),
        compiler_params=pltpu.CompilerParams(
            dimension_semantics=("parallel",)),
    )(x_ext, w1_flat, b1, w2_flat, b2, mask1, pool)

    # (nblk, Chid, nb) -> (BS, Chid); image order preserved (i = j*nb + k).
    return jnp.transpose(out, (0, 2, 1)).reshape(BS, Chid)


# ----------------------------------------------------------------------------
# GRU (main sequence + future rollout) fused with the FC head in ONE kernel.
# ----------------------------------------------------------------------------
def _gru_fc_kernel(feats_ref, wih_ref, whh_ref, bih_ref, bhh_ref,
                   wfc_ref, bfc_ref, out_ref, hs_ref, *,
                   batch, seq_len, future_steps):
    # feats_ref : (S*B, Hd) f32, rows time-major (row = t*B + b)
    # wih/whh   : (Hd, 3Hd) bf16, gate order (r, z, n)
    # bih/bhh   : (1, 3Hd)  f32
    # wfc_ref   : (Hd, N)   bf16
    # bfc_ref   : (1, N)    f32
    # out_ref   : (T*B, N)  f32, T = S + F, rows time-major
    # hs_ref    : (T*B, Hd) f32 VMEM scratch (hidden-state accumulator)
    Hd = whh_ref.shape[0]
    B, S, F = batch, seq_len, future_steps

    wih = wih_ref[...]
    whh = whh_ref[...]
    bih = bih_ref[...]
    bhh = bhh_ref[...]

    # Hoisted input projection: one MXU matmul covers every main timestep.
    gi_all = jnp.dot(feats_ref[...].astype(jnp.bfloat16), wih,
                     preferred_element_type=jnp.float32) + bih    # (S*B, 3Hd)

    def cell(gi, gh, h_prev):
        r = jax.nn.sigmoid(gi[:, :Hd] + gh[:, :Hd])
        z = jax.nn.sigmoid(gi[:, Hd:2 * Hd] + gh[:, Hd:2 * Hd])
        n = jnp.tanh(gi[:, 2 * Hd:] + r * gh[:, 2 * Hd:])
        return (1.0 - z) * n + z * h_prev

    # Main recurrence (h0 = 0, as nn.GRU with no initial state). Static
    # unroll so the LLO scheduler can overlap successive MXU drains.
    h = jnp.zeros((B, Hd), jnp.float32)
    for t in range(S):
        gh = jnp.dot(h.astype(jnp.bfloat16), whh,
                     preferred_element_type=jnp.float32) + bhh
        h = cell(gi_all[t * B:(t + 1) * B, :], gh, h)
        hs_ref[t * B:(t + 1) * B, :] = h

    # Future rollout: PyTorch re-runs self.gru(last_hidden) each step with a
    # FRESH zero h0, so the recurrent term is just b_hh and only the input
    # changes.  nn.Dropout on last_hidden is identity (eval mode).
    # TODO(synk): training-mode Dropout / Dropout2d not implemented.
    lh = h
    zero_h = jnp.zeros((B, Hd), jnp.float32)
    for j in range(F):
        gi = jnp.dot(lh.astype(jnp.bfloat16), wih,
                     preferred_element_type=jnp.float32) + bih
        lh = cell(gi, bhh, zero_h)                    # h0 = 0 -> gh = b_hh
        hs_ref[(S + j) * B:(S + j + 1) * B, :] = lh

    # Fused FC head: one lane-dense matmul over ALL hidden states.
    out_ref[...] = (jnp.dot(hs_ref[...].astype(jnp.bfloat16), wfc_ref[...],
                            preferred_element_type=jnp.float32)
                    + bfc_ref[...])


def gru_fc_forward(feats_tb, w_ih, w_hh, b_ih, b_hh, w_fc, b_fc, *,
                   batch, seq_len, future_steps):
    """feats_tb: (S*B, Hd) time-major.  Returns (T*B, N) FC outputs."""
    Hd = w_hh.shape[0]
    N = w_fc.shape[1]
    T = seq_len + future_steps
    kernel = functools.partial(_gru_fc_kernel, batch=batch, seq_len=seq_len,
                               future_steps=future_steps)
    return pl.pallas_call(
        kernel,
        out_shape=jax.ShapeDtypeStruct((T * batch, N), jnp.float32),
        grid_spec=pltpu.PrefetchScalarGridSpec(
            num_scalar_prefetch=0,
            grid=(1,),
            in_specs=[
                pl.BlockSpec((seq_len * batch, Hd), lambda i: (0, 0)),
                pl.BlockSpec((Hd, 3 * Hd), lambda i: (0, 0)),
                pl.BlockSpec((Hd, 3 * Hd), lambda i: (0, 0)),
                pl.BlockSpec((1, 3 * Hd), lambda i: (0, 0)),
                pl.BlockSpec((1, 3 * Hd), lambda i: (0, 0)),
                pl.BlockSpec((Hd, N), lambda i: (0, 0)),
                pl.BlockSpec((1, N), lambda i: (0, 0)),
            ],
            out_specs=pl.BlockSpec((T * batch, N), lambda i: (0, 0)),
            scratch_shapes=[pltpu.VMEM((T * batch, Hd), jnp.float32)]),
        compiler_params=pltpu.CompilerParams(
            dimension_semantics=("arbitrary",)),
    )(feats_tb, w_ih, w_hh, b_ih, b_hh, w_fc, b_fc)


# ----------------------------------------------------------------------------
# Parameter init (deterministic, synthetic).  BN scale is folded into the
# conv weights; conv weights are stored tap-fused: (Cout, 9*Cin_p).
# ----------------------------------------------------------------------------
def init_params(key, input_channels, hidden_dim, output_dim, height, width):
    Cmid = hidden_dim // 2
    Chid = hidden_dim
    cin_p = max(8, ((input_channels + 7) // 8) * 8)
    ks = jax.random.split(key, 16)

    def nrm(k, shape, scale=0.1):
        return scale * jax.random.normal(k, shape, jnp.float32)

    def bn_fold(kg, kb, conv_bias, C):
        gamma = 1.0 + 0.1 * jax.random.normal(kg, (C,), jnp.float32)
        beta = 0.1 * jax.random.normal(kb, (C,), jnp.float32)
        mean = jnp.zeros((C,), jnp.float32)
        var = jnp.ones((C,), jnp.float32)
        scale = gamma / jnp.sqrt(var + 1e-5)
        bias = scale * (conv_bias - mean) + beta
        return scale, bias

    # conv1: per-tap (Cout, Cin) matrices, tap order (dy, dx) row-major.
    w1 = nrm(ks[0], (9, Cmid, input_channels))
    cb1 = nrm(ks[1], (Cmid,))
    s1, b1 = bn_fold(ks[4], ks[5], cb1, Cmid)
    w1 = w1 * s1[None, :, None]                                    # fold scale
    w1 = jnp.pad(w1, ((0, 0), (0, 0), (0, cin_p - input_channels)))
    w1_flat = jnp.transpose(w1, (1, 0, 2)).reshape(
        Cmid, 9 * cin_p).astype(jnp.bfloat16)                      # K = k*Cin_p + c

    # conv2
    w2 = nrm(ks[2], (9, Chid, Cmid))
    cb2 = nrm(ks[3], (Chid,))
    s2, b2 = bn_fold(ks[6], ks[7], cb2, Chid)
    w2 = w2 * s2[None, :, None]
    w2_flat = jnp.transpose(w2, (1, 0, 2)).reshape(
        Chid, 9 * Cmid).astype(jnp.bfloat16)

    # GRU: fused gate weights, gate order (r, z, n), stored so gate = x @ W.
    w_ih = nrm(ks[8], (hidden_dim, 3 * hidden_dim)).astype(jnp.bfloat16)
    w_hh = nrm(ks[9], (hidden_dim, 3 * hidden_dim)).astype(jnp.bfloat16)
    b_ih = nrm(ks[10], (1, 3 * hidden_dim))
    b_hh = nrm(ks[11], (1, 3 * hidden_dim))

    N = output_dim * height * width
    w_fc = nrm(ks[12], (hidden_dim, N)).astype(jnp.bfloat16)
    b_fc = nrm(ks[13], (1, N))

    return dict(w1=w1_flat, b1=b1[:, None], w2=w2_flat, b2=b2[:, None],
                w_ih=w_ih, w_hh=w_hh, b_ih=b_ih, b_hh=b_hh,
                w_fc=w_fc, b_fc=b_fc)


# ----------------------------------------------------------------------------
# Full BEVGRU forward (jitted: layout ops fuse, mask/pool constants fold).
# ----------------------------------------------------------------------------
@functools.partial(jax.jit, static_argnames=("output_dim", "height", "width",
                                             "current_index", "future_steps"))
def bev_gru_forward(params, x, *, output_dim, height, width,
                    current_index=2, future_steps=2):
    B, S, C, H, W = x.shape
    Hd = params["w_hh"].shape[0]
    BS = B * S
    T = S + future_steps
    N = output_dim * height * width

    x_imgs = x.reshape(BS, C, H, W).astype(jnp.float32)
    feats = feature_extractor(x_imgs, params["w1"], params["b1"],
                              params["w2"], params["b2"])         # (BS, Hd)

    # Time-major (S*B, Hd) for the GRU (row = t*B + b).
    feats_tb = jnp.transpose(feats.reshape(B, S, Hd),
                             (1, 0, 2)).reshape(S * B, Hd)

    # GRU recurrence + future rollout + FC head fused in one kernel.
    fc_all = gru_fc_forward(feats_tb, params["w_ih"], params["w_hh"],
                            params["b_ih"], params["b_hh"],
                            params["w_fc"], params["b_fc"],
                            batch=B, seq_len=S,
                            future_steps=future_steps)            # (T*B, N)

    total_output = (fc_all.reshape(T, B, N).transpose(1, 0, 2)
                    .reshape(B, T, output_dim, height, width))

    current_bev = total_output[:, current_index][:, None]
    future_tail = total_output[:, current_index + 1:
                               current_index + 1 + future_steps]
    future_bev = jnp.concatenate([current_bev, future_tail], axis=1)
    return total_output, future_bev


if __name__ == "__main__":
    # Small shapes consistent with the module.
    B, S, C, H, W = 2, 8, 4, 16, 16
    hidden_dim, output_dim = 32, 2
    bev_h, bev_w = 16, 16

    key = jax.random.PRNGKey(0)
    k_x, k_p = jax.random.split(key)
    x = jax.random.normal(k_x, (B, S, C, H, W), jnp.float32)
    params = init_params(k_p, C, hidden_dim, output_dim, bev_h, bev_w)

    total_output, future_bev = bev_gru_forward(
        params, x, output_dim=output_dim, height=bev_h, width=bev_w,
        current_index=2, future_steps=2)
    total_output = jax.block_until_ready(total_output)
    future_bev = jax.block_until_ready(future_bev)

    assert total_output.shape == (B, S + 2, output_dim, bev_h, bev_w), \
        total_output.shape
    assert future_bev.shape == (B, 3, output_dim, bev_h, bev_w), \
        future_bev.shape
    assert bool(jnp.all(jnp.isfinite(total_output)))
    assert bool(jnp.all(jnp.isfinite(future_bev)))
    print("KERNEL_OK")
</pallas_src>

<mosaic_0001>
module attributes {stable_mosaic.version = 11 : i64} {
  func.func @_feat_kernel(%arg0: i32, %arg1: memref<1x8x2668xbf16, #tpu.memory_space<vmem>>, %arg2: memref<16x72xbf16, #tpu.memory_space<vmem>>, %arg3: memref<16x1xf32, #tpu.memory_space<vmem>>, %arg4: memref<32x144xbf16, #tpu.memory_space<vmem>>, %arg5: memref<32x1xf32, #tpu.memory_space<vmem>>, %arg6: memref<1x2630xf32, #tpu.memory_space<vmem>>, %arg7: memref<2592x8xbf16, #tpu.memory_space<vmem>>, %arg8: memref<1x32x8xf32, #tpu.memory_space<vmem>>, %arg9: memref<72x2630xbf16, #tpu.memory_space<vmem>>, %arg10: memref<144x2592xbf16, #tpu.memory_space<vmem>>) attributes {dimension_semantics = [#tpu.dimension_semantics<parallel>], iteration_bounds = array<i64: 2>, scalar_prefetch = 0 : i64, scratch_operands = 2 : i64, tpu.core_type = #tpu.core_type<tc>, window_params = [{transform_indices = @transform_0, window_bounds = array<i64: 1, 8, 2668>}, {pipeline_mode = #tpu.pipeline_mode<synchronous>, transform_indices = @transform_1, window_bounds = array<i64: 16, 72>}, {pipeline_mode = #tpu.pipeline_mode<synchronous>, transform_indices = @transform_2, window_bounds = array<i64: 16, 1>}, {pipeline_mode = #tpu.pipeline_mode<synchronous>, transform_indices = @transform_3, window_bounds = array<i64: 32, 144>}, {pipeline_mode = #tpu.pipeline_mode<synchronous>, transform_indices = @transform_4, window_bounds = array<i64: 32, 1>}, {pipeline_mode = #tpu.pipeline_mode<synchronous>, transform_indices = @transform_5, window_bounds = array<i64: 1, 2630>}, {pipeline_mode = #tpu.pipeline_mode<synchronous>, transform_indices = @transform_6, window_bounds = array<i64: 2592, 8>}, {transform_indices = @transform_7, window_bounds = array<i64: 1, 32, 8>}]} {
    %c0 = arith.constant 0 : index
    %c0_0 = arith.constant 0 : index
    %c0_1 = arith.constant 0 : index
    %0 = vector.load %arg1[%c0, %c0_0, %c0_1] : memref<1x8x2668xbf16, #tpu.memory_space<vmem>>, vector<1x8x2630xbf16>
    %1 = vector.shape_cast %0 : vector<1x8x2630xbf16> to vector<8x2630xbf16>
    %c0_2 = arith.constant 0 : index
    %c0_3 = arith.constant 0 : index
    %2 = vector.load %arg9[%c0_2, %c0_3] : memref<72x2630xbf16, #tpu.memory_space<vmem>>, vector<8x2630xbf16>
    tpu.vector_store %arg9[%c0_2, %c0_3], %1 {strides = array<i32>} : memref<72x2630xbf16, #tpu.memory_space<vmem>>, vector<8x2630xbf16>,
    %c0_4 = arith.constant 0 : index
    %c0_5 = arith.constant 0 : index
    %c1 = arith.constant 1 : index
    %3 = vector.load %arg1[%c0_4, %c0_5, %c1] : memref<1x8x2668xbf16, #tpu.memory_space<vmem>>, vector<1x8x2630xbf16>
    %4 = vector.shape_cast %3 : vector<1x8x2630xbf16> to vector<8x2630xbf16>
    %c8 = arith.constant 8 : index
    %c0_6 = arith.constant 0 : index
    %5 = vector.load %arg9[%c8, %c0_6] : memref<72x2630xbf16, #tpu.memory_space<vmem>>, vector<8x2630xbf16>
    tpu.vector_store %arg9[%c8, %c0_6], %4 {strides = array<i32>} : memref<72x2630xbf16, #tpu.memory_space<vmem>>, vector<8x2630xbf16>,
    %c0_7 = arith.constant 0 : index
    %c0_8 = arith.constant 0 : index
    %c2 = arith.constant 2 : index
    %6 = vector.load %arg1[%c0_7, %c0_8, %c2] : memref<1x8x2668xbf16, #tpu.memory_space<vmem>>, vector<1x8x2630xbf16>
    %7 = vector.shape_cast %6 : vector<1x8x2630xbf16> to vector<8x2630xbf16>
    %c16 = arith.constant 16 : index
    %c0_9 = arith.constant 0 : index
    %8 = vector.load %arg9[%c16, %c0_9] : memref<72x2630xbf16, #tpu.memory_space<vmem>>, vector<8x2630xbf16>
    tpu.vector_store %arg9[%c16, %c0_9], %7 {strides = array<i32>} : memref<72x2630xbf16, #tpu.memory_space<vmem>>, vector<8x2630xbf16>,
    %c0_10 = arith.constant 0 : index
    %c0_11 = arith.constant 0 : index
    %c18 = arith.constant 18 : index
    %9 = vector.load %arg1[%c0_10, %c0_11, %c18] : memref<1x8x2668xbf16, #tpu.memory_space<vmem>>, vector<1x8x2630xbf16>
    %10 = vector.shape_cast %9 : vector<1x8x2630xbf16> to vector<8x2630xbf16>
    %c24 = arith.constant 24 : index
    %c0_12 = arith.constant 0 : index
    %11 = vector.load %arg9[%c24, %c0_12] : memref<72x2630xbf16, #tpu.memory_space<vmem>>, vector<8x2630xbf16>
    tpu.vector_store %arg9[%c24, %c0_12], %10 {strides = array<i32>} : memref<72x2630xbf16, #tpu.memory_space<vmem>>, vector<8x2630xbf16>,
    %c0_13 = arith.constant 0 : index
    %c0_14 = arith.constant 0 : index
    %c19 = arith.constant 19 : index
    %12 = vector.load %arg1[%c0_13, %c0_14, %c19] : memref<1x8x2668xbf16, #tpu.memory_space<vmem>>, vector<1x8x2630xbf16>
    %13 = vector.shape_cast %12 : vector<1x8x2630xbf16> to vector<8x2630xbf16>
    %c32 = arith.constant 32 : index
    %c0_15 = arith.constant 0 : index
    %14 = vector.load %arg9[%c32, %c0_15] : memref<72x2630xbf16, #tpu.memory_space<vmem>>, vector<8x2630xbf16>
    tpu.vector_store %arg9[%c32, %c0_15], %13 {strides = array<i32>} : memref<72x2630xbf16, #tpu.memory_space<vmem>>, vector<8x2630xbf16>,
    %c0_16 = arith.constant 0 : index
    %c0_17 = arith.constant 0 : index
    %c20 = arith.constant 20 : index
    %15 = vector.load %arg1[%c0_16, %c0_17, %c20] : memref<1x8x2668xbf16, #tpu.memory_space<vmem>>, vector<1x8x2630xbf16>
    %16 = vector.shape_cast %15 : vector<1x8x2630xbf16> to vector<8x2630xbf16>
    %c40 = arith.constant 40 : index
    %c0_18 = arith.constant 0 : index
    %17 = vector.load %arg9[%c40, %c0_18] : memref<72x2630xbf16, #tpu.memory_space<vmem>>, vector<8x2630xbf16>
    tpu.vector_store %arg9[%c40, %c0_18], %16 {strides = array<i32>} : memref<72x2630xbf16, #tpu.memory_space<vmem>>, vector<8x2630xbf16>,
    %c0_19 = arith.constant 0 : index
    %c0_20 = arith.constant 0 : index
    %c36 = arith.constant 36 : index
    %18 = vector.load %arg1[%c0_19, %c0_20, %c36] : memref<1x8x2668xbf16, #tpu.memory_space<vmem>>, vector<1x8x2630xbf16>
    %19 = vector.shape_cast %18 : vector<1x8x2630xbf16> to vector<8x2630xbf16>
    %c48 = arith.constant 48 : index
    %c0_21 = arith.constant 0 : index
    %20 = vector.load %arg9[%c48, %c0_21] : memref<72x2630xbf16, #tpu.memory_space<vmem>>, vector<8x2630xbf16>
    tpu.vector_store %arg9[%c48, %c0_21], %19 {strides = array<i32>} : memref<72x2630xbf16, #tpu.memory_space<vmem>>, vector<8x2630xbf16>,
    %c0_22 = arith.constant 0 : index
    %c0_23 = arith.constant 0 : index
    %c37 = arith.constant 37 : index
    %21 = vector.load %arg1[%c0_22, %c0_23, %c37] : memref<1x8x2668xbf16, #tpu.memory_space<vmem>>, vector<1x8x2630xbf16>
    %22 = vector.shape_cast %21 : vector<1x8x2630xbf16> to vector<8x2630xbf16>
    %c56 = arith.constant 56 : index
    %c0_24 = arith.constant 0 : index
    %23 = vector.load %arg9[%c56, %c0_24] : memref<72x2630xbf16, #tpu.memory_space<vmem>>, vector<8x2630xbf16>
    tpu.vector_store %arg9[%c56, %c0_24], %22 {strides = array<i32>} : memref<72x2630xbf16, #tpu.memory_space<vmem>>, vector<8x2630xbf16>,
    %c0_25 = arith.constant 0 : index
    %c0_26 = arith.constant 0 : index
    %c38 = arith.constant 38 : index
    %24 = vector.load %arg1[%c0_25, %c0_26, %c38] : memref<1x8x2668xbf16, #tpu.memory_space<vmem>>, vector<1x8x2630xbf16>
    %25 = vector.shape_cast %24 : vector<1x8x2630xbf16> to vector<8x2630xbf16>
    %c64 = arith.constant 64 : index
    %c0_27 = arith.constant 0 : index
    %26 = vector.load %arg9[%c64, %c0_27] : memref<72x2630xbf16, #tpu.memory_space<vmem>>, vector<8x2630xbf16>
    tpu.vector_store %arg9[%c64, %c0_27], %25 {strides = array<i32>} : memref<72x2630xbf16, #tpu.memory_space<vmem>>, vector<8x2630xbf16>,
    %c0_28 = arith.constant 0 : index
    %c0_29 = arith.constant 0 : index
    %27 = vector.load %arg2[%c0_28, %c0_29] : memref<16x72xbf16, #tpu.memory_space<vmem>>, vector<16x72xbf16>
    %c0_30 = arith.constant 0 : index
    %c0_31 = arith.constant 0 : index
    %28 = vector.load %arg9[%c0_30, %c0_31] : memref<72x2630xbf16, #tpu.memory_space<vmem>>, vector<72x2630xbf16>
    %cst = arith.constant dense<0.000000e+00> : vector<16x2630xf32>
    %29 = tpu.matmul %27, %28, %cst {dimension_numbers = #tpu.dot_dimension_numbers<[1], [0], [0], [1], [0, 0, 1, 1], [], []>} : vector<16x72xbf16>, vector<72x2630xbf16>, vector<16x2630xf32> -> vector<16x2630xf32>
    %c0_32 = arith.constant 0 : index
    %c0_33 = arith.constant 0 : index
    %30 = vector.load %arg3[%c0_32, %c0_33] : memref<16x1xf32, #tpu.memory_space<vmem>>, vector<16x1xf32>
    %31 = vector.broadcast %30 : vector<16x1xf32> to vector<16x2630xf32>
    %32 = arith.addf %29, %31 : vector<16x2630xf32>
    %cst_34 = arith.constant 0.000000e+00 : f32
    %33 = vector.broadcast %cst_34 : f32 to vector<16x2630xf32>
    %34 = arith.maximumf %32, %33 : vector<16x2630xf32>
    %c0_35 = arith.constant 0 : index
    %c0_36 = arith.constant 0 : index
    %35 = vector.load %arg6[%c0_35, %c0_36] : memref<1x2630xf32, #tpu.memory_space<vmem>>, vector<1x2630xf32>
    %36 = vector.broadcast %35 : vector<1x2630xf32> to vector<16x2630xf32>
    %37 = arith.mulf %34, %36 : vector<16x2630xf32>
    %38 = arith.truncf %37 : vector<16x2630xf32> to vector<16x2630xbf16>
    %39 = vector.extract_strided_slice %38 {offsets = [0, 0], sizes = [16, 2592], strides = [1, 1]} : vector<16x2630xbf16> to vector<16x2592xbf16>
    %c0_37 = arith.constant 0 : index
    %c0_38 = arith.constant 0 : index
    %40 = vector.load %arg10[%c0_37, %c0_38] : memref<144x2592xbf16, #tpu.memory_space<vmem>>, vector<16x2592xbf16>
    tpu.vector_store %arg10[%c0_37, %c0_38], %39 {strides = array<i32>} : memref<144x2592xbf16, #tpu.memory_space<vmem>>, vector<16x2592xbf16>,
    %41 = vector.extract_strided_slice %38 {offsets = [0, 1], sizes = [16, 2592], strides = [1, 1]} : vector<16x2630xbf16> to vector<16x2592xbf16>
    %c16_39 = arith.constant 16 : index
    %c0_40 = arith.constant 0 : index
    %42 = vector.load %arg10[%c16_39, %c0_40] : memref<144x2592xbf16, #tpu.memory_space<vmem>>, vector<16x2592xbf16>
    tpu.vector_store %arg10[%c16_39, %c0_40], %41 {strides = array<i32>} : memref<144x2592xbf16, #tpu.memory_space<vmem>>, vector<16x2592xbf16>,
    %43 = vector.extract_strided_slice %38 {offsets = [0, 2], sizes = [16, 2592], strides = [1, 1]} : vector<16x2630xbf16> to vector<16x2592xbf16>
    %c32_41 = arith.constant 32 : index
    %c0_42 = arith.constant 0 : index
    %44 = vector.load %arg10[%c32_41, %c0_42] : memref<144x2592xbf16, #tpu.memory_space<vmem>>, vector<16x2592xbf16>
    tpu.vector_store %arg10[%c32_41, %c0_42], %43 {strides = array<i32>} : memref<144x2592xbf16, #tpu.memory_space<vmem>>, vector<16x2592xbf16>,
    %45 = vector.extract_strided_slice %38 {offsets = [0, 18], sizes = [16, 2592], strides = [1, 1]} : vector<16x2630xbf16> to vector<16x2592xbf16>
    %c48_43 = arith.constant 48 : index
    %c0_44 = arith.constant 0 : index
    %46 = vector.load %arg10[%c48_43, %c0_44] : memref<144x2592xbf16, #tpu.memory_space<vmem>>, vector<16x2592xbf16>
    tpu.vector_store %arg10[%c48_43, %c0_44], %45 {strides = array<i32>} : memref<144x2592xbf16, #tpu.memory_space<vmem>>, vector<16x2592xbf16>,
    %47 = vector.extract_strided_slice %38 {offsets = [0, 19], sizes = [16, 2592], strides = [1, 1]} : vector<16x2630xbf16> to vector<16x2592xbf16>
    %c64_45 = arith.constant 64 : index
    %c0_46 = arith.constant 0 : index
    %48 = vector.load %arg10[%c64_45, %c0_46] : memref<144x2592xbf16, #tpu.memory_space<vmem>>, vector<16x2592xbf16>
    tpu.vector_store %arg10[%c64_45, %c0_46], %47 {strides = array<i32>} : memref<144x2592xbf16, #tpu.memory_space<vmem>>, vector<16x2592xbf16>,
    %49 = vector.extract_strided_slice %38 {offsets = [0, 20], sizes = [16, 2592], strides = [1, 1]} : vector<16x2630xbf16> to vector<16x2592xbf16>
    %c80 = arith.constant 80 : index
    %c0_47 = arith.constant 0 : index
    %50 = vector.load %arg10[%c80, %c0_47] : memref<144x2592xbf16, #tpu.memory_space<vmem>>, vector<16x2592xbf16>
    tpu.vector_store %arg10[%c80, %c0_47], %49 {strides = array<i32>} : memref<144x2592xbf16, #tpu.memory_space<vmem>>, vector<16x2592xbf16>,
    %51 = vector.extract_strided_slice %38 {offsets = [0, 36], sizes = [16, 2592], strides = [1, 1]} : vector<16x2630xbf16> to vector<16x2592xbf16>
    %c96 = arith.constant 96 : index
    %c0_48 = arith.constant 0 : index
    %52 = vector.load %arg10[%c96, %c0_48] : memref<144x2592xbf16, #tpu.memory_space<vmem>>, vector<16x2592xbf16>
    tpu.vector_store %arg10[%c96, %c0_48], %51 {strides = array<i32>} : memref<144x2592xbf16, #tpu.memory_space<vmem>>, vector<16x2592xbf16>,
    %53 = vector.extract_strided_slice %38 {offsets = [0, 37], sizes = [16, 2592], strides = [1, 1]} : vector<16x2630xbf16> to vector<16x2592xbf16>
    %c112 = arith.constant 112 : index
    %c0_49 = arith.constant 0 : index
    %54 = vector.load %arg10[%c112, %c0_49] : memref<144x2592xbf16, #tpu.memory_space<vmem>>, vector<16x2592xbf16>
    tpu.vector_store %arg10[%c112, %c0_49], %53 {strides = array<i32>} : memref<144x2592xbf16, #tpu.memory_space<vmem>>, vector<16x2592xbf16>,
    %55 = vector.extract_strided_slice %38 {offsets = [0, 38], sizes = [16, 2592], strides = [1, 1]} : vector<16x2630xbf16> to vector<16x2592xbf16>
    %c128 = arith.constant 128 : index
    %c0_50 = arith.constant 0 : index
    %56 = vector.load %arg10[%c128, %c0_50] : memref<144x2592xbf16, #tpu.memory_space<vmem>>, vector<16x2592xbf16>
    tpu.vector_store %arg10[%c128, %c0_50], %55 {strides = array<i32>} : memref<144x2592xbf16, #tpu.memory_space<vmem>>, vector<16x2592xbf16>,
    %c0_51 = arith.constant 0 : index
    %c0_52 = arith.constant 0 : index
    %57 = vector.load %arg4[%c0_51, %c0_52] : memref<32x144xbf16, #tpu.memory_space<vmem>>, vector<32x144xbf16>
    %c0_53 = arith.constant 0 : index
    %c0_54 = arith.constant 0 : index
    %58 = vector.load %arg10[%c0_53, %c0_54] : memref<144x2592xbf16, #tpu.memory_space<vmem>>, vector<144x2592xbf16>
    %cst_55 = arith.constant dense<0.000000e+00> : vector<32x2592xf32>
    %59 = tpu.matmul %57, %58, %cst_55 {dimension_numbers = #tpu.dot_dimension_numbers<[1], [0], [0], [1], [0, 0, 1, 1], [], []>} : vector<32x144xbf16>, vector<144x2592xbf16>, vector<32x2592xf32> -> vector<32x2592xf32>
    %c0_56 = arith.constant 0 : index
    %c0_57 = arith.constant 0 : index
    %60 = vector.load %arg5[%c0_56, %c0_57] : memref<32x1xf32, #tpu.memory_space<vmem>>, vector<32x1xf32>
    %61 = vector.broadcast %60 : vector<32x1xf32> to vector<32x2592xf32>
    %62 = arith.addf %59, %61 : vector<32x2592xf32>
    %cst_58 = arith.constant 0.000000e+00 : f32
    %63 = vector.broadcast %cst_58 : f32 to vector<32x2592xf32>
    %64 = arith.maximumf %62, %63 : vector<32x2592xf32>
    %65 = arith.truncf %64 : vector<32x2592xf32> to vector<32x2592xbf16>
    %c0_59 = arith.constant 0 : index
    %c0_60 = arith.constant 0 : index
    %66 = vector.load %arg7[%c0_59, %c0_60] : memref<2592x8xbf16, #tpu.memory_space<vmem>>, vector<2592x8xbf16>
    %cst_61 = arith.constant dense<0.000000e+00> : vector<32x8xf32>
    %67 = tpu.matmul %65, %66, %cst_61 {dimension_numbers = #tpu.dot_dimension_numbers<[1], [0], [0], [1], [0, 0, 1, 1], [], []>} : vector<32x2592xbf16>, vector<2592x8xbf16>, vector<32x8xf32> -> vector<32x8xf32>
    %c0_62 = arith.constant 0 : index
    %c0_63 = arith.constant 0 : index
    %c0_64 = arith.constant 0 : index
    %68 = vector.load %arg8[%c0_62, %c0_63, %c0_64] : memref<1x32x8xf32, #tpu.memory_space<vmem>>, vector<1x32x8xf32>
    %69 = vector.shape_cast %68 : vector<1x32x8xf32> to vector<32x8xf32>
    %70 = vector.shape_cast %67 : vector<32x8xf32> to vector<1x32x8xf32>
    tpu.vector_store %arg8[%c0_62, %c0_63, %c0_64], %70 {strides = array<i32>} : memref<1x32x8xf32, #tpu.memory_space<vmem>>, vector<1x32x8xf32>,
    return
  }
  func.func @transform_0(%arg0: i32) -> (i32, i32, i32) {
    %c0_i32 = arith.constant 0 : i32
    %c0_i32_0 = arith.constant 0 : i32
    %c0_i32_1 = arith.constant 0 : i32
    return %arg0, %c0_i32, %c0_i32_0 : i32, i32, i32
  }
  func.func @transform_1(%arg0: i32) -> (i32, i32) {
    %c0_i32 = arith.constant 0 : i32
    %c0_i32_0 = arith.constant 0 : i32
    %c0_i32_1 = arith.constant 0 : i32
    return %c0_i32, %c0_i32_0 : i32, i32
  }
  func.func @transform_2(%arg0: i32) -> (i32, i32) {
    %c0_i32 = arith.constant 0 : i32
    %c0_i32_0 = arith.constant 0 : i32
    %c0_i32_1 = arith.constant 0 : i32
    return %c0_i32, %c0_i32_0 : i32, i32
  }
  func.func @transform_3(%arg0: i32) -> (i32, i32) {
    %c0_i32 = arith.constant 0 : i32
    %c0_i32_0 = arith.constant 0 : i32
    %c0_i32_1 = arith.constant 0 : i32
    return %c0_i32, %c0_i32_0 : i32, i32
  }
  func.func @transform_4(%arg0: i32) -> (i32, i32) {
    %c0_i32 = arith.constant 0 : i32
    %c0_i32_0 = arith.constant 0 : i32
    %c0_i32_1 = arith.constant 0 : i32
    return %c0_i32, %c0_i32_0 : i32, i32
  }
  func.func @transform_5(%arg0: i32) -> (i32, i32) {
    %c0_i32 = arith.constant 0 : i32
    %c0_i32_0 = arith.constant 0 : i32
    %c0_i32_1 = arith.constant 0 : i32
    return %c0_i32, %c0_i32_0 : i32, i32
  }
  func.func @transform_6(%arg0: i32) -> (i32, i32) {
    %c0_i32 = arith.constant 0 : i32
    %c0_i32_0 = arith.constant 0 : i32
    %c0_i32_1 = arith.constant 0 : i32
    return %c0_i32, %c0_i32_0 : i32, i32
  }
  func.func @transform_7(%arg0: i32) -> (i32, i32, i32) {
    %c0_i32 = arith.constant 0 : i32
    %c0_i32_0 = arith.constant 0 : i32
    %c0_i32_1 = arith.constant 0 : i32
    return %arg0, %c0_i32, %c0_i32_0 : i32, i32, i32
  }
}

module attributes {stable_mosaic.version = 11 : i64} {
  func.func @_gru_fc_kernel(%arg0: i32, %arg1: memref<16x32xf32, #tpu.memory_space<vmem>>, %arg2: memref<32x96xbf16, #tpu.memory_space<vmem>>, %arg3: memref<32x96xbf16, #tpu.memory_space<vmem>>, %arg4: memref<1x96xf32, #tpu.memory_space<vmem>>, %arg5: memref<1x96xf32, #tpu.memory_space<vmem>>, %arg6: memref<32x512xbf16, #tpu.memory_space<vmem>>, %arg7: memref<1x512xf32, #tpu.memory_space<vmem>>, %arg8: memref<20x512xf32, #tpu.memory_space<vmem>>, %arg9: memref<20x32xf32, #tpu.memory_space<vmem>>) attributes {dimension_semantics = [#tpu.dimension_semantics<arbitrary>], iteration_bounds = array<i64: 1>, scalar_prefetch = 0 : i64, scratch_operands = 1 : i64, tpu.core_type = #tpu.core_type<tc>, window_params = [{pipeline_mode = #tpu.pipeline_mode<synchronous>, transform_indices = @transform_0, window_bounds = array<i64: 16, 32>}, {pipeline_mode = #tpu.pipeline_mode<synchronous>, transform_indices = @transform_1, window_bounds = array<i64: 32, 96>}, {pipeline_mode = #tpu.pipeline_mode<synchronous>, transform_indices = @transform_2, window_bounds = array<i64: 32, 96>}, {pipeline_mode = #tpu.pipeline_mode<synchronous>, transform_indices = @transform_3, window_bounds = array<i64: 1, 96>}, {pipeline_mode = #tpu.pipeline_mode<synchronous>, transform_indices = @transform_4, window_bounds = array<i64: 1, 96>}, {pipeline_mode = #tpu.pipeline_mode<synchronous>, transform_indices = @transform_5, window_bounds = array<i64: 32, 512>}, {pipeline_mode = #tpu.pipeline_mode<synchronous>, transform_indices = @transform_6, window_bounds = array<i64: 1, 512>}, {pipeline_mode = #tpu.pipeline_mode<synchronous>, transform_indices = @transform_7, window_bounds = array<i64: 20, 512>}]} {
    %c0 = arith.constant 0 : index
    %c0_0 = arith.constant 0 : index
    %0 = vector.load %arg2[%c0, %c0_0] : memref<32x96xbf16, #tpu.memory_space<vmem>>, vector<32x96xbf16>
    %c0_1 = arith.constant 0 : index
    %c0_2 = arith.constant 0 : index
    %1 = vector.load %arg3[%c0_1, %c0_2] : memref<32x96xbf16, #tpu.memory_space<vmem>>, vector<32x96xbf16>
    %c0_3 = arith.constant 0 : index
    %c0_4 = arith.constant 0 : index
    %2 = vector.load %arg4[%c0_3, %c0_4] : memref<1x96xf32, #tpu.memory_space<vmem>>, vector<1x96xf32>
    %c0_5 = arith.constant 0 : index
    %c0_6 = arith.constant 0 : index
    %3 = vector.load %arg5[%c0_5, %c0_6] : memref<1x96xf32, #tpu.memory_space<vmem>>, vector<1x96xf32>
    %c0_7 = arith.constant 0 : index
    %c0_8 = arith.constant 0 : index
    %4 = vector.load %arg1[%c0_7, %c0_8] : memref<16x32xf32, #tpu.memory_space<vmem>>, vector<16x32xf32>
    %5 = arith.truncf %4 : vector<16x32xf32> to vector<16x32xbf16>
    %cst = arith.constant dense<0.000000e+00> : vector<16x96xf32>
    %6 = tpu.matmul %5, %0, %cst {dimension_numbers = #tpu.dot_dimension_numbers<[1], [0], [0], [1], [0, 0, 1, 1], [], []>} : vector<16x32xbf16>, vector<32x96xbf16>, vector<16x96xf32> -> vector<16x96xf32>
    %7 = vector.broadcast %2 : vector<1x96xf32> to vector<16x96xf32>
    %8 = arith.addf %6, %7 : vector<16x96xf32>
    %cst_9 = arith.constant 0.000000e+00 : f32
    %9 = vector.broadcast %cst_9 : f32 to vector<2x32xf32>
    %10 = arith.truncf %9 : vector<2x32xf32> to vector<2x32xbf16>
    %cst_10 = arith.constant dense<0.000000e+00> : vector<2x96xf32>
    %11 = tpu.matmul %10, %1, %cst_10 {dimension_numbers = #tpu.dot_dimension_numbers<[1], [0], [0], [1], [0, 0, 1, 1], [], []>} : vector<2x32xbf16>, vector<32x96xbf16>, vector<2x96xf32> -> vector<2x96xf32>
    %12 = vector.broadcast %3 : vector<1x96xf32> to vector<2x96xf32>
    %13 = arith.addf %11, %12 : vector<2x96xf32>
    %14 = vector.extract_strided_slice %8 {offsets = [0, 0], sizes = [2, 96], strides = [1, 1]} : vector<16x96xf32> to vector<2x96xf32>
    %15 = vector.extract_strided_slice %14 {offsets = [0, 0], sizes = [2, 32], strides = [1, 1]} : vector<2x96xf32> to vector<2x32xf32>
    %16 = vector.extract_strided_slice %13 {offsets = [0, 0], sizes = [2, 32], strides = [1, 1]} : vector<2x96xf32> to vector<2x32xf32>
    %17 = arith.addf %15, %16 : vector<2x32xf32>
    %18 = arith.negf %17 : vector<2x32xf32>
    %19 = math.exp %18 : vector<2x32xf32>
    %cst_11 = arith.constant 1.000000e+00 : f32
    %20 = vector.broadcast %cst_11 : f32 to vector<2x32xf32>
    %21 = arith.addf %20, %19 : vector<2x32xf32>
    %22 = arith.divf %20, %21 : vector<2x32xf32>
    %23 = vector.extract_strided_slice %14 {offsets = [0, 32], sizes = [2, 32], strides = [1, 1]} : vector<2x96xf32> to vector<2x32xf32>
    %24 = vector.extract_strided_slice %13 {offsets = [0, 32], sizes = [2, 32], strides = [1, 1]} : vector<2x96xf32> to vector<2x32xf32>
    %25 = arith.addf %23, %24 : vector<2x32xf32>
    %26 = arith.negf %25 : vector<2x32xf32>
    %27 = math.exp %26 : vector<2x32xf32>
    %cst_12 = arith.constant 1.000000e+00 : f32
    %28 = vector.broadcast %cst_12 : f32 to vector<2x32xf32>
    %29 = arith.addf %28, %27 : vector<2x32xf32>
    %30 = arith.divf %28, %29 : vector<2x32xf32>
    %31 = vector.extract_strided_slice %14 {offsets = [0, 64], sizes = [2, 32], strides = [1, 1]} : vector<2x96xf32> to vector<2x32xf32>
    %32 = vector.extract_strided_slice %13 {offsets = [0, 64], sizes = [2, 32], strides = [1, 1]} : vector<2x96xf32> to vector<2x32xf32>
    %33 = arith.mulf %22, %32 : vector<2x32xf32>
    %34 = arith.addf %31, %33 : vector<2x32xf32>
    %35 = math.tanh %34 : vector<2x32xf32>
    %cst_13 = arith.constant 1.000000e+00 : f32
    %36 = vector.broadcast %cst_13 : f32 to vector<2x32xf32>
    %37 = arith.subf %36, %30 : vector<2x32xf32>
    %38 = arith.mulf %37, %35 : vector<2x32xf32>
    %39 = arith.mulf %30, %9 : vector<2x32xf32>
    %40 = arith.addf %38, %39 : vector<2x32xf32>
    %c0_14 = arith.constant 0 : index
    %c0_15 = arith.constant 0 : index
    %41 = vector.load %arg9[%c0_14, %c0_15] : memref<20x32xf32, #tpu.memory_space<vmem>>, vector<2x32xf32>
    tpu.vector_store %arg9[%c0_14, %c0_15], %40 {strides = array<i32>} : memref<20x32xf32, #tpu.memory_space<vmem>>, vector<2x32xf32>,
    %42 = arith.truncf %40 : vector<2x32xf32> to vector<2x32xbf16>
    %cst_16 = arith.constant dense<0.000000e+00> : vector<2x96xf32>
    %43 = tpu.matmul %42, %1, %cst_16 {dimension_numbers = #tpu.dot_dimension_numbers<[1], [0], [0], [1], [0, 0, 1, 1], [], []>} : vector<2x32xbf16>, vector<32x96xbf16>, vector<2x96xf32> -> vector<2x96xf32>
    %44 = vector.broadcast %3 : vector<1x96xf32> to vector<2x96xf32>
    %45 = arith.addf %43, %44 : vector<2x96xf32>
    %46 = vector.extract_strided_slice %8 {offsets = [2, 0], sizes = [2, 96], strides = [1, 1]} : vector<16x96xf32> to vector<2x96xf32>
    %47 = vector.extract_strided_slice %46 {offsets = [0, 0], sizes = [2, 32], strides = [1, 1]} : vector<2x96xf32> to vector<2x32xf32>
    %48 = vector.extract_strided_slice %45 {offsets = [0, 0], sizes = [2, 32], strides = [1, 1]} : vector<2x96xf32> to vector<2x32xf32>
    %49 = arith.addf %47, %48 : vector<2x32xf32>
    %50 = arith.negf %49 : vector<2x32xf32>
    %51 = math.exp %50 : vector<2x32xf32>
    %cst_17 = arith.constant 1.000000e+00 : f32
    %52 = vector.broadcast %cst_17 : f32 to vector<2x32xf32>
    %53 = arith.addf %52, %51 : vector<2x32xf32>
    %54 = arith.divf %52, %53 : vector<2x32xf32>
    %55 = vector.extract_strided_slice %46 {offsets = [0, 32], sizes = [2, 32], strides = [1, 1]} : vector<2x96xf32> to vector<2x32xf32>
    %56 = vector.extract_strided_slice %45 {offsets = [0, 32], sizes = [2, 32], strides = [1, 1]} : vector<2x96xf32> to vector<2x32xf32>
    %57 = arith.addf %55, %56 : vector<2x32xf32>
    %58 = arith.negf %57 : vector<2x32xf32>
    %59 = math.exp %58 : vector<2x32xf32>
    %cst_18 = arith.constant 1.000000e+00 : f32
    %60 = vector.broadcast %cst_18 : f32 to vector<2x32xf32>
    %61 = arith.addf %60, %59 : vector<2x32xf32>
    %62 = arith.divf %60, %61 : vector<2x32xf32>
    %63 = vector.extract_strided_slice %46 {offsets = [0, 64], sizes = [2, 32], strides = [1, 1]} : vector<2x96xf32> to vector<2x32xf32>
    %64 = vector.extract_strided_slice %45 {offsets = [0, 64], sizes = [2, 32], strides = [1, 1]} : vector<2x96xf32> to vector<2x32xf32>
    %65 = arith.mulf %54, %64 : vector<2x32xf32>
    %66 = arith.addf %63, %65 : vector<2x32xf32>
    %67 = math.tanh %66 : vector<2x32xf32>
    %cst_19 = arith.constant 1.000000e+00 : f32
    %68 = vector.broadcast %cst_19 : f32 to vector<2x32xf32>
    %69 = arith.subf %68, %62 : vector<2x32xf32>
    %70 = arith.mulf %69, %67 : vector<2x32xf32>
    %71 = arith.mulf %62, %40 : vector<2x32xf32>
    %72 = arith.addf %70, %71 : vector<2x32xf32>
    %c2 = arith.constant 2 : index
    %c0_20 = arith.constant 0 : index
    %73 = vector.load %arg9[%c2, %c0_20] : memref<20x32xf32, #tpu.memory_space<vmem>>, vector<2x32xf32>
    tpu.vector_store %arg9[%c2, %c0_20], %72 {strides = array<i32>} : memref<20x32xf32, #tpu.memory_space<vmem>>, vector<2x32xf32>,
    %74 = arith.truncf %72 : vector<2x32xf32> to vector<2x32xbf16>
    %cst_21 = arith.constant dense<0.000000e+00> : vector<2x96xf32>
    %75 = tpu.matmul %74, %1, %cst_21 {dimension_numbers = #tpu.dot_dimension_numbers<[1], [0], [0], [1], [0, 0, 1, 1], [], []>} : vector<2x32xbf16>, vector<32x96xbf16>, vector<2x96xf32> -> vector<2x96xf32>
    %76 = vector.broadcast %3 : vector<1x96xf32> to vector<2x96xf32>
    %77 = arith.addf %75, %76 : vector<2x96xf32>
    %78 = vector.extract_strided_slice %8 {offsets = [4, 0], sizes = [2, 96], strides = [1, 1]} : vector<16x96xf32> to vector<2x96xf32>
    %79 = vector.extract_strided_slice %78 {offsets = [0, 0], sizes = [2, 32], strides = [1, 1]} : vector<2x96xf32> to vector<2x32xf32>
    %80 = vector.extract_strided_slice %77 {offsets = [0, 0], sizes = [2, 32], strides = [1, 1]} : vector<2x96xf32> to vector<2x32xf32>
    %81 = arith.addf %79, %80 : vector<2x32xf32>
    %82 = arith.negf %81 : vector<2x32xf32>
    %83 = math.exp %82 : vector<2x32xf32>
    %cst_22 = arith.constant 1.000000e+00 : f32
    %84 = vector.broadcast %cst_22 : f32 to vector<2x32xf32>
    %85 = arith.addf %84, %83 : vector<2x32xf32>
    %86 = arith.divf %84, %85 : vector<2x32xf32>
    %87 = vector.extract_strided_slice %78 {offsets = [0, 32], sizes = [2, 32], strides = [1, 1]} : vector<2x96xf32> to vector<2x32xf32>
    %88 = vector.extract_strided_slice %77 {offsets = [0, 32], sizes = [2, 32], strides = [1, 1]} : vector<2x96xf32> to vector<2x32xf32>
    %89 = arith.addf %87, %88 : vector<2x32xf32>
    %90 = arith.negf %89 : vector<2x32xf32>
    %91 = math.exp %90 : vector<2x32xf32>
    %cst_23 = arith.constant 1.000000e+00 : f32
    %92 = vector.broadcast %cst_23 : f32 to vector<2x32xf32>
    %93 = arith.addf %92, %91 : vector<2x32xf32>
    %94 = arith.divf %92, %93 : vector<2x32xf32>
    %95 = vector.extract_strided_slice %78 {offsets = [0, 64], sizes = [2, 32], strides = [1, 1]} : vector<2x96xf32> to vector<2x32xf32>
    %96 = vector.extract_strided_slice %77 {offsets = [0, 64], sizes = [2, 32], strides = [1, 1]} : vector<2x96xf32> to vector<2x32xf32>
    %97 = arith.mulf %86, %96 : vector<2x32xf32>
    %98 = arith.addf %95, %97 : vector<2x32xf32>
    %99 = math.tanh %98 : vector<2x32xf32>
    %cst_24 = arith.constant 1.000000e+00 : f32
    %100 = vector.broadcast %cst_24 : f32 to vector<2x32xf32>
    %101 = arith.subf %100, %94 : vector<2x32xf32>
    %102 = arith.mulf %101, %99 : vector<2x32xf32>
    %103 = arith.mulf %94, %72 : vector<2x32xf32>
    %104 = arith.addf %102, %103 : vector<2x32xf32>
    %c4 = arith.constant 4 : index
    %c0_25 = arith.constant 0 : index
    %105 = vector.load %arg9[%c4, %c0_25] : memref<20x32xf32, #tpu.memory_space<vmem>>, vector<2x32xf32>
    tpu.vector_store %arg9[%c4, %c0_25], %104 {strides = array<i32>} : memref<20x32xf32, #tpu.memory_space<vmem>>, vector<2x32xf32>,
    %106 = arith.truncf %104 : vector<2x32xf32> to vector<2x32xbf16>
    %cst_26 = arith.constant dense<0.000000e+00> : vector<2x96xf32>
    %107 = tpu.matmul %106, %1, %cst_26 {dimension_numbers = #tpu.dot_dimension_numbers<[1], [0], [0], [1], [0, 0, 1, 1], [], []>} : vector<2x32xbf16>, vector<32x96xbf16>, vector<2x96xf32> -> vector<2x96xf32>
    %108 = vector.broadcast %3 : vector<1x96xf32> to vector<2x96xf32>
    %109 = arith.addf %107, %108 : vector<2x96xf32>
    %110 = vector.extract_strided_slice %8 {offsets = [6, 0], sizes = [2, 96], strides = [1, 1]} : vector<16x96xf32> to vector<2x96xf32>
    %111 = vector.extract_strided_slice %110 {offsets = [0, 0], sizes = [2, 32], strides = [1, 1]} : vector<2x96xf32> to vector<2x32xf32>
    %112 = vector.extract_strided_slice %109 {offsets = [0, 0], sizes = [2, 32], strides = [1, 1]} : vector<2x96xf32> to vector<2x32xf32>
    %113 = arith.addf %111, %112 : vector<2x32xf32>
    %114 = arith.negf %113 : vector<2x32xf32>
    %115 = math.exp %114 : vector<2x32xf32>
    %cst_27 = arith.constant 1.000000e+00 : f32
    %116 = vector.broadcast %cst_27 : f32 to vector<2x32xf32>
    %117 = arith.addf %116, %115 : vector<2x32xf32>
    %118 = arith.divf %116, %117 : vector<2x32xf32>
    %119 = vector.extract_strided_slice %110 {offsets = [0, 32], sizes = [2, 32], strides = [1, 1]} : vector<2x96xf32> to vector<2x32xf32>
    %120 = vector.extract_strided_slice %109 {offsets = [0, 32], sizes = [2, 32], strides = [1, 1]} : vector<2x96xf32> to vector<2x32xf32>
    %121 = arith.addf %119, %120 : vector<2x32xf32>
    %122 = arith.negf %121 : vector<2x32xf32>
    %123 = math.exp %122 : vector<2x32xf32>
    %cst_28 = arith.constant 1.000000e+00 : f32
    %124 = vector.broadcast %cst_28 : f32 to vector<2x32xf32>
    %125 = arith.addf %124, %123 : vector<2x32xf32>
    %126 = arith.divf %124, %125 : vector<2x32xf32>
    %127 = vector.extract_strided_slice %110 {offsets = [0, 64], sizes = [2, 32], strides = [1, 1]} : vector<2x96xf32> to vector<2x32xf32>
    %128 = vector.extract_strided_slice %109 {offsets = [0, 64], sizes = [2, 32], strides = [1, 1]} : vector<2x96xf32> to vector<2x32xf32>
    %129 = arith.mulf %118, %128 : vector<2x32xf32>
    %130 = arith.addf %127, %129 : vector<2x32xf32>
    %131 = math.tanh %130 : vector<2x32xf32>
    %cst_29 = arith.constant 1.000000e+00 : f32
    %132 = vector.broadcast %cst_29 : f32 to vector<2x32xf32>
    %133 = arith.subf %132, %126 : vector<2x32xf32>
    %134 = arith.mulf %133, %131 : vector<2x32xf32>
    %135 = arith.mulf %126, %104 : vector<2x32xf32>
    %136 = arith.addf %134, %135 : vector<2x32xf32>
    %c6 = arith.constant 6 : index
    %c0_30 = arith.constant 0 : index
    %137 = vector.load %arg9[%c6, %c0_30] : memref<20x32xf32, #tpu.memory_space<vmem>>, vector<2x32xf32>
    tpu.vector_store %arg9[%c6, %c0_30], %136 {strides = array<i32>} : memref<20x32xf32, #tpu.memory_space<vmem>>, vector<2x32xf32>,
    %138 = arith.truncf %136 : vector<2x32xf32> to vector<2x32xbf16>
    %cst_31 = arith.constant dense<0.000000e+00> : vector<2x96xf32>
    %139 = tpu.matmul %138, %1, %cst_31 {dimension_numbers = #tpu.dot_dimension_numbers<[1], [0], [0], [1], [0, 0, 1, 1], [], []>} : vector<2x32xbf16>, vector<32x96xbf16>, vector<2x96xf32> -> vector<2x96xf32>
    %140 = vector.broadcast %3 : vector<1x96xf32> to vector<2x96xf32>
    %141 = arith.addf %139, %140 : vector<2x96xf32>
    %142 = vector.extract_strided_slice %8 {offsets = [8, 0], sizes = [2, 96], strides = [1, 1]} : vector<16x96xf32> to vector<2x96xf32>
    %143 = vector.extract_strided_slice %142 {offsets = [0, 0], sizes = [2, 32], strides = [1, 1]} : vector<2x96xf32> to vector<2x32xf32>
    %144 = vector.extract_strided_slice %141 {offsets = [0, 0], sizes = [2, 32], strides = [1, 1]} : vector<2x96xf32> to vector<2x32xf32>
    %145 = arith.addf %143, %144 : vector<2x32xf32>
    %146 = arith.negf %145 : vector<2x32xf32>
    %147 = math.exp %146 : vector<2x32xf32>
    %cst_32 = arith.constant 1.000000e+00 : f32
    %148 = vector.broadcast %cst_32 : f32 to vector<2x32xf32>
    %149 = arith.addf %148, %147 : vector<2x32xf32>
    %150 = arith.divf %148, %149 : vector<2x32xf32>
    %151 = vector.extract_strided_slice %142 {offsets = [0, 32], sizes = [2, 32], strides = [1, 1]} : vector<2x96xf32> to vector<2x32xf32>
    %152 = vector.extract_strided_slice %141 {offsets = [0, 32], sizes = [2, 32], strides = [1, 1]} : vector<2x96xf32> to vector<2x32xf32>
    %153 = arith.addf %151, %152 : vector<2x32xf32>
    %154 = arith.negf %153 : vector<2x32xf32>
    %155 = math.exp %154 : vector<2x32xf32>
    %cst_33 = arith.constant 1.000000e+00 : f32
    %156 = vector.broadcast %cst_33 : f32 to vector<2x32xf32>
    %157 = arith.addf %156, %155 : vector<2x32xf32>
    %158 = arith.divf %156, %157 : vector<2x32xf32>
    %159 = vector.extract_strided_slice %142 {offsets = [0, 64], sizes = [2, 32], strides = [1, 1]} : vector<2x96xf32> to vector<2x32xf32>
    %160 = vector.extract_strided_slice %141 {offsets = [0, 64], sizes = [2, 32], strides = [1, 1]} : vector<2x96xf32> to vector<2x32xf32>
    %161 = arith.mulf %150, %160 : vector<2x32xf32>
    %162 = arith.addf %159, %161 : vector<2x32xf32>
    %163 = math.tanh %162 : vector<2x32xf32>
    %cst_34 = arith.constant 1.000000e+00 : f32
    %164 = vector.broadcast %cst_34 : f32 to vector<2x32xf32>
    %165 = arith.subf %164, %158 : vector<2x32xf32>
    %166 = arith.mulf %165, %163 : vector<2x32xf32>
    %167 = arith.mulf %158, %136 : vector<2x32xf32>
    %168 = arith.addf %166, %167 : vector<2x32xf32>
    %c8 = arith.constant 8 : index
    %c0_35 = arith.constant 0 : index
    %169 = vector.load %arg9[%c8, %c0_35] : memref<20x32xf32, #tpu.memory_space<vmem>>, vector<2x32xf32>
    tpu.vector_store %arg9[%c8, %c0_35], %168 {strides = array<i32>} : memref<20x32xf32, #tpu.memory_space<vmem>>, vector<2x32xf32>,
    %170 = arith.truncf %168 : vector<2x32xf32> to vector<2x32xbf16>
    %cst_36 = arith.constant dense<0.000000e+00> : vector<2x96xf32>
    %171 = tpu.matmul %170, %1, %cst_36 {dimension_numbers = #tpu.dot_dimension_numbers<[1], [0], [0], [1], [0, 0, 1, 1], [], []>} : vector<2x32xbf16>, vector<32x96xbf16>, vector<2x96xf32> -> vector<2x96xf32>
    %172 = vector.broadcast %3 : vector<1x96xf32> to vector<2x96xf32>
    %173 = arith.addf %171, %172 : vector<2x96xf32>
    %174 = vector.extract_strided_slice %8 {offsets = [10, 0], sizes = [2, 96], strides = [1, 1]} : vector<16x96xf32> to vector<2x96xf32>
    %175 = vector.extract_strided_slice %174 {offsets = [0, 0], sizes = [2, 32], strides = [1, 1]} : vector<2x96xf32> to vector<2x32xf32>
    %176 = vector.extract_strided_slice %173 {offsets = [0, 0], sizes = [2, 32], strides = [1, 1]} : vector<2x96xf32> to vector<2x32xf32>
    %177 = arith.addf %175, %176 : vector<2x32xf32>
    %178 = arith.negf %177 : vector<2x32xf32>
    %179 = math.exp %178 : vector<2x32xf32>
    %cst_37 = arith.constant 1.000000e+00 : f32
    %180 = vector.broadcast %cst_37 : f32 to vector<2x32xf32>
    %181 = arith.addf %180, %179 : vector<2x32xf32>
    %182 = arith.divf %180, %181 : vector<2x32xf32>
    %183 = vector.extract_strided_slice %174 {offsets = [0, 32], sizes = [2, 32], strides = [1, 1]} : vector<2x96xf32> to vector<2x32xf32>
    %184 = vector.extract_strided_slice %173 {offsets = [0, 32], sizes = [2, 32], strides = [1, 1]} : vector<2x96xf32> to vector<2x32xf32>
    %185 = arith.addf %183, %184 : vector<2x32xf32>
    %186 = arith.negf %185 : vector<2x32xf32>
    %187 = math.exp %186 : vector<2x32xf32>
    %cst_38 = arith.constant 1.000000e+00 : f32
    %188 = vector.broadcast %cst_38 : f32 to vector<2x32xf32>
    %189 = arith.addf %188, %187 : vector<2x32xf32>
    %190 = arith.divf %188, %189 : vector<2x32xf32>
    %191 = vector.extract_strided_slice %174 {offsets = [0, 64], sizes = [2, 32], strides = [1, 1]} : vector<2x96xf32> to vector<2x32xf32>
    %192 = vector.extract_strided_slice %173 {offsets = [0, 64], sizes = [2, 32], strides = [1, 1]} : vector<2x96xf32> to vector<2x32xf32>
    %193 = arith.mulf %182, %192 : vector<2x32xf32>
    %194 = arith.addf %191, %193 : vector<2x32xf32>
    %195 = math.tanh %194 : vector<2x32xf32>
    %cst_39 = arith.constant 1.000000e+00 : f32
    %196 = vector.broadcast %cst_39 : f32 to vector<2x32xf32>
    %197 = arith.subf %196, %190 : vector<2x32xf32>
    %198 = arith.mulf %197, %195 : vector<2x32xf32>
    %199 = arith.mulf %190, %168 : vector<2x32xf32>
    %200 = arith.addf %198, %199 : vector<2x32xf32>
    %c10 = arith.constant 10 : index
    %c0_40 = arith.constant 0 : index
    %201 = vector.load %arg9[%c10, %c0_40] : memref<20x32xf32, #tpu.memory_space<vmem>>, vector<2x32xf32>
    tpu.vector_store %arg9[%c10, %c0_40], %200 {strides = array<i32>} : memref<20x32xf32, #tpu.memory_space<vmem>>, vector<2x32xf32>,
    %202 = arith.truncf %200 : vector<2x32xf32> to vector<2x32xbf16>
    %cst_41 = arith.constant dense<0.000000e+00> : vector<2x96xf32>
    %203 = tpu.matmul %202, %1, %cst_41 {dimension_numbers = #tpu.dot_dimension_numbers<[1], [0], [0], [1], [0, 0, 1, 1], [], []>} : vector<2x32xbf16>, vector<32x96xbf16>, vector<2x96xf32> -> vector<2x96xf32>
    %204 = vector.broadcast %3 : vector<1x96xf32> to vector<2x96xf32>
    %205 = arith.addf %203, %204 : vector<2x96xf32>
    %206 = vector.extract_strided_slice %8 {offsets = [12, 0], sizes = [2, 96], strides = [1, 1]} : vector<16x96xf32> to vector<2x96xf32>
    %207 = vector.extract_strided_slice %206 {offsets = [0, 0], sizes = [2, 32], strides = [1, 1]} : vector<2x96xf32> to vector<2x32xf32>
    %208 = vector.extract_strided_slice %205 {offsets = [0, 0], sizes = [2, 32], strides = [1, 1]} : vector<2x96xf32> to vector<2x32xf32>
    %209 = arith.addf %207, %208 : vector<2x32xf32>
    %210 = arith.negf %209 : vector<2x32xf32>
    %211 = math.exp %210 : vector<2x32xf32>
    %cst_42 = arith.constant 1.000000e+00 : f32
    %212 = vector.broadcast %cst_42 : f32 to vector<2x32xf32>
    %213 = arith.addf %212, %211 : vector<2x32xf32>
    %214 = arith.divf %212, %213 : vector<2x32xf32>
    %215 = vector.extract_strided_slice %206 {offsets = [0, 32], sizes = [2, 32], strides = [1, 1]} : vector<2x96xf32> to vector<2x32xf32>
    %216 = vector.extract_strided_slice %205 {offsets = [0, 32], sizes = [2, 32], strides = [1, 1]} : vector<2x96xf32> to vector<2x32xf32>
    %217 = arith.addf %215, %216 : vector<2x32xf32>
    %218 = arith.negf %217 : vector<2x32xf32>
    %219 = math.exp %218 : vector<2x32xf32>
    %cst_43 = arith.constant 1.000000e+00 : f32
    %220 = vector.broadcast %cst_43 : f32 to vector<2x32xf32>
    %221 = arith.addf %220, %219 : vector<2x32xf32>
    %222 = arith.divf %220, %221 : vector<2x32xf32>
    %223 = vector.extract_strided_slice %206 {offsets = [0, 64], sizes = [2, 32], strides = [1, 1]} : vector<2x96xf32> to vector<2x32xf32>
    %224 = vector.extract_strided_slice %205 {offsets = [0, 64], sizes = [2, 32], strides = [1, 1]} : vector<2x96xf32> to vector<2x32xf32>
    %225 = arith.mulf %214, %224 : vector<2x32xf32>
    %226 = arith.addf %223, %225 : vector<2x32xf32>
    %227 = math.tanh %226 : vector<2x32xf32>
    %cst_44 = arith.constant 1.000000e+00 : f32
    %228 = vector.broadcast %cst_44 : f32 to vector<2x32xf32>
    %229 = arith.subf %228, %222 : vector<2x32xf32>
    %230 = arith.mulf %229, %227 : vector<2x32xf32>
    %231 = arith.mulf %222, %200 : vector<2x32xf32>
    %232 = arith.addf %230, %231 : vector<2x32xf32>
    %c12 = arith.constant 12 : index
    %c0_45 = arith.constant 0 : index
    %233 = vector.load %arg9[%c12, %c0_45] : memref<20x32xf32, #tpu.memory_space<vmem>>, vector<2x32xf32>
    tpu.vector_store %arg9[%c12, %c0_45], %232 {strides = array<i32>} : memref<20x32xf32, #tpu.memory_space<vmem>>, vector<2x32xf32>,
    %234 = arith.truncf %232 : vector<2x32xf32> to vector<2x32xbf16>
    %cst_46 = arith.constant dense<0.000000e+00> : vector<2x96xf32>
    %235 = tpu.matmul %234, %1, %cst_46 {dimension_numbers = #tpu.dot_dimension_numbers<[1], [0], [0], [1], [0, 0, 1, 1], [], []>} : vector<2x32xbf16>, vector<32x96xbf16>, vector<2x96xf32> -> vector<2x96xf32>
    %236 = vector.broadcast %3 : vector<1x96xf32> to vector<2x96xf32>
    %237 = arith.addf %235, %236 : vector<2x96xf32>
    %238 = vector.extract_strided_slice %8 {offsets = [14, 0], sizes = [2, 96], strides = [1, 1]} : vector<16x96xf32> to vector<2x96xf32>
    %239 = vector.extract_strided_slice %238 {offsets = [0, 0], sizes = [2, 32], strides = [1, 1]} : vector<2x96xf32> to vector<2x32xf32>
    %240 = vector.extract_strided_slice %237 {offsets = [0, 0], sizes = [2, 32], strides = [1, 1]} : vector<2x96xf32> to vector<2x32xf32>
    %241 = arith.addf %239, %240 : vector<2x32xf32>
    %242 = arith.negf %241 : vector<2x32xf32>
    %243 = math.exp %242 : vector<2x32xf32>
    %cst_47 = arith.constant 1.000000e+00 : f32
    %244 = vector.broadcast %cst_47 : f32 to vector<2x32xf32>
    %245 = arith.addf %244, %243 : vector<2x32xf32>
    %246 = arith.divf %244, %245 : vector<2x32xf32>
    %247 = vector.extract_strided_slice %238 {offsets = [0, 32], sizes = [2, 32], strides = [1, 1]} : vector<2x96xf32> to vector<2x32xf32>
    %248 = vector.extract_strided_slice %237 {offsets = [0, 32], sizes = [2, 32], strides = [1, 1]} : vector<2x96xf32> to vector<2x32xf32>
    %249 = arith.addf %247, %248 : vector<2x32xf32>
    %250 = arith.negf %249 : vector<2x32xf32>
    %251 = math.exp %250 : vector<2x32xf32>
    %cst_48 = arith.constant 1.000000e+00 : f32
    %252 = vector.broadcast %cst_48 : f32 to vector<2x32xf32>
    %253 = arith.addf %252, %251 : vector<2x32xf32>
    %254 = arith.divf %252, %253 : vector<2x32xf32>
    %255 = vector.extract_strided_slice %238 {offsets = [0, 64], sizes = [2, 32], strides = [1, 1]} : vector<2x96xf32> to vector<2x32xf32>
    %256 = vector.extract_strided_slice %237 {offsets = [0, 64], sizes = [2, 32], strides = [1, 1]} : vector<2x96xf32> to vector<2x32xf32>
    %257 = arith.mulf %246, %256 : vector<2x32xf32>
    %258 = arith.addf %255, %257 : vector<2x32xf32>
    %259 = math.tanh %258 : vector<2x32xf32>
    %cst_49 = arith.constant 1.000000e+00 : f32
    %260 = vector.broadcast %cst_49 : f32 to vector<2x32xf32>
    %261 = arith.subf %260, %254 : vector<2x32xf32>
    %262 = arith.mulf %261, %259 : vector<2x32xf32>
    %263 = arith.mulf %254, %232 : vector<2x32xf32>
    %264 = arith.addf %262, %263 : vector<2x32xf32>
    %c14 = arith.constant 14 : index
    %c0_50 = arith.constant 0 : index
    %265 = vector.load %arg9[%c14, %c0_50] : memref<20x32xf32, #tpu.memory_space<vmem>>, vector<2x32xf32>
    tpu.vector_store %arg9[%c14, %c0_50], %264 {strides = array<i32>} : memref<20x32xf32, #tpu.memory_space<vmem>>, vector<2x32xf32>,
    %cst_51 = arith.constant 0.000000e+00 : f32
    %266 = vector.broadcast %cst_51 : f32 to vector<2x32xf32>
    %267 = arith.truncf %264 : vector<2x32xf32> to vector<2x32xbf16>
    %cst_52 = arith.constant dense<0.000000e+00> : vector<2x96xf32>
    %268 = tpu.matmul %267, %0, %cst_52 {dimension_numbers = #tpu.dot_dimension_numbers<[1], [0], [0], [1], [0, 0, 1, 1], [], []>} : vector<2x32xbf16>, vector<32x96xbf16>, vector<2x96xf32> -> vector<2x96xf32>
    %269 = vector.broadcast %2 : vector<1x96xf32> to vector<2x96xf32>
    %270 = arith.addf %268, %269 : vector<2x96xf32>
    %271 = vector.extract_strided_slice %270 {offsets = [0, 0], sizes = [2, 32], strides = [1, 1]} : vector<2x96xf32> to vector<2x32xf32>
    %272 = vector.extract_strided_slice %3 {offsets = [0, 0], sizes = [1, 32], strides = [1, 1]} : vector<1x96xf32> to vector<1x32xf32>
    %273 = vector.broadcast %272 : vector<1x32xf32> to vector<2x32xf32>
    %274 = arith.addf %271, %273 : vector<2x32xf32>
    %275 = arith.negf %274 : vector<2x32xf32>
    %276 = math.exp %275 : vector<2x32xf32>
    %cst_53 = arith.constant 1.000000e+00 : f32
    %277 = vector.broadcast %cst_53 : f32 to vector<2x32xf32>
    %278 = arith.addf %277, %276 : vector<2x32xf32>
    %279 = arith.divf %277, %278 : vector<2x32xf32>
    %280 = vector.extract_strided_slice %270 {offsets = [0, 32], sizes = [2, 32], strides = [1, 1]} : vector<2x96xf32> to vector<2x32xf32>
    %281 = vector.extract_strided_slice %3 {offsets = [0, 32], sizes = [1, 32], strides = [1, 1]} : vector<1x96xf32> to vector<1x32xf32>
    %282 = vector.broadcast %281 : vector<1x32xf32> to vector<2x32xf32>
    %283 = arith.addf %280, %282 : vector<2x32xf32>
    %284 = arith.negf %283 : vector<2x32xf32>
    %285 = math.exp %284 : vector<2x32xf32>
    %cst_54 = arith.constant 1.000000e+00 : f32
    %286 = vector.broadcast %cst_54 : f32 to vector<2x32xf32>
    %287 = arith.addf %286, %285 : vector<2x32xf32>
    %288 = arith.divf %286, %287 : vector<2x32xf32>
    %289 = vector.extract_strided_slice %270 {offsets = [0, 64], sizes = [2, 32], strides = [1, 1]} : vector<2x96xf32> to vector<2x32xf32>
    %290 = vector.extract_strided_slice %3 {offsets = [0, 64], sizes = [1, 32], strides = [1, 1]} : vector<1x96xf32> to vector<1x32xf32>
    %291 = vector.broadcast %290 : vector<1x32xf32> to vector<2x32xf32>
    %292 = arith.mulf %279, %291 : vector<2x32xf32>
    %293 = arith.addf %289, %292 : vector<2x32xf32>
    %294 = math.tanh %293 : vector<2x32xf32>
    %cst_55 = arith.constant 1.000000e+00 : f32
    %295 = vector.broadcast %cst_55 : f32 to vector<2x32xf32>
    %296 = arith.subf %295, %288 : vector<2x32xf32>
    %297 = arith.mulf %296, %294 : vector<2x32xf32>
    %298 = arith.mulf %288, %266 : vector<2x32xf32>
    %299 = arith.addf %297, %298 : vector<2x32xf32>
    %c16 = arith.constant 16 : index
    %c0_56 = arith.constant 0 : index
    %300 = vector.load %arg9[%c16, %c0_56] : memref<20x32xf32, #tpu.memory_space<vmem>>, vector<2x32xf32>
    tpu.vector_store %arg9[%c16, %c0_56], %299 {strides = array<i32>} : memref<20x32xf32, #tpu.memory_space<vmem>>, vector<2x32xf32>,
    %301 = arith.truncf %299 : vector<2x32xf32> to vector<2x32xbf16>
    %cst_57 = arith.constant dense<0.000000e+00> : vector<2x96xf32>
    %302 = tpu.matmul %301, %0, %cst_57 {dimension_numbers = #tpu.dot_dimension_numbers<[1], [0], [0], [1], [0, 0, 1, 1], [], []>} : vector<2x32xbf16>, vector<32x96xbf16>, vector<2x96xf32> -> vector<2x96xf32>
    %303 = vector.broadcast %2 : vector<1x96xf32> to vector<2x96xf32>
    %304 = arith.addf %302, %303 : vector<2x96xf32>
    %305 = vector.extract_strided_slice %304 {offsets = [0, 0], sizes = [2, 32], strides = [1, 1]} : vector<2x96xf32> to vector<2x32xf32>
    %306 = vector.extract_strided_slice %3 {offsets = [0, 0], sizes = [1, 32], strides = [1, 1]} : vector<1x96xf32> to vector<1x32xf32>
    %307 = vector.broadcast %306 : vector<1x32xf32> to vector<2x32xf32>
    %308 = arith.addf %305, %307 : vector<2x32xf32>
    %309 = arith.negf %308 : vector<2x32xf32>
    %310 = math.exp %309 : vector<2x32xf32>
    %cst_58 = arith.constant 1.000000e+00 : f32
    %311 = vector.broadcast %cst_58 : f32 to vector<2x32xf32>
    %312 = arith.addf %311, %310 : vector<2x32xf32>
    %313 = arith.divf %311, %312 : vector<2x32xf32>
    %314 = vector.extract_strided_slice %304 {offsets = [0, 32], sizes = [2, 32], strides = [1, 1]} : vector<2x96xf32> to vector<2x32xf32>
    %315 = vector.extract_strided_slice %3 {offsets = [0, 32], sizes = [1, 32], strides = [1, 1]} : vector<1x96xf32> to vector<1x32xf32>
    %316 = vector.broadcast %315 : vector<1x32xf32> to vector<2x32xf32>
    %317 = arith.addf %314, %316 : vector<2x32xf32>
    %318 = arith.negf %317 : vector<2x32xf32>
    %319 = math.exp %318 : vector<2x32xf32>
    %cst_59 = arith.constant 1.000000e+00 : f32
    %320 = vector.broadcast %cst_59 : f32 to vector<2x32xf32>
    %321 = arith.addf %320, %319 : vector<2x32xf32>
    %322 = arith.divf %320, %321 : vector<2x32xf32>
    %323 = vector.extract_strided_slice %304 {offsets = [0, 64], sizes = [2, 32], strides = [1, 1]} : vector<2x96xf32> to vector<2x32xf32>
    %324 = vector.extract_strided_slice %3 {offsets = [0, 64], sizes = [1, 32], strides = [1, 1]} : vector<1x96xf32> to vector<1x32xf32>
    %325 = vector.broadcast %324 : vector<1x32xf32> to vector<2x32xf32>
    %326 = arith.mulf %313, %325 : vector<2x32xf32>
    %327 = arith.addf %323, %326 : vector<2x32xf32>
    %328 = math.tanh %327 : vector<2x32xf32>
    %cst_60 = arith.constant 1.000000e+00 : f32
    %329 = vector.broadcast %cst_60 : f32 to vector<2x32xf32>
    %330 = arith.subf %329, %322 : vector<2x32xf32>
    %331 = arith.mulf %330, %328 : vector<2x32xf32>
    %332 = arith.mulf %322, %266 : vector<2x32xf32>
    %333 = arith.addf %331, %332 : vector<2x32xf32>
    %c18 = arith.constant 18 : index
    %c0_61 = arith.constant 0 : index
    %334 = vector.load %arg9[%c18, %c0_61] : memref<20x32xf32, #tpu.memory_space<vmem>>, vector<2x32xf32>
    tpu.vector_store %arg9[%c18, %c0_61], %333 {strides = array<i32>} : memref<20x32xf32, #tpu.memory_space<vmem>>, vector<2x32xf32>,
    %c0_62 = arith.constant 0 : index
    %c0_63 = arith.constant 0 : index
    %335 = vector.load %arg9[%c0_62, %c0_63] : memref<20x32xf32, #tpu.memory_space<vmem>>, vector<20x32xf32>
    %336 = arith.truncf %335 : vector<20x32xf32> to vector<20x32xbf16>
    %c0_64 = arith.constant 0 : index
    %c0_65 = arith.constant 0 : index
    %337 = vector.load %arg6[%c0_64, %c0_65] : memref<32x512xbf16, #tpu.memory_space<vmem>>, vector<32x512xbf16>
    %cst_66 = arith.constant dense<0.000000e+00> : vector<20x512xf32>
    %338 = tpu.matmul %336, %337, %cst_66 {dimension_numbers = #tpu.dot_dimension_numbers<[1], [0], [0], [1], [0, 0, 1, 1], [], []>} : vector<20x32xbf16>, vector<32x512xbf16>, vector<20x512xf32> -> vector<20x512xf32>
    %c0_67 = arith.constant 0 : index
    %c0_68 = arith.constant 0 : index
    %339 = vector.load %arg7[%c0_67, %c0_68] : memref<1x512xf32, #tpu.memory_space<vmem>>, vector<1x512xf32>
    %340 = vector.broadcast %339 : vector<1x512xf32> to vector<20x512xf32>
    %341 = arith.addf %338, %340 : vector<20x512xf32>
    %c0_69 = arith.constant 0 : index
    %c0_70 = arith.constant 0 : index
    %342 = vector.load %arg8[%c0_69, %c0_70] : memref<20x512xf32, #tpu.memory_space<vmem>>, vector<20x512xf32>
    tpu.vector_store %arg8[%c0_69, %c0_70], %341 {strides = array<i32>} : memref<20x512xf32, #tpu.memory_space<vmem>>, vector<20x512xf32>,
    return
  }
  func.func @transform_0(%arg0: i32) -> (i32, i32) {
    %c0_i32 = arith.constant 0 : i32
    %c0_i32_0 = arith.constant 0 : i32
    %c0_i32_1 = arith.constant 0 : i32
    return %c0_i32, %c0_i32_0 : i32, i32
  }
  func.func @transform_1(%arg0: i32) -> (i32, i32) {
    %c0_i32 = arith.constant 0 : i32
    %c0_i32_0 = arith.constant 0 : i32
    %c0_i32_1 = arith.constant 0 : i32
    return %c0_i32, %c0_i32_0 : i32, i32
  }
  func.func @transform_2(%arg0: i32) -> (i32, i32) {
    %c0_i32 = arith.constant 0 : i32
    %c0_i32_0 = arith.constant 0 : i32
    %c0_i32_1 = arith.constant 0 : i32
    return %c0_i32, %c0_i32_0 : i32, i32
  }
  func.func @transform_3(%arg0: i32) -> (i32, i32) {
    %c0_i32 = arith.constant 0 : i32
    %c0_i32_0 = arith.constant 0 : i32
    %c0_i32_1 = arith.constant 0 : i32
    return %c0_i32, %c0_i32_0 : i32, i32
  }
  func.func @transform_4(%arg0: i32) -> (i32, i32) {
    %c0_i32 = arith.constant 0 : i32
    %c0_i32_0 = arith.constant 0 : i32
    %c0_i32_1 = arith.constant 0 : i32
    return %c0_i32, %c0_i32_0 : i32, i32
  }
  func.func @transform_5(%arg0: i32) -> (i32, i32) {
    %c0_i32 = arith.constant 0 : i32
    %c0_i32_0 = arith.constant 0 : i32
    %c0_i32_1 = arith.constant 0 : i32
    return %c0_i32, %c0_i32_0 : i32, i32
  }
  func.func @transform_6(%arg0: i32) -> (i32, i32) {
    %c0_i32 = arith.constant 0 : i32
    %c0_i32_0 = arith.constant 0 : i32
    %c0_i32_1 = arith.constant 0 : i32
    return %c0_i32, %c0_i32_0 : i32, i32
  }
  func.func @transform_7(%arg0: i32) -> (i32, i32) {
    %c0_i32 = arith.constant 0 : i32
    %c0_i32_0 = arith.constant 0 : i32
    %c0_i32_1 = arith.constant 0 : i32
    return %c0_i32, %c0_i32_0 : i32, i32
  }
}

</mosaic_0001>

<bundles_post_ra>
// kernel: tile.6
= control target key start
LH: loop header
LB: loop body
LE: loop exit
PB: predicated region body
PF: predicated region fallthrough
CT: control target
= control target key end

     0   :  { %s46_s0 = inlined_call_operand.vmem [shape: f32[324], index: 0, kind: input, shape index: {}]   ;;  %s47_s1 = inlined_call_operand.vmem [shape: f32[8,324], index: 1, kind: output, shape index: {}]  }
   0x1   :  { %v4_v0 = vld [vmem:[%s46_s0] ss:$0 sm:$0xff]  ;;  %v14_v1 = vld [vmem:[%s46_s0 + $0x1] ss:$0 sm:$0xff]  ;;  %v16_v2 = vld [vmem:[%s46_s0 + $0x2] ss:$0 sm:$0xff] }
   0x2   :  { %5 = vst [vmem:[%s47_s1] sm:$0xff] %v4_v0  ;;  %15 = vst [vmem:[%s47_s1 + $0x8] sm:$0xff] %v14_v1 }
   0x3   :  { %17 = vst [vmem:[%s47_s1 + $0x10] sm:$0xff] %v16_v2 }

// kernel: tile.7
= control target key start
LH: loop header
LB: loop body
LE: loop exit
PB: predicated region body
PF: predicated region fallthrough
CT: control target
= control target key end

     0   :  { %vm58_vm0 = vcmask 424960   ;;  %vm14_vm1 = vcmask 293888   ;;  %vm80_vm2 = vcmask 490496   ;;  %vm36_vm3 = vcmask 359424   ;;  %s218_s14 = smov 76   ;;  %s122_s19 = smov 3  ;;  %s390_s0 = inlined_call_operand.vmem [shape: f32[8,324], index: 0, kind: input, shape index: {}]   ;;  %s391_s1 = inlined_call_operand.vmem [shape: f32[2592], index: 1, kind: output, shape index: {}]  }
   0x1   :  { %v181_v0 = vld [vmem:[%s390_s0 + $0x13] sm:$0x1]   ;;  %v169_v3 = vld [vmem:[%s390_s0 + $0x17] sm:$0x1]   ;;  %v187_v6 = vld [vmem:[%s390_s0 + $0x11] sm:$0x1]  }
   0x2   :  { %v182_v1 = vld [vmem:[%s390_s0 + $0x3] ss:$8 sm:$0x7]   ;;  %v170_v4 = vld [vmem:[%s390_s0 + $0x7] ss:$8 sm:$0x7]  }
   0x3   :  { %v59_v2 = vsel %vm58_vm0, %v182_v1, %v181_v0  ;;  %v15_v5 = vsel %vm14_vm1, %v170_v4, %v169_v3  ;;  %v188_v7 = vld [vmem:[%s390_s0 + $0x1] ss:$8 sm:$0x7]   ;;  %s219_s20 = smov 92   ;;  %v175_v9 = vld [vmem:[%s390_s0 + $0x15] sm:$0x1]  }
   0x4   :  { %60 = vrot.lane.b32.xlu1 %v59_v2, %s218_s14  ;;  %16 = vrot.lane.b32.xlu0 %v15_v5, %s219_s20  ;;  %v81_v8 = vsel %vm80_vm2, %v188_v7, %v187_v6  ;;  %v176_v10 = vld [vmem:[%s390_s0 + $0x5] ss:$8 sm:$0x7]   ;;  %v200_v13 = vld [vmem:[%s390_s0 + $0x14] sm:$0x1]   ;;  %vm126_vm4 = vcmask 916480  }
   0x5   :  { %v37_v11 = vsel %vm36_vm3, %v176_v10, %v175_v9  ;;  %v199_v12 = vld [vmem:[%s390_s0 + $0x4] ss:$8 sm:%s122_s19]   ;;  %s99_s29 = smov 3  ;;  %v194_v15 = vld [vmem:[%s390_s0 + $0x16] sm:$0x1]   ;;  %vm103_vm5 = vcmask 850944  }
   0x6   :  { %v193_v14 = vld [vmem:[%s390_s0 + $0x6] ss:$8 sm:%s99_s29]   ;;  %s220_s5 = smov 68   ;;  %s145_s6 = smov 3  ;;  %v127_v16 = vsel %vm126_vm4, %v200_v13, %v199_v12  ;;  %v206_v19 = vld [vmem:[%s390_s0 + $0x12] sm:$0x1]  }
   0x7   :  { %s221_s7 = smov 84   ;;  %v104_v17 = vsel %vm103_vm5, %v194_v15, %v193_v14  ;;  %s25_s8 = smov 3  ;;  %v205_v18 = vld [vmem:[%s390_s0 + $0x2] ss:$8 sm:%s145_s6]   ;;  %vm149_vm6 = vcmask 982016   ;;  %vm4_vm7 = vcmask 556032  }
   0x8   :  { %82 = vrot.lane.b32.xlu1 %v81_v8, %s220_s5  ;;  %38 = vrot.lane.b32.xlu0 %v37_v11, %s221_s7  ;;  %s222_s13 = smov 16   ;;  %s223_s15 = smov 24   ;;  %v173_v20 = vld [vmem:[%s390_s0 + $0x7] ss:$8 sm:%s25_s8]   ;;  %v150_v22 = vsel %vm149_vm6, %v206_v19, %v205_v18  ;;  %vm62_vm8 = vcmask 130048   ;;  %vm65_vm9 = vcmask 1048160  }
   0x9   :  { %v167_v21 = vld [vmem:[%s390_s0 + $0x10] sm:$0x1]   ;;  %s69_s21 = smov 3  ;;  %s47_s24 = smov 3  ;;  %vm18_vm10 = vcmask 261120   ;;  %vm21_vm11 = vcmask 1048288  }
   0xa   :  { %168 = vst.msk [vmem:[%s391_s1 + $0x2] sm:$0x1] %vm4_vm7, %v167_v21   ;;  %s7_s25 = smov 3  ;;  %s224_s27 = smov 8   ;;  %v185_v24 = vld [vmem:[%s390_s0 + $0x3] ss:$8 sm:%s69_s21]  }
   0xb   :  { %v8_v23 = vld [vmem:[%s390_s0] ss:$8 sm:%s7_s25]   ;;  %v179_v25 = vld [vmem:[%s390_s0 + $0x5] ss:$8 sm:%s47_s24]   ;;  %s114_s6 = smov 3  ;;  %s91_s8 = smov 3 }
   0xc   :  { %128 = vrot.lane.b32.xlu1 %v127_v16, %s222_s13  ;;  %105 = vrot.lane.b32.xlu0 %v104_v17, %s223_s15  ;;  %9 = vst [vmem:[%s391_s1] sm:$0x3] %v8_v23   ;;  %s160_s11 = smov 3  ;;  %s137_s12 = smov 3  ;;  %vm84_vm12 = vcmask 64512   ;;  %vm87_vm13 = vcmask 1048096   ;;  %vm40_vm14 = vcmask 195584  }
   0xd   :  { %v197_v26 = vld [vmem:[%s390_s0 + $0x6] ss:$8 sm:%s114_s6]   ;;  %v191_v27 = vld [vmem:[%s390_s0 + $0x1] ss:$8 sm:%s91_s8]   ;;  %vm43_vm15 = vcmask 1048224   ;;  %vm133_vm0 = vcmask 687232  }
   0xe   :  { %v209_v28 = vld [vmem:[%s390_s0 + $0x2] ss:$8 sm:%s160_s11]   ;;  %v203_v29 = vld [vmem:[%s390_s0 + $0x4] ss:$8 sm:%s137_s12]   ;;  %vm110_vm1 = vcmask 752832   ;;  %vm29_vm2 = vcmask 752640  }
   0xf   :  { %vm156_vm3 = vcmask 621632   ;;  %vm73_vm4 = vcmask 621568   ;;  %vm51_vm5 = vcmask 687104   ;;  %vm118_vm6 = vcmask 1047744  }
  0x10   :  { %27 = vrot.lane.b32.xlu1 %v173_v20, %s219_s20  ;;  %151 = vrot.lane.b32.xlu0 %v150_v22, %s224_s27 }
  0x14   :  { %71 = vrot.lane.b32.xlu1 %v185_v24, %s218_s14  ;;  %49 = vrot.lane.b32.xlu0 %v179_v25, %s221_s7 }
  0x18   :  { %116 = vrot.lane.b32.xlu1 %v197_v26, %s223_s15  ;;  %93 = vrot.lane.b32.xlu0 %v191_v27, %s220_s5 }
  0x1c   :  { %162 = vrot.lane.b32.xlu1 %v209_v28, %s224_s27  ;;  %139 = vrot.lane.b32.xlu0 %v203_v29, %s222_s13 }
  0x76   :  { %v61_v30 = vpop.permute.xlu1 %60   ;;  %v17_v31 = vpop.permute.xlu0 %16  }
  0x77   :  { %183 = vst.msk [vmem:[%s391_s1 + $0xa] sm:$0x1] %vm62_vm8, %v61_v30  }
  0x78   :  { %184 = vst.msk [vmem:[%s391_s1 + $0x7] sm:$0x7] %vm65_vm9, %v61_v30  }
  0x79   :  { %171 = vst.msk [vmem:[%s391_s1 + $0x14] sm:$0x1] %vm18_vm10, %v17_v31  }
  0x7a   :  { %172 = vst.msk [vmem:[%s391_s1 + $0x11] sm:$0x7] %vm21_vm11, %v17_v31   ;;  %v83_v32 = vpop.permute.xlu1 %82   ;;  %v39_v33 = vpop.permute.xlu0 %38  }
  0x7b   :  { %189 = vst.msk [vmem:[%s391_s1 + $0x5] sm:$0x1] %vm84_vm12, %v83_v32  }
  0x7c   :  { %190 = vst.msk [vmem:[%s391_s1 + $0x2] sm:$0x7] %vm87_vm13, %v83_v32  }
  0x7d   :  { %177 = vst.msk [vmem:[%s391_s1 + $0xf] sm:$0x1] %vm40_vm14, %v39_v33  }
  0x7e   :  { %178 = vst.msk [vmem:[%s391_s1 + $0xc] sm:$0x7] %vm43_vm15, %v39_v33   ;;  %v129_v34 = vpop.permute.xlu1 %128   ;;  %v106_v35 = vpop.permute.xlu0 %105  }
  0x7f   :  { %201 = vst.msk [vmem:[%s391_s1 + $0xb] sm:$0x3] %vm62_vm8, %v129_v34   ;;  %vm141_vm8 = vcmask 1047680  }
  0x80   :  { %202 = vst.msk [vmem:[%s391_s1 + $0xc] sm:$0x1] %vm133_vm0, %v129_v34  }
  0x81   :  { %195 = vst.msk [vmem:[%s391_s1 + $0x10] sm:$0x3] %vm40_vm14, %v106_v35  }
  0x82   :  { %196 = vst.msk [vmem:[%s391_s1 + $0x11] sm:$0x1] %vm110_vm1, %v106_v35   ;;  %v28_v36 = vpop.permute.xlu1 %27   ;;  %v152_v37 = vpop.permute.xlu0 %151  }
  0x83   :  { %174 = vst.msk [vmem:[%s391_s1 + $0x12] sm:$0x3] %vm29_vm2, %v28_v36  }
  0x84   :  { %207 = vst.msk [vmem:[%s391_s1 + $0x6] sm:$0x3] %vm84_vm12, %v152_v37  }
  0x85   :  { %208 = vst.msk [vmem:[%s391_s1 + $0x7] sm:$0x1] %vm156_vm3, %v152_v37  }
  0x86   :  { %v72_v38 = vpop.permute.xlu1 %71   ;;  %v50_v39 = vpop.permute.xlu0 %49  }
  0x87   :  { %186 = vst.msk [vmem:[%s391_s1 + $0x8] sm:$0x3] %vm73_vm4, %v72_v38  }
  0x88   :  { %180 = vst.msk [vmem:[%s391_s1 + $0xd] sm:$0x3] %vm51_vm5, %v50_v39  }
  0x8a   :  { %v117_v40 = vpop.permute.xlu1 %116   ;;  %v94_v41 = vpop.permute.xlu0 %93  }
  0x8b   :  { %198 = vst.msk [vmem:[%s391_s1 + $0xf] sm:$0x3] %vm118_vm6, %v117_v40  }
  0x8c   :  { %192 = vst.msk [vmem:[%s391_s1 + $0x3] sm:$0x3] %vm4_vm7, %v94_v41   ;;  %vm164_vm7 = vcmask 1047616  }
  0x8e   :  { %v163_v42 = vpop.permute.xlu1 %162   ;;  %v140_v43 = vpop.permute.xlu0 %139  }
  0x8f   :  { %210 = vst.msk [vmem:[%s391_s1 + $0x5] sm:$0x3] %vm164_vm7, %v163_v42  }
  0x90   :  { %204 = vst.msk [vmem:[%s391_s1 + $0xa] sm:$0x3] %vm141_vm8, %v140_v43  }

// kernel: bev_gru_forward.3
= control target key start
LH: loop header
LB: loop body
LE: loop exit
PB: predicated region body
PF: predicated region fallthrough
CT: control target
= control target key end

     0   :  { %v1367_v0 = vmov 0.0   ;;  %vm1368_vm0 = vmmov 0   ;;  %vm58_vm1 = vcmask 261120   ;;  %v1369_v8 = vmov 0   ;;  %s1733_s1 = inlined_call_operand.vmem [shape: bf16[32,96], index: 1, kind: input, shape index: {}]   ;;  %s1734_s2 = inlined_call_operand.vmem [shape: bf16[32,96], index: 2, kind: input, shape index: {}]   ;;  %s1735_s0 = inlined_call_operand.vmem [shape: f32[16,32], index: 0, kind: input, shape index: {}]   ;;  %s1736_s4 = inlined_call_operand.vmem [shape: f32[1,96], index: 4, kind: input, shape index: {}]   ;;  %s1737_s3 = inlined_call_operand.vmem [shape: f32[1,96], index: 3, kind: input, shape index: {}]   ;;  %s1738_s5 = inlined_call_operand.vmem [shape: bf16[32,512], index: 5, kind: input, shape index: {}]   ;;  %s1739_s6 = inlined_call_operand.vmem [shape: f32[1,512], index: 6, kind: input, shape index: {}]   ;;  %s1740_s7 = inlined_call_operand.vmem [shape: f32[20,512], index: 7, kind: output, shape index: {}]  }
   0x1   :  { %1198 = vmatprep.subr.bf16.mxu0 %v1367_v0  ;;  %1206 = vmatprep.subr.bf16.mxu1 %v1367_v0  ;;  %v1417_v1 = vld [vmem:[%s1733_s1] sm:$0xff]   ;;  %v1432_v3 = vld [vmem:[%s1733_s1 + $0x8] sm:$0xff]   ;;  %vm194_vm2 = vcmask 254976   ;;  %vm361_vm3 = vcmask 259076   ;;  %vm277_vm4 = vcmask 257026   ;;  %vm445_vm5 = vcmask 261126  }
   0x2   :  { %v1422_v2 = vld [vmem:[%s1734_s2] sm:$0xff]   ;;  %1202 = vmatprep.mubr.msk.bf16.mxu0 %vm1368_vm0, %v1367_v0  ;;  %1210 = vmatprep.mubr.msk.bf16.mxu1 %vm1368_vm0, %v1367_v0  ;;  %v1439_v4 = vld [vmem:[%s1734_s2 + $0x8] sm:$0xff]   ;;  %s1370_s2 = smov 64  }
   0x3   :  { %1199 = vmatpush3.bf16.msra.mxu0 %v1417_v1  ;;  %1207 = vmatpush3.bf16.msra.mxu1 %v1422_v2  ;;  %v37_v5 = vld [vmem:[%s1735_s0] sm:$0xff]  ;;  %v38_v6 = vld [vmem:[%s1735_s0 + $0x8] sm:$0xff] }
   0x4   :  { %1200 = vmatprep.subr.bf16.mxu0 %v1367_v0  ;;  %1208 = vmatprep.subr.bf16.mxu1 %v1367_v0  ;;  %v39_v7 = vpack.c.bf16 %v38_v6, %v37_v5  ;;  %v1469_v9 = vld [vmem:[%s1736_s4] ss:$0 sm:$0xff] }
   0x5   :  { %v1478_v19 = vld [vmem:[%s1737_s3] ss:$0 sm:$0xff]  ;;  %s1371_s3 = smov 96  }
   0x7   :  { %1201 = vmatpush3.bf16.msra.mxu0 %v1432_v3  ;;  %1209 = vmatpush3.bf16.msra.mxu1 %v1439_v4 }
   0x8   :  { %1214 = vmatprep.subr.bf16.mxu0 %v1367_v0  ;;  %1222 = vmatprep.subr.bf16.mxu1 %v1367_v0 }
   0xa   :  { %1203 = vmatmul.mubr.msk.bf16.vlgmr.msra.gmra.mrb[0].mxu0 %vm58_vm1, %v39_v7  ;;  %1211 = vmatmul.mubr.bf16.vlgmr.msra.gmra.mrb[0].mxu1 %v1369_v8 }
   0xb   :  { %1215 = vmatpush3.bf16.msra.mxu0 %v1422_v2  ;;  %1218 = vmatprep.mubr.msk.bf16.mxu0 %vm1368_vm0, %v1367_v0 }
   0xc   :  { %1216 = vmatprep.subr.bf16.mxu0 %v1367_v0  ;;  %1223 = vmatpush3.bf16.msra.mxu1 %v1422_v2 }
   0xd   :  { %1226 = vmatprep.mubr.msk.bf16.mxu1 %vm1368_vm0, %v1367_v0  ;;  %1224 = vmatprep.subr.bf16.mxu1 %v1367_v0 }
   0xf   :  { %1217 = vmatpush3.bf16.msra.mxu0 %v1439_v4 }
  0x10   :  { %1230 = vmatprep.subr.bf16.mxu0 %v1367_v0  ;;  %1225 = vmatpush3.bf16.msra.mxu1 %v1439_v4 }
  0x11   :  { %1238 = vmatprep.subr.bf16.mxu1 %v1367_v0 }
  0xdd   :  { %v96_v10 = vpop.f32.mrb[0].mxu0  ;;  %v158_v11 = vpop.f32.mrb[0].mxu1 }
  0xde   :  { %v1204_v12 = vpop.f32.mrb[1].mxu0  ;;  %v159_v13 = vadd.f32 %v1469_v9, %v158_v11  ;;  %v1212_v14 = vpop.f32.mrb[1].mxu1  ;;  %v1481_v20 = vadd.f32 %v1478_v19, %v96_v10 }
  0xdf   :  { %v1472_v15 = vpop.f32.mrb[2].mxu0  ;;  %v161_v16 = vpop.f32.mrb[2].mxu1 }
  0xe0   :  { %v1205_v17 = vpop.f32.mrb[3].mxu0  ;;  %172 = vrot.lane.b32.xlu0 %v159_v13, %s1370_s2  ;;  %v1213_v18 = vpop.f32.mrb[3].mxu1  ;;  %v164_v21 = vadd.f32 %v159_v13, %v1481_v20 }
  0xe2   :  { %v1134_v22 = vmul.f32 -1.442695, %v164_v21 }
  0xe4   :  { %1307 = vpow2.f32 %v1134_v22 }
  0xee   :  { %v1308_v23 = vpop.eup %1307 }
  0xef   :  { %v168_v24 = vadd.f32 1.0, %v1308_v23 }
  0xf1   :  { %1309 = vrcp.f32 %v168_v24 }
  0xfb   :  { %v1310_v25 = vpop.eup %1309 }
  0xfc   :  { %v182_v31 = vsub.f32 1.0, %v1310_v25  ;;  %v188_v33 = vmul.f32 0.0, %v1310_v25 }
 0x152   :  { %v173_v26 = vpop.permute.xlu0 %172 }
 0x153   :  { %v175_v27 = vmul.f32 %v1310_v25, %v173_v26 }
 0x155   :  { %177 = vrot.lane.b32.xlu0 %v175_v27, %s1370_s2 }
 0x1c7   :  { %v178_v28 = vpop.permute.xlu0 %177 }
 0x1c8   :  { %v180_v29 = vadd.f32 %v178_v28, %v1481_v20 }
 0x1ca   :  { %1311 = vtanh.f32 %v180_v29 }
 0x1d4   :  { %v1312_v30 = vpop.eup %1311 }
 0x1d5   :  { %184 = vrot.lane.b32.xlu1 %v1312_v30, %s1371_s3 }
 0x247   :  { %v185_v32 = vpop.permute.xlu1 %184 }
 0x248   :  { %v187_v34 = vmul.f32 %v185_v32, %v182_v31 }
 0x24a   :  { %v1487_v35 = vadd.f32 %v188_v33, %v187_v34 }
 0x24c   :  { %v196_v36 = vpack.c.bf16 %v1487_v35, %v1487_v35  ;;  %v269_v55 = vrot.slane %v1487_v35, 6 }
 0x24e   :  { %198 = vrot.lane.b32.xlu1 %v196_v36, %s1371_s3 }
 0x2c0   :  { %v199_v37 = vpop.permute.xlu1 %198 }
 0x2c1   :  { %1219 = vmatmul.mubr.msk.bf16.vlgmr.msra.gmra.mrb[4].mxu0 %vm58_vm1, %v199_v37 }
 0x2c2   :  { %1231 = vmatpush3.bf16.msra.mxu0 %v1422_v2  ;;  %1234 = vmatprep.mubr.msk.bf16.mxu0 %vm1368_vm0, %v1367_v0 }
 0x2c3   :  { %1232 = vmatprep.subr.bf16.mxu0 %v1367_v0 }
 0x2c6   :  { %1233 = vmatpush3.bf16.msra.mxu0 %v1439_v4 }
 0x2c7   :  { %1246 = vmatprep.subr.bf16.mxu0 %v1367_v0 }
 0x394   :  { %v237_v38 = vpop.f32.mrb[4].mxu0 }
 0x395   :  { %v238_v39 = vadd.f32 %v1469_v9, %v237_v38  ;;  %v1220_v40 = vpop.f32.mrb[5].mxu0 }
 0x396   :  { %v240_v41 = vpop.f32.mrb[6].mxu0 }
 0x397   :  { %v244_v42 = vrot.slane %v238_v39, 6  ;;  %v1221_v43 = vpop.f32.mrb[7].mxu0 }
 0x399   :  { %253 = vrot.lane.b32.xlu0 %v244_v42, %s1370_s2  ;;  %v246_v44 = vadd.f32 %v244_v42, %v1481_v20 }
 0x39b   :  { %v1136_v45 = vmul.f32 -1.442695, %v246_v44 }
 0x39d   :  { %1313 = vpow2.f32 %v1136_v45 }
 0x3a7   :  { %v1314_v46 = vpop.eup %1313 }
 0x3a8   :  { %v250_v47 = vadd.f32 1.0, %v1314_v46 }
 0x3aa   :  { %1315 = vrcp.f32 %v250_v47 }
 0x3b4   :  { %v1316_v48 = vpop.eup %1315 }
 0x3b5   :  { %v263_v54 = vsub.f32 1.0, %v1316_v48  ;;  %v271_v57 = vmul.f32 %v1316_v48, %v269_v55 }
 0x40b   :  { %v254_v49 = vpop.permute.xlu0 %253 }
 0x40c   :  { %v256_v50 = vmul.f32 %v1316_v48, %v254_v49 }
 0x40e   :  { %258 = vrot.lane.b32.xlu1 %v256_v50, %s1370_s2 }
 0x480   :  { %v259_v51 = vpop.permute.xlu1 %258 }
 0x481   :  { %v261_v52 = vadd.f32 %v259_v51, %v1481_v20 }
 0x483   :  { %1317 = vtanh.f32 %v261_v52 }
 0x48d   :  { %v1318_v53 = vpop.eup %1317 }
 0x48e   :  { %265 = vrot.lane.b32.xlu0 %v1318_v53, %s1371_s3 }
 0x500   :  { %v266_v56 = vpop.permute.xlu0 %265 }
 0x501   :  { %v268_v58 = vmul.f32 %v266_v56, %v263_v54 }
 0x503   :  { %v1506_v59 = vadd.f32 %v271_v57, %v268_v58 }
 0x505   :  { %v279_v60 = vpack.c.bf16 %v1506_v59, %v1506_v59  ;;  %v353_v26 = vrot.slane %v1506_v59, 6 }
 0x507   :  { %v281_v61 = vrot.slane %v279_v60, 1 }
 0x509   :  { %282 = vrot.lane.b32.xlu1 %v281_v61, %s1371_s3 }
 0x57b   :  { %v283_v62 = vpop.permute.xlu1 %282 }
 0x57c   :  { %1227 = vmatmul.mubr.msk.bf16.vlgmr.msra.gmra.mrb[4].mxu1 %vm58_vm1, %v283_v62 }
 0x57d   :  { %1239 = vmatpush3.bf16.msra.mxu1 %v1422_v2  ;;  %1242 = vmatprep.mubr.msk.bf16.mxu1 %vm1368_vm0, %v1367_v0 }
 0x57e   :  { %1240 = vmatprep.subr.bf16.mxu1 %v1367_v0 }
 0x581   :  { %1241 = vmatpush3.bf16.msra.mxu1 %v1439_v4 }
 0x582   :  { %1254 = vmatprep.subr.bf16.mxu1 %v1367_v0 }
 0x64f   :  { %v321_v63 = vpop.f32.mrb[4].mxu1 }
 0x650   :  { %v322_v5 = vadd.f32 %v1469_v9, %v321_v63  ;;  %v1228_v6 = vpop.f32.mrb[5].mxu1 }
 0x651   :  { %v324_v7 = vpop.f32.mrb[6].mxu1  ;;  %v1560_v6 = vadd.f32 %v1478_v19, %v1472_v15 }
 0x652   :  { %v328_v10 = vrot.slane %v322_v5, 4  ;;  %v1229_v11 = vpop.f32.mrb[7].mxu1 }
 0x654   :  { %337 = vrot.lane.b32.xlu0 %v328_v10, %s1370_s2  ;;  %v330_v12 = vadd.f32 %v328_v10, %v1481_v20 }
 0x656   :  { %v1138_v13 = vmul.f32 -1.442695, %v330_v12 }
 0x658   :  { %1319 = vpow2.f32 %v1138_v13 }
 0x662   :  { %v1320_v14 = vpop.eup %1319 }
 0x663   :  { %v334_v16 = vadd.f32 1.0, %v1320_v14 }
 0x665   :  { %1321 = vrcp.f32 %v334_v16 }
 0x66f   :  { %v1322_v17 = vpop.eup %1321 }
 0x670   :  { %v347_v25 = vsub.f32 1.0, %v1322_v17  ;;  %v355_v28 = vmul.f32 %v1322_v17, %v353_v26 }
 0x6c6   :  { %v338_v18 = vpop.permute.xlu0 %337 }
 0x6c7   :  { %v340_v21 = vmul.f32 %v1322_v17, %v338_v18 }
 0x6c9   :  { %342 = vrot.lane.b32.xlu1 %v340_v21, %s1370_s2 }
 0x73b   :  { %v343_v22 = vpop.permute.xlu1 %342 }
 0x73c   :  { %v345_v23 = vadd.f32 %v343_v22, %v1481_v20 }
 0x73e   :  { %1323 = vtanh.f32 %v345_v23 }
 0x748   :  { %v1324_v24 = vpop.eup %1323 }
 0x749   :  { %349 = vrot.lane.b32.xlu0 %v1324_v24, %s1371_s3 }
 0x7bb   :  { %v350_v27 = vpop.permute.xlu0 %349 }
 0x7bc   :  { %v352_v29 = vmul.f32 %v350_v27, %v347_v25 }
 0x7be   :  { %v1525_v30 = vadd.f32 %v355_v28, %v352_v29 }
 0x7c0   :  { %v363_v31 = vpack.c.bf16 %v1525_v30, %v1525_v30  ;;  %v437_v52 = vrot.slane %v1525_v30, 6 }
 0x7c2   :  { %v365_v32 = vrot.slane %v363_v31, 2 }
 0x7c4   :  { %366 = vrot.lane.b32.xlu1 %v365_v32, %s1371_s3 }
 0x836   :  { %v367_v33 = vpop.permute.xlu1 %366 }
 0x837   :  { %1235 = vmatmul.mubr.msk.bf16.vlgmr.msra.gmra.mrb[8].mxu0 %vm58_vm1, %v367_v33 }
 0x838   :  { %1247 = vmatpush3.bf16.msra.mxu0 %v1422_v2  ;;  %1250 = vmatprep.mubr.msk.bf16.mxu0 %vm1368_vm0, %v1367_v0 }
 0x839   :  { %1248 = vmatprep.subr.bf16.mxu0 %v1367_v0 }
 0x83c   :  { %1249 = vmatpush3.bf16.msra.mxu0 %v1439_v4 }
 0x83d   :  { %1262 = vmatprep.subr.bf16.mxu0 %v1367_v0 }
 0x90a   :  { %v405_v34 = vpop.f32.mrb[8].mxu0 }
 0x90b   :  { %v406_v36 = vadd.f32 %v1469_v9, %v405_v34  ;;  %v1236_v37 = vpop.f32.mrb[9].mxu0 }
 0x90c   :  { %v408_v38 = vpop.f32.mrb[10].mxu0 }
 0x90d   :  { %v412_v39 = vrot.slane %v406_v36, 2  ;;  %v1237_v40 = vpop.f32.mrb[11].mxu0 }
 0x90f   :  { %421 = vrot.lane.b32.xlu0 %v412_v39, %s1370_s2  ;;  %v414_v41 = vadd.f32 %v412_v39, %v1481_v20 }
 0x911   :  { %v1140_v42 = vmul.f32 -1.442695, %v414_v41 }
 0x913   :  { %1325 = vpow2.f32 %v1140_v42 }
 0x91d   :  { %v1326_v43 = vpop.eup %1325 }
 0x91e   :  { %v418_v44 = vadd.f32 1.0, %v1326_v43 }
 0x920   :  { %1327 = vrcp.f32 %v418_v44 }
 0x92a   :  { %v1328_v45 = vpop.eup %1327 }
 0x92b   :  { %v431_v51 = vsub.f32 1.0, %v1328_v45  ;;  %v439_v54 = vmul.f32 %v1328_v45, %v437_v52 }
 0x981   :  { %v422_v46 = vpop.permute.xlu0 %421 }
 0x982   :  { %v424_v47 = vmul.f32 %v1328_v45, %v422_v46 }
 0x984   :  { %426 = vrot.lane.b32.xlu1 %v424_v47, %s1370_s2 }
 0x9f6   :  { %v427_v48 = vpop.permute.xlu1 %426 }
 0x9f7   :  { %v429_v49 = vadd.f32 %v427_v48, %v1481_v20 }
 0x9f9   :  { %1329 = vtanh.f32 %v429_v49 }
 0xa03   :  { %v1330_v50 = vpop.eup %1329 }
 0xa04   :  { %433 = vrot.lane.b32.xlu0 %v1330_v50, %s1371_s3 }
 0xa76   :  { %v434_v53 = vpop.permute.xlu0 %433 }
 0xa77   :  { %v436_v55 = vmul.f32 %v434_v53, %v431_v51 }
 0xa79   :  { %v1544_v56 = vadd.f32 %v439_v54, %v436_v55 }
 0xa7b   :  { %v447_v57 = vpack.c.bf16 %v1544_v56, %v1544_v56  ;;  %v519_v22 = vrot.slane %v1544_v56, 6 }
 0xa7d   :  { %v449_v58 = vrot.slane %v447_v57, 3 }
 0xa7f   :  { %450 = vrot.lane.b32.xlu1 %v449_v58, %s1371_s3 }
 0xaf1   :  { %v451_v60 = vpop.permute.xlu1 %450 }
 0xaf2   :  { %1243 = vmatmul.mubr.msk.bf16.vlgmr.msra.gmra.mrb[8].mxu1 %vm58_vm1, %v451_v60 }
 0xaf3   :  { %1255 = vmatpush3.bf16.msra.mxu1 %v1422_v2  ;;  %1258 = vmatprep.mubr.msk.bf16.mxu1 %vm1368_vm0, %v1367_v0 }
 0xaf4   :  { %1256 = vmatprep.subr.bf16.mxu1 %v1367_v0 }
 0xaf7   :  { %1257 = vmatpush3.bf16.msra.mxu1 %v1439_v4 }
 0xaf8   :  { %1270 = vmatprep.subr.bf16.mxu1 %v1367_v0 }
 0xbc5   :  { %v489_v20 = vpop.f32.mrb[8].mxu1 }
 0xbc6   :  { %v490_v61 = vadd.f32 %v1469_v9, %v489_v20  ;;  %v1244_v62 = vpop.f32.mrb[9].mxu1 }
 0xbc7   :  { %v492_v63 = vpop.f32.mrb[10].mxu1 }
 0xbc8   :  { %503 = vrot.lane.b32.xlu0 %v490_v61, %s1370_s2  ;;  %v1245_v5 = vpop.f32.mrb[11].mxu1  ;;  %v495_v7 = vadd.f32 %v490_v61, %v1560_v6 }
 0xbca   :  { %v1142_v10 = vmul.f32 -1.442695, %v495_v7 }
 0xbcc   :  { %1331 = vpow2.f32 %v1142_v10 }
 0xbd6   :  { %v1332_v11 = vpop.eup %1331 }
 0xbd7   :  { %v499_v12 = vadd.f32 1.0, %v1332_v11 }
 0xbd9   :  { %1333 = vrcp.f32 %v499_v12 }
 0xbe3   :  { %v1334_v13 = vpop.eup %1333 }
 0xbe4   :  { %v513_v15 = vsub.f32 1.0, %v1334_v13  ;;  %v521_v24 = vmul.f32 %v1334_v13, %v519_v22 }
 0xc3a   :  { %v504_v14 = vpop.permute.xlu0 %503 }
 0xc3b   :  { %v506_v16 = vmul.f32 %v1334_v13, %v504_v14 }
 0xc3d   :  { %508 = vrot.lane.b32.xlu1 %v506_v16, %s1370_s2 }
 0xcaf   :  { %v509_v17 = vpop.permute.xlu1 %508 }
 0xcb0   :  { %v511_v18 = vadd.f32 %v509_v17, %v1560_v6 }
 0xcb2   :  { %1335 = vtanh.f32 %v511_v18 }
 0xcbc   :  { %v1336_v21 = vpop.eup %1335 }
 0xcbd   :  { %515 = vrot.lane.b32.xlu0 %v1336_v21, %s1371_s3 }
 0xd2f   :  { %v516_v23 = vpop.permute.xlu0 %515 }
 0xd30   :  { %v518_v25 = vmul.f32 %v516_v23, %v513_v15 }
 0xd32   :  { %v1567_v26 = vadd.f32 %v521_v24, %v518_v25 }
 0xd34   :  { %v528_v27 = vpack.c.bf16 %v1567_v26, %v1567_v26  ;;  %v601_v46 = vrot.slane %v1567_v26, 6 }
 0xd36   :  { %530 = vrot.lane.b32.xlu1 %v528_v27, %s1371_s3 }
 0xda8   :  { %v531_v28 = vpop.permute.xlu1 %530 }
 0xda9   :  { %1251 = vmatmul.mubr.msk.bf16.vlgmr.msra.gmra.mrb[12].mxu0 %vm58_vm1, %v531_v28 }
 0xdaa   :  { %1263 = vmatpush3.bf16.msra.mxu0 %v1422_v2  ;;  %1266 = vmatprep.mubr.msk.bf16.mxu0 %vm1368_vm0, %v1367_v0 }
 0xdab   :  { %1264 = vmatprep.subr.bf16.mxu0 %v1367_v0 }
 0xdae   :  { %1265 = vmatpush3.bf16.msra.mxu0 %v1439_v4 }
 0xdaf   :  { %1278 = vmatprep.subr.bf16.mxu0 %v1367_v0 }
 0xe7c   :  { %v569_v29 = vpop.f32.mrb[12].mxu0 }
 0xe7d   :  { %v570_v31 = vadd.f32 %v1469_v9, %v569_v29  ;;  %v1252_v32 = vpop.f32.mrb[13].mxu0 }
 0xe7e   :  { %v572_v33 = vpop.f32.mrb[14].mxu0 }
 0xe7f   :  { %v576_v34 = vrot.slane %v570_v31, 6  ;;  %v1253_v36 = vpop.f32.mrb[15].mxu0 }
 0xe81   :  { %585 = vrot.lane.b32.xlu0 %v576_v34, %s1370_s2  ;;  %v578_v2 = vadd.f32 %v576_v34, %v1560_v6 }
 0xe83   :  { %v1144_v37 = vmul.f32 -1.442695, %v578_v2 }
 0xe85   :  { %1337 = vpow2.f32 %v1144_v37 }
 0xe8f   :  { %v1338_v38 = vpop.eup %1337 }
 0xe90   :  { %v582_v39 = vadd.f32 1.0, %v1338_v38 }
 0xe92   :  { %1339 = vrcp.f32 %v582_v39 }
 0xe9c   :  { %v1340_v40 = vpop.eup %1339 }
 0xe9d   :  { %v595_v45 = vsub.f32 1.0, %v1340_v40  ;;  %v603_v48 = vmul.f32 %v1340_v40, %v601_v46 }
 0xef3   :  { %v586_v4 = vpop.permute.xlu0 %585 }
 0xef4   :  { %v588_v41 = vmul.f32 %v1340_v40, %v586_v4 }
 0xef6   :  { %590 = vrot.lane.b32.xlu1 %v588_v41, %s1370_s2 }
 0xf68   :  { %v591_v42 = vpop.permute.xlu1 %590 }
 0xf69   :  { %v593_v43 = vadd.f32 %v591_v42, %v1560_v6 }
 0xf6b   :  { %1341 = vtanh.f32 %v593_v43 }
 0xf75   :  { %v1342_v44 = vpop.eup %1341 }
 0xf76   :  { %597 = vrot.lane.b32.xlu0 %v1342_v44, %s1371_s3 }
 0xfe8   :  { %v598_v47 = vpop.permute.xlu0 %597 }
 0xfe9   :  { %v600_v49 = vmul.f32 %v598_v47, %v595_v45 }
 0xfeb   :  { %v1586_v50 = vadd.f32 %v603_v48, %v600_v49 }
 0xfed   :  { %v610_v51 = vpack.c.bf16 %v1586_v50, %v1586_v50  ;;  %v684_v17 = vrot.slane %v1586_v50, 6 }
 0xfef   :  { %v612_v52 = vrot.slane %v610_v51, 1 }
 0xff1   :  { %613 = vrot.lane.b32.xlu1 %v612_v52, %s1371_s3 }
0x1063   :  { %v614_v53 = vpop.permute.xlu1 %613 }
0x1064   :  { %1259 = vmatmul.mubr.msk.bf16.vlgmr.msra.gmra.mrb[12].mxu1 %vm58_vm1, %v614_v53 }
0x1065   :  { %1271 = vmatpush3.bf16.msra.mxu1 %v1417_v1  ;;  %1274 = vmatprep.mubr.msk.bf16.mxu1 %vm1368_vm0, %v1367_v0 }
0x1066   :  { %1272 = vmatprep.subr.bf16.mxu1 %v1367_v0 }
0x1069   :  { %1273 = vmatpush3.bf16.msra.mxu1 %v1432_v3 }
0x1137   :  { %v652_v54 = vpop.f32.mrb[12].mxu1 }
0x1138   :  { %v653_v55 = vadd.f32 %v1469_v9, %v652_v54  ;;  %v1260_v57 = vpop.f32.mrb[13].mxu1 }
0x1139   :  { %v655_v58 = vpop.f32.mrb[14].mxu1 }
0x113a   :  { %v659_v60 = vrot.slane %v653_v55, 4  ;;  %v1261_v20 = vpop.f32.mrb[15].mxu1 }
0x113c   :  { %668 = vrot.lane.b32.xlu0 %v659_v60, %s1370_s2  ;;  %v661_v61 = vadd.f32 %v659_v60, %v1560_v6 }
0x113e   :  { %v1146_v62 = vmul.f32 -1.442695, %v661_v61 }
0x1140   :  { %1343 = vpow2.f32 %v1146_v62 }
0x114a   :  { %v1344_v63 = vpop.eup %1343 }
0x114b   :  { %v665_v5 = vadd.f32 1.0, %v1344_v63 }
0x114d   :  { %1345 = vrcp.f32 %v665_v5 }
0x1157   :  { %v1346_v7 = vpop.eup %1345 }
0x1158   :  { %v678_v16 = vsub.f32 1.0, %v1346_v7  ;;  %v686_v21 = vmul.f32 %v1346_v7, %v684_v17 }
0x11ae   :  { %v669_v10 = vpop.permute.xlu0 %668 }
0x11af   :  { %v671_v11 = vmul.f32 %v1346_v7, %v669_v10 }
0x11b1   :  { %673 = vrot.lane.b32.xlu1 %v671_v11, %s1370_s2 }
0x1223   :  { %v674_v12 = vpop.permute.xlu1 %673 }
0x1224   :  { %v676_v13 = vadd.f32 %v674_v12, %v1560_v6 }
0x1226   :  { %1347 = vtanh.f32 %v676_v13 }
0x1230   :  { %v1348_v14 = vpop.eup %1347 }
0x1231   :  { %680 = vrot.lane.b32.xlu0 %v1348_v14, %s1371_s3 }
0x12a3   :  { %v681_v18 = vpop.permute.xlu0 %680 }
0x12a4   :  { %v683_v15 = vmul.f32 %v681_v18, %v678_v16 }
0x12a6   :  { %v1604_v22 = vadd.f32 %v686_v21, %v683_v15 }
0x12a8   :  { %v693_v23 = vpack.c.bf16 %v1604_v22, %v1604_v22  ;;  %v767_v41 = vrot.slane %v1604_v22, 6 }
0x12aa   :  { %v695_v24 = vrot.slane %v693_v23, 2 }
0x12ac   :  { %696 = vrot.lane.b32.xlu1 %v695_v24, %s1371_s3 }
0x131e   :  { %v697_v25 = vpop.permute.xlu1 %696 }
0x131f   :  { %1267 = vmatmul.mubr.msk.bf16.vlgmr.msra.gmra.mrb[16].mxu0 %vm58_vm1, %v697_v25 }
0x1320   :  { %1279 = vmatpush3.bf16.msra.mxu0 %v1417_v1  ;;  %1282 = vmatprep.mubr.msk.bf16.mxu0 %vm1368_vm0, %v1367_v0 }
0x1321   :  { %1280 = vmatprep.subr.bf16.mxu0 %v1367_v0 }
0x1324   :  { %1281 = vmatpush3.bf16.msra.mxu0 %v1432_v3 }
0x13f2   :  { %v735_v27 = vpop.f32.mrb[16].mxu0 }
0x13f3   :  { %v736_v28 = vadd.f32 %v1469_v9, %v735_v27  ;;  %v1268_v29 = vpop.f32.mrb[17].mxu0 }
0x13f4   :  { %v738_v31 = vpop.f32.mrb[18].mxu0 }
0x13f5   :  { %v742_v32 = vrot.slane %v736_v28, 2  ;;  %v1269_v33 = vpop.f32.mrb[19].mxu0 }
0x13f7   :  { %751 = vrot.lane.b32.xlu0 %v742_v32, %s1370_s2  ;;  %v744_v34 = vadd.f32 %v742_v32, %v1560_v6 }
0x13f9   :  { %v1148_v36 = vmul.f32 -1.442695, %v744_v34  ;;  %v1297_v34 = vld [vmem:[%s1738_s5 + $0x4] ss:$16 sps:$4 sm:$0xff]  }
0x13fa   :  { %1009 = vmatprep.subr.bf16.mxu1 %v1297_v34 }
0x13fb   :  { %1349 = vpow2.f32 %v1148_v36  ;;  %v1298_v36 = vld [vmem:[%s1738_s5 + $0x8] ss:$16 sps:$4 sm:$0xff]  }
0x1405   :  { %v1350_v1 = vpop.eup %1349 }
0x1406   :  { %v748_v2 = vadd.f32 1.0, %v1350_v1  ;;  %v1300_v1 = vld [vmem:[%s1738_s5 + $0xc] ss:$16 sps:$4 sm:$0xff]  }
0x1407   :  { %1060 = vmatprep.subr.bf16.mxu0 %v1300_v1 }
0x1408   :  { %1351 = vrcp.f32 %v748_v2 }
0x1412   :  { %v1352_v37 = vpop.eup %1351 }
0x1413   :  { %v761_v4 = vsub.f32 1.0, %v1352_v37  ;;  %v769_v43 = vmul.f32 %v1352_v37, %v767_v41 }
0x1469   :  { %v752_v0 = vpop.permute.xlu0 %751 }
0x146a   :  { %v754_v38 = vmul.f32 %v1352_v37, %v752_v0  ;;  %v1303_v37 = vld [vmem:[%s1738_s5 + $0x24] ss:$16 sps:$4 sm:$0xff]   ;;  %v1304_v0 = vld [vmem:[%s1738_s5 + $0x28] ss:$16 sps:$4 sm:$0xff]  }
0x146c   :  { %756 = vrot.lane.b32.xlu1 %v754_v38, %s1370_s2  ;;  %v1306_v38 = vld [vmem:[%s1738_s5 + $0x2c] ss:$16 sps:$4 sm:$0xff]  }
0x14de   :  { %v757_v3 = vpop.permute.xlu1 %756 }
0x14df   :  { %v759_v39 = vadd.f32 %v757_v3, %v1560_v6 }
0x14e1   :  { %1353 = vtanh.f32 %v759_v39 }
0x14eb   :  { %v1354_v40 = vpop.eup %1353 }
0x14ec   :  { %763 = vrot.lane.b32.xlu0 %v1354_v40, %s1371_s3 }
0x14f0   :  { %831 = vrot.lane.b32.xlu0 %v1469_v9, %s1370_s2 }
0x155e   :  { %v764_v42 = vpop.permute.xlu0 %763 }
0x155f   :  { %v766_v44 = vmul.f32 %v764_v42, %v761_v4 }
0x1561   :  { %v1624_v45 = vadd.f32 %v769_v43, %v766_v44 }
0x1562   :  { %v832_v60 = vpop.permute.xlu0 %831 }
0x1563   :  { %v776_v46 = vpack.c.bf16 %v1624_v45, %v1624_v45 }
0x1565   :  { %v778_v47 = vrot.slane %v776_v46, 3 }
0x1567   :  { %779 = vrot.lane.b32.xlu1 %v778_v47, %s1371_s3 }
0x15d9   :  { %v780_v6 = vpop.permute.xlu1 %779 }
0x15da   :  { %1275 = vmatmul.mubr.msk.bf16.vlgmr.msra.gmra.mrb[16].mxu1 %vm58_vm1, %v780_v6 }
0x15db   :  { %1041 = vmatprep.mubr.bf16.mxu1 %v1369_v8 }
0x16ad   :  { %v818_v48 = vpop.f32.mrb[16].mxu1 }
0x16ae   :  { %v819_v49 = vadd.f32 %v1478_v19, %v818_v48  ;;  %v1276_v51 = vpop.f32.mrb[17].mxu1 }
0x16af   :  { %v821_v52 = vpop.f32.mrb[18].mxu1 }
0x16b0   :  { %v824_v53 = vadd.f32 %v1469_v9, %v819_v49  ;;  %v1277_v54 = vpop.f32.mrb[19].mxu1 }
0x16b1   :  { %v941_v54 = vld [vmem:[%s1739_s6] sm:$0xf] }
0x16b2   :  { %v1150_v55 = vmul.f32 -1.442695, %v824_v53 }
0x16b4   :  { %1355 = vpow2.f32 %v1150_v55 }
0x16be   :  { %v1356_v57 = vpop.eup %1355 }
0x16bf   :  { %v828_v58 = vadd.f32 1.0, %v1356_v57 }
0x16c1   :  { %1357 = vrcp.f32 %v828_v58 }
0x16cb   :  { %v1358_v20 = vpop.eup %1357 }
0x16cc   :  { %v834_v61 = vmul.f32 %v1358_v20, %v832_v60  ;;  %v841_v7 = vsub.f32 1.0, %v1358_v20  ;;  %v847_v11 = vmul.f32 0.0, %v1358_v20 }
0x16ce   :  { %836 = vrot.lane.b32.xlu1 %v834_v61, %s1370_s2 }
0x1740   :  { %v837_v62 = vpop.permute.xlu1 %836 }
0x1741   :  { %v839_v63 = vadd.f32 %v837_v62, %v819_v49  ;;  %v943_v49 = vlaneseq }
0x1743   :  { %1359 = vtanh.f32 %v839_v63  ;;  %v944_v51 = vshrl.u32 %v943_v49, 7 }
0x1745   :  { %v945_v52 = vsub.s32 0, %v944_v51  ;;  %v953_v53 = vsub.s32 2, %v944_v51  ;;  %v949_v55 = vsub.s32 1, %v944_v51  ;;  %v957_v57 = vsub.s32 3, %v944_v51 }
0x1747   :  { %v954_v58 = vrot.slane %v941_v54, %v953_v53  ;;  %v958_v20 = vrot.slane %v941_v54, %v957_v57 }
0x174d   :  { %v1360_v5 = vpop.eup %1359 }
0x174e   :  { %843 = vrot.lane.b32.xlu0 %v1360_v5, %s1371_s3 }
0x17c0   :  { %v844_v10 = vpop.permute.xlu0 %843 }
0x17c1   :  { %v846_v12 = vmul.f32 %v844_v10, %v841_v7 }
0x17c3   :  { %v848_v13 = vadd.f32 %v847_v11, %v846_v12 }
0x17c5   :  { %v854_v14 = vpack.c.bf16 %v848_v13, %v848_v13 }
0x17c7   :  { %856 = vrot.lane.b32.xlu1 %v854_v14, %s1371_s3 }
0x1839   :  { %v857_v16 = vpop.permute.xlu1 %856 }
0x183a   :  { %1283 = vmatmul.mubr.msk.bf16.vlgmr.msra.gmra.mrb[20].mxu0 %vm58_vm1, %v857_v16 }
0x183b   :  { %1092 = vmatprep.mubr.bf16.mxu0 %v1369_v8  ;;  %1061 = vmatpush1.bf16.msra.mxu0 %v1298_v36 }
0x183c   :  { %1062 = vmatprep.subr.bf16.mxu0 %v1306_v38 }
0x183f   :  { %1063 = vmatpush1.bf16.msra.mxu0 %v1304_v0 }
0x190d   :  { %v895_v17 = vpop.f32.mrb[20].mxu0 }
0x190e   :  { %v896_v18 = vadd.f32 %v1478_v19, %v895_v17  ;;  %v1284_v21 = vpop.f32.mrb[21].mxu0 }
0x190f   :  { %v898_v15 = vpop.f32.mrb[22].mxu0 }
0x1910   :  { %v901_v23 = vadd.f32 %v1469_v9, %v896_v18  ;;  %v1285_v24 = vpop.f32.mrb[23].mxu0 }
0x1912   :  { %v1152_v25 = vmul.f32 -1.442695, %v901_v23 }
0x1914   :  { %1361 = vpow2.f32 %v1152_v25 }
0x191e   :  { %v1362_v27 = vpop.eup %1361 }
0x191f   :  { %v905_v28 = vadd.f32 1.0, %v1362_v27 }
0x1921   :  { %1363 = vrcp.f32 %v905_v28 }
0x192b   :  { %v1364_v29 = vpop.eup %1363 }
0x192c   :  { %v908_v31 = vmul.f32 %v1364_v29, %v832_v60  ;;  %v921_v39 = vmul.f32 0.0, %v1364_v29  ;;  %v950_v60 = vrot.slane %v941_v54, %v949_v55 }
0x192e   :  { %910 = vrot.lane.b32.xlu0 %v908_v31, %s1370_s2 }
0x1932   :  { %191 = vrot.lane.b32.xlu0 %v1487_v35, %s1371_s3 }
0x1936   :  { %358 = vrot.lane.b32.xlu0 %v1525_v30, %s1371_s3 }
0x193a   :  { %524 = vrot.lane.b32.xlu0 %v1567_v26, %s1371_s3 }
0x193e   :  { %689 = vrot.lane.b32.xlu0 %v1604_v22, %s1371_s3  ;;  %v1295_v22 = vld [vmem:[%s1738_s5] ss:$16 sps:$4 sm:$0xff]  }
0x193f   :  { %1010 = vmatpush1.bf16.msra.mxu1 %v1295_v22 }
0x1940   :  { %1011 = vmatprep.subr.bf16.mxu1 %v1303_v37 }
0x1942   :  { %850 = vrot.lane.b32.xlu0 %v848_v13, %s1371_s3 }
0x19a0   :  { %v911_v9 = vpop.permute.xlu0 %910 }
0x19a1   :  { %v913_v19 = vadd.f32 %v911_v9, %v896_v18 }
0x19a3   :  { %1365 = vtanh.f32 %v913_v19 }
0x19a4   :  { %v192_v32 = vpop.permute.xlu0 %191 }
0x19a5   :  { %195 = vst.msk [vmem:[#allocation2] sm:$0x3] %vm194_vm2, %v192_v32 }
0x19a8   :  { %v359_v35 = vpop.permute.xlu0 %358 }
0x19a9   :  { %362 = vst.msk [vmem:[#allocation2] sm:$0x30] %vm361_vm3, %v359_v35 }
0x19ac   :  { %v525_v33 = vpop.permute.xlu0 %524 }
0x19ad   :  { %v1366_v30 = vpop.eup %1365  ;;  %527 = vst.msk [vmem:[#allocation2 + $0x8] sm:$0x3] %vm194_vm2, %v525_v33 }
0x19ae   :  { %917 = vrot.lane.b32.xlu1 %v1366_v30, %s1371_s3 }
0x19b0   :  { %v690_v26 = vpop.permute.xlu0 %689 }
0x19b1   :  { %692 = vst.msk [vmem:[#allocation2 + $0x8] sm:$0x30] %vm361_vm3, %v690_v26 }
0x19b2   :  { %274 = vrot.lane.b32.xlu1 %v1506_v59, %s1371_s3  ;;  %v1301_v59 = vld [vmem:[%s1738_s5 + $0x20] ss:$16 sps:$4 sm:$0xff]  }
0x19b3   :  { %1012 = vmatpush1.bf16.msra.mxu1 %v1301_v59 }
0x19b4   :  { %v851_v2 = vpop.permute.xlu0 %850 }
0x19b5   :  { %853 = vst.msk [vmem:[#allocation2 + $0x10] sm:$0x3] %vm194_vm2, %v851_v2 }
0x19b6   :  { %442 = vrot.lane.b32.xlu1 %v1544_v56, %s1371_s3  ;;  %v915_v56 = vsub.f32 1.0, %v1364_v29 }
0x19ba   :  { %606 = vrot.lane.b32.xlu1 %v1586_v50, %s1371_s3 }
0x19be   :  { %772 = vrot.lane.b32.xlu1 %v1624_v45, %s1371_s3 }
0x1a20   :  { %v918_v3 = vpop.permute.xlu1 %917 }
0x1a21   :  { %v920_v40 = vmul.f32 %v918_v3, %v915_v56 }
0x1a23   :  { %v922_v4 = vadd.f32 %v921_v39, %v920_v40 }
0x1a24   :  { %v275_v41 = vpop.permute.xlu1 %274 }
0x1a25   :  { %278 = vst.msk [vmem:[#allocation2] sm:$0xc] %vm277_vm4, %v275_v41  ;;  %924 = vrot.lane.b32.xlu1 %v922_v4, %s1371_s3 }
0x1a28   :  { %v443_v42 = vpop.permute.xlu1 %442 }
0x1a29   :  { %446 = vst.msk [vmem:[#allocation2] sm:$0xc0] %vm445_vm5, %v443_v42 }
0x1a2c   :  { %v607_v43 = vpop.permute.xlu1 %606 }
0x1a2d   :  { %609 = vst.msk [vmem:[#allocation2 + $0x8] sm:$0xc] %vm277_vm4, %v607_v43 }
0x1a30   :  { %v773_v50 = vpop.permute.xlu1 %772  ;;  %v928_v44 = vld [vmem:[#allocation2] sm:$0xff] }
0x1a31   :  { %775 = vst.msk [vmem:[#allocation2 + $0x8] sm:$0xc0] %vm445_vm5, %v773_v50 }
0x1a38   :  { %v929_v46 = vld [vmem:[#allocation2 + $0x8] sm:$0xff] }
0x1a39   :  { %v931_v45 = vpack.c.bf16 %v929_v46, %v928_v44 }
0x1a3b   :  { %1161 = vmatmul.mubr.msk.bf16.vlgmr.msra.gmra.mrb[20].mxu1 %vm58_vm1, %v931_v45  ;;  %1163 = vmatmul.mubr.msk.bf16.vlgmr.msra.gmra.mrb[24].mxu0 %vm58_vm1, %v931_v45 }
0x1a3c   :  { %1051 = vmatprep.mubr.bf16.mxu1 %v1369_v8  ;;  %1102 = vmatprep.mubr.bf16.mxu0 %v1369_v8  ;;  %v946_v8 = vrot.slane %v941_v54, %v945_v52 }
0x1a97   :  { %v925_v47 = vpop.permute.xlu1 %924 }
0x1a98   :  { %927 = vst.msk [vmem:[#allocation2 + $0x12] sm:$0x3] %vm194_vm2, %v925_v47 }
0x1a9f   :  { %v930_v6 = vld [vmem:[#allocation2 + $0x10] sm:$0xf] }
0x1aa0   :  { %v932_v48 = vpack.c.bf16 %v930_v6, %v930_v6 }
0x1aa2   :  { %1162 = vmatmul.mubr.msk.bf16.gmra.mrb[24].mxu1 %vm58_vm1, %v932_v48  ;;  %1164 = vmatmul.mubr.msk.bf16.gmra.mrb[28].mxu0 %vm58_vm1, %v932_v48 }
0x1b0e   :  { %v1043_v61 = vpop.f32.mrb[20].mxu1  ;;  %v1094_v62 = vpop.f32.mrb[24].mxu0 }
0x1b0f   :  { %v1044_v63 = vadd.f32 %v1043_v61, %v946_v8  ;;  %v1095_v5 = vadd.f32 %v1094_v62, %v954_v58  ;;  %v1045_v7 = vpop.f32.mrb[21].mxu1  ;;  %v1096_v10 = vpop.f32.mrb[25].mxu0 }
0x1b10   :  { %v1046_v11 = vadd.f32 %v1045_v7, %v950_v60  ;;  %v1097_v12 = vadd.f32 %v1096_v10, %v958_v20  ;;  %v1047_v13 = vpop.f32.mrb[22].mxu1  ;;  %v1098_v14 = vpop.f32.mrb[26].mxu0 }
0x1b11   :  { %1111 = vst [vmem:[%s1740_s7] sm:$0xff] %v1044_v63  ;;  %1113 = vst [vmem:[%s1740_s7 + $0x10] sm:$0xff] %v1095_v5  ;;  %v1048_v16 = vadd.f32 %v1047_v13, %v946_v8  ;;  %v1099_v17 = vadd.f32 %v1098_v14, %v954_v58  ;;  %v1049_v18 = vpop.f32.mrb[23].mxu1  ;;  %v1100_v21 = vpop.f32.mrb[27].mxu0 }
0x1b12   :  { %1112 = vst [vmem:[%s1740_s7 + $0x8] sm:$0xff] %v1046_v11  ;;  %1114 = vst [vmem:[%s1740_s7 + $0x18] sm:$0xff] %v1097_v12  ;;  %v1050_v15 = vadd.f32 %v1049_v18, %v950_v60  ;;  %v1101_v23 = vadd.f32 %v1100_v21, %v958_v20 }
0x1b13   :  { %1115 = vst [vmem:[%s1740_s7 + $0x20] sm:$0xff] %v1048_v16  ;;  %1117 = vst [vmem:[%s1740_s7 + $0x30] sm:$0xff] %v1099_v17 }
0x1b14   :  { %1116 = vst [vmem:[%s1740_s7 + $0x28] sm:$0xff] %v1050_v15  ;;  %1118 = vst [vmem:[%s1740_s7 + $0x38] sm:$0xff] %v1101_v23 }
0x1b75   :  { %v1053_v24 = vpop.f32.mrb[24].mxu1  ;;  %v1104_v25 = vpop.f32.mrb[28].mxu0 }
0x1b76   :  { %v1054_v27 = vadd.f32 %v1053_v24, %v946_v8  ;;  %v1105_v28 = vadd.f32 %v1104_v25, %v954_v58  ;;  %v1055_v29 = vpop.f32.mrb[25].mxu1  ;;  %v1106_v31 = vpop.f32.mrb[29].mxu0 }
0x1b77   :  { %v1056_v9 = vadd.f32 %v1055_v29, %v950_v60  ;;  %v1107_v19 = vadd.f32 %v1106_v31, %v958_v20  ;;  %v1057_v32 = vpop.f32.mrb[26].mxu1  ;;  %v1108_v35 = vpop.f32.mrb[30].mxu0 }
0x1b78   :  { %1119 = vst [vmem:[%s1740_s7 + $0x40] sm:$0xf] %v1054_v27  ;;  %1121 = vst [vmem:[%s1740_s7 + $0x50] sm:$0xf] %v1105_v28  ;;  %v1058_v33 = vpop.f32.mrb[27].mxu1  ;;  %v1109_v30 = vpop.f32.mrb[31].mxu0 }
0x1b79   :  { %1120 = vst [vmem:[%s1740_s7 + $0x48] sm:$0xf] %v1056_v9  ;;  %1122 = vst [vmem:[%s1740_s7 + $0x58] sm:$0xf] %v1107_v19 }

// kernel: bev_gru_forward.2
= control target key start
LH: loop header
LB: loop body
LE: loop exit
PB: predicated region body
PF: predicated region fallthrough
CT: control target
= control target key end

     0   :  { %s7066_s24 = smov 0   ;;  %s9448_s0 = inlined_call_operand.vmem [shape: bf16[2,8,2668], index: 0, kind: input, shape index: {}]   ;;  %s9449_s1 = inlined_call_operand.vmem [shape: bf16[16,72], index: 1, kind: input, shape index: {}]   ;;  %s9450_s2 = inlined_call_operand.vmem [shape: f32[16,1], index: 2, kind: input, shape index: {}]   ;;  %s9451_s3 = inlined_call_operand.vmem [shape: bf16[32,144], index: 3, kind: input, shape index: {}]   ;;  %s9452_s4 = inlined_call_operand.vmem [shape: f32[32,1], index: 4, kind: input, shape index: {}]   ;;  %s9453_s5 = inlined_call_operand.vmem [shape: f32[1,2630], index: 5, kind: input, shape index: {}]   ;;  %s9454_s6 = inlined_call_operand.vmem [shape: bf16[2592,8], index: 6, kind: input, shape index: {}]   ;;  %s9455_s7 = inlined_call_operand.vmem [shape: f32[2,32,8], index: 7, kind: output, shape index: {}]  }
   0x1 LB: > { %s6161_s25 = sadd.s32 4294967295, %s7013_s24   ;;  %p6165_p0 = scmp.ge.s32.totalorder %s7013_s24, 1  ;;  %s7013_s24 = sphi %s7066_s24, %s17_s24  }
   0x2   : > { %p237_p1 = scmp.lt.s32.totalorder %s7013_s24, 3 }
   0x4   : > { %p238_p2 = pnand %p6165_p0, %p237_p1 }
   0x5   : > { %p269_p3 = scmp.lt.s32.totalorder (!%p238_p2), %s6161_s25, 1  ;;  %s7015_s30 = smov (!%p238_p2), 127   ;;  %v7023_v5 = vmov (!%p238_p2), 0   ;;  %vm358_vm0 = vcmask (!%p238_p2), 1043456   ;;  %vm360_vm1 = vcmask (!%p238_p2), 1039360   ;;  %vm458_vm2 = vcmask (!%p238_p2), 1031168  }
   0x6   : > { %241 = sbr.rel (%p238_p2) target bundleno = 1315 (0x523), region = 48  ;;  %s7016_s8 = smov (!%p238_p2), 126   ;;  %1783 = vmatprep.mubr.bf16.mxu0 (!%p238_p2), %v7023_v5  ;;  %1826 = vmatprep.mubr.bf16.mxu1 (!%p238_p2), %v7023_v5  ;;  %vm556_vm3 = vcmask (!%p238_p2), 900096   ;;  %vm654_vm4 = vcmask (!%p238_p2), 891904   ;;  %vm752_vm5 = vcmask (!%p238_p2), 883712   ;;  %vm850_vm6 = vcmask (!%p238_p2), 752640  }
   0x7   : > { %s7017_s9 = smov (!%p238_p2), 110   ;;  %s7018_s10 = smov (!%p238_p2), 109   ;;  %6821 = vset.pattern.permute.xlu0 (!%p238_p2), %v7023_v5  ;;  %6822 = vset.pattern.permute.xlu1 (!%p238_p2), %v7023_v5  ;;  %vm948_vm7 = vcmask (!%p238_p2), 744448   ;;  %vm301_vm8 = vcmask (!%p238_p2), 568320   ;;  %vm1046_vm9 = vcmask (!%p238_p2), 736256   ;;  %vm1683_vm10 = vcmask (!%p238_p2), 588800  }
   0x8   : > { %s7019_s11 = smov (!%p238_p2), 108   ;;  %s7020_s12 = smov (!%p238_p2), 92   ;;  %vm7025_vm11 = vmmov (!%p238_p2), 0   ;;  %vm3548_vm12 = vcmask (!%p238_p2), 130048   ;;  %vm2458_vm13 = vcmask (!%p238_p2), 261120   ;;  %vm6101_vm14 = vcmask (!%p238_p2), 64512  }
   0x9   : > { %s7021_s13 = smov (!%p238_p2), 91   ;;  %s7022_s14 = smov (!%p238_p2), 90  }
   0xd   : > { %s9457_s25 = smov (!%p269_p3, %s6161_s25), 1 }
   0xe   : > { %s6801_s26 = smul.u32 84, %s9457_s25 }
  0x10   : > { %s7080_s29 = scalar_lea.vmem %s9448_s0, %s6801_s26 }
  0x11   : > { %v305_v0 = vld [vmem:[%s7080_s29 + $0x10] sm:$0xff]  ;;  %v7084_v1 = vld [vmem:[%s7080_s29] sm:$0xff]  ;;  %v7087_v2 = vld [vmem:[%s7080_s29 + $0x8] sm:$0xff] }
  0x12   : > { %329 = vrot.lane.b32.xlu1 %v305_v0, %s7015_s30  ;;  %325 = vrot.lane.b32.xlu0 %v7084_v1, %s7015_s30  ;;  %v405_v3 = vld [vmem:[%s7080_s29 + $0x18] sm:$0xff]  ;;  %v307_v4 = vld [vmem:[%s7080_s29 + $0x20] sm:$0xff]  ;;  %293 = vst [vmem:[#allocation2 + $0x10] sm:$0xff] %v305_v0 }
  0x13   : > { %294 = vst [vmem:[#allocation2 + $0x18] sm:$0xff] %v405_v3  ;;  %295 = vst [vmem:[#allocation2 + $0x20] sm:$0xff] %v307_v4  ;;  %v407_v6 = vld [vmem:[%s7080_s29 + $0x28] sm:$0xff]  ;;  %v309_v7 = vld [vmem:[%s7080_s29 + $0x30] sm:$0xff] }
  0x14   : > { %v7158_v8 = vld [vmem:[%s7080_s29 + $0x28] sm:$0xff]  ;;  %v7171_v9 = vld [vmem:[%s7080_s29 + $0x38] sm:$0xff]  ;;  %v7176_v10 = vld [vmem:[%s7080_s29 + $0x40] sm:$0xff] }
  0x15   : > { %v7179_v11 = vld [vmem:[%s7080_s29 + $0x30] sm:$0xff]  ;;  %v7193_v19 = vld [vmem:[%s7080_s29 + $0x38] sm:$0xff] }
  0x16   : > { %424 = vrot.lane.b32.xlu1 %v7084_v1, %s7016_s8  ;;  %327 = vrot.lane.b32.xlu0 %v7087_v2, %s7015_s30 }
  0x1a   : > { %522 = vrot.lane.b32.xlu1 %v7084_v1, %s7017_s9  ;;  %426 = vrot.lane.b32.xlu0 %v7087_v2, %s7016_s8 }
  0x1e   : > { %428 = vrot.lane.b32.xlu1 %v305_v0, %s7016_s8  ;;  %524 = vrot.lane.b32.xlu0 %v7087_v2, %s7017_s9 }
  0x22   : > { %620 = vrot.lane.b32.xlu1 %v7084_v1, %s7018_s10  ;;  %526 = vrot.lane.b32.xlu0 %v305_v0, %s7017_s9 }
  0x26   : > { %718 = vrot.lane.b32.xlu1 %v7084_v1, %s7019_s11  ;;  %622 = vrot.lane.b32.xlu0 %v7087_v2, %s7018_s10 }
  0x2a   : > { %624 = vrot.lane.b32.xlu1 %v305_v0, %s7018_s10  ;;  %720 = vrot.lane.b32.xlu0 %v7087_v2, %s7019_s11 }
  0x2e   : > { %816 = vrot.lane.b32.xlu1 %v7084_v1, %s7020_s12  ;;  %722 = vrot.lane.b32.xlu0 %v305_v0, %s7019_s11 }
  0x32   : > { %914 = vrot.lane.b32.xlu1 %v7084_v1, %s7021_s13  ;;  %818 = vrot.lane.b32.xlu0 %v7087_v2, %s7020_s12 }
  0x36   : > { %820 = vrot.lane.b32.xlu1 %v305_v0, %s7020_s12  ;;  %916 = vrot.lane.b32.xlu0 %v7087_v2, %s7021_s13 }
  0x3a   : > { %1012 = vrot.lane.b32.xlu1 %v7084_v1, %s7022_s14  ;;  %918 = vrot.lane.b32.xlu0 %v305_v0, %s7021_s13 }
  0x3e   : > { %1016 = vrot.lane.b32.xlu1 %v305_v0, %s7022_s14  ;;  %1014 = vrot.lane.b32.xlu0 %v7087_v2, %s7022_s14 }
  0x42   : > { %430 = vrot.lane.b32.xlu1 %v405_v3, %s7016_s8  ;;  %331 = vrot.lane.b32.xlu0 %v405_v3, %s7015_s30 }
  0x46   : > { %333 = vrot.lane.b32.xlu1 %v307_v4, %s7015_s30  ;;  %528 = vrot.lane.b32.xlu0 %v405_v3, %s7017_s9 }
  0x4a   : > { %724 = vrot.lane.b32.xlu1 %v405_v3, %s7019_s11  ;;  %626 = vrot.lane.b32.xlu0 %v405_v3, %s7018_s10 }
  0x4e   : > { %530 = vrot.lane.b32.xlu1 %v307_v4, %s7017_s9  ;;  %432 = vrot.lane.b32.xlu0 %v307_v4, %s7016_s8 }
  0x52   : > { %920 = vrot.lane.b32.xlu1 %v405_v3, %s7021_s13  ;;  %822 = vrot.lane.b32.xlu0 %v405_v3, %s7020_s12 }
  0x56   : > { %726 = vrot.lane.b32.xlu1 %v307_v4, %s7019_s11  ;;  %628 = vrot.lane.b32.xlu0 %v307_v4, %s7018_s10 }
  0x5a   : > { %824 = vrot.lane.b32.xlu1 %v307_v4, %s7020_s12  ;;  %1018 = vrot.lane.b32.xlu0 %v405_v3, %s7022_s14 }
  0x5e   : > { %1020 = vrot.lane.b32.xlu1 %v307_v4, %s7022_s14  ;;  %922 = vrot.lane.b32.xlu0 %v307_v4, %s7021_s13 }
  0x62   : > { %434 = vrot.lane.b32.xlu1 %v407_v6, %s7016_s8  ;;  %335 = vrot.lane.b32.xlu0 %v407_v6, %s7015_s30 }
  0x66   : > { %337 = vrot.lane.b32.xlu1 %v309_v7, %s7015_s30  ;;  %532 = vrot.lane.b32.xlu0 %v407_v6, %s7017_s9 }
  0x6a   : > { %728 = vrot.lane.b32.xlu1 %v407_v6, %s7019_s11  ;;  %630 = vrot.lane.b32.xlu0 %v407_v6, %s7018_s10 }
  0x6e   : > { %534 = vrot.lane.b32.xlu1 %v309_v7, %s7017_s9  ;;  %436 = vrot.lane.b32.xlu0 %v309_v7, %s7016_s8 }
  0x72   : > { %924 = vrot.lane.b32.xlu1 %v407_v6, %s7021_s13  ;;  %826 = vrot.lane.b32.xlu0 %v407_v6, %s7020_s12 }
  0x76   : > { %632 = vrot.lane.b32.xlu0 %v309_v7, %s7018_s10  ;;  %730 = vrot.lane.b32.xlu1 %v309_v7, %s7019_s11 }
  0x7a   : > { %1022 = vrot.lane.b32.xlu0 %v407_v6, %s7022_s14  ;;  %828 = vrot.lane.b32.xlu1 %v309_v7, %s7020_s12 }
  0x7e   : > { %926 = vrot.lane.b32.xlu0 %v309_v7, %s7021_s13  ;;  %1024 = vrot.lane.b32.xlu1 %v309_v7, %s7022_s14 }
  0x82   : > { %339 = vrot.lane.b32.xlu0 %v7171_v9, %s7015_s30  ;;  %438 = vrot.lane.b32.xlu1 %v7171_v9, %s7016_s8 }
  0x84   : > { %v7185_v12 = vpop.permute.xlu1 %329  ;;  %v326_v13 = vpop.permute.xlu0 %325 }
  0x85   : > { %v349_v16 = vrot.slane %v7185_v12, 4  ;;  %v347_v17 = vrot.slane %v326_v13, 4 }
  0x86   : > { %536 = vrot.lane.b32.xlu0 %v7171_v9, %s7017_s9  ;;  %341 = vrot.lane.b32.xlu1 %v7176_v10, %s7015_s30 }
  0x88   : > { %v425_v14 = vpop.permute.xlu1 %424  ;;  %v328_v15 = vpop.permute.xlu0 %327 }
  0x89   : > { %v348_v18 = vrot.slane %v328_v15, 4  ;;  %v446_v26 = vrot.slane %v425_v14, 4 }
  0x8a   : > { %634 = vrot.lane.b32.xlu0 %v7171_v9, %s7018_s10  ;;  %732 = vrot.lane.b32.xlu1 %v7171_v9, %s7019_s11 }
  0x8b   : > { %v359_v20 = vsel %vm358_vm0, %v347_v17, %v348_v18  ;;  %v362_v21 = vsel %vm358_vm0, %v348_v18, %v349_v16 }
  0x8c   : > { %v361_v22 = vsel %vm360_vm1, %v326_v13, %v359_v20  ;;  %v363_v23 = vsel %vm360_vm1, %v328_v15, %v362_v21  ;;  %v523_v24 = vpop.permute.xlu1 %522  ;;  %v427_v25 = vpop.permute.xlu0 %426  ;;  %v313_v15 = vld [vmem:[%s7080_s29 + $0x50] sm:$0xf] }
  0x8d   : > { %v447_v27 = vrot.slane %v427_v25, 4  ;;  %v6171_v28 = vcombine.high %v7084_v1, %v361_v22  ;;  %v6173_v29 = vcombine.high %v7087_v2, %v363_v23  ;;  %v6170_v30 = vcombine.low %v7084_v1, %v361_v22  ;;  %v7257_v1 = vld [vmem:[%s7080_s29 + $0x48] sm:$0xff] }
  0x8e   : > { %440 = vrot.lane.b32.xlu0 %v7176_v10, %s7016_s8  ;;  %538 = vrot.lane.b32.xlu1 %v7176_v10, %s7017_s9  ;;  %v6172_v31 = vcombine.low %v7087_v2, %v363_v23  ;;  %v544_v36 = vrot.slane %v523_v24, 4 }
  0x8f   : > { %v457_v32 = vsel %vm358_vm0, %v446_v26, %v447_v27  ;;  %1751 = vmatprep.subr.bf16.mxu0 %v6171_v28  ;;  %1794 = vmatprep.subr.bf16.mxu1 %v6173_v29 }
  0x90   : > { %v459_v33 = vsel %vm458_vm2, %v425_v14, %v457_v32  ;;  %v7215_v34 = vpop.permute.xlu1 %428  ;;  %v525_v35 = vpop.permute.xlu0 %524  ;;  %1752 = vmatpush1.bf16.msra.mxu0 %v6170_v30  ;;  %1795 = vmatpush1.bf16.msra.mxu1 %v6172_v31  ;;  %v7285_v32 = vld [vmem:[%s7080_s29 + $0x48] sm:$0xff] }
  0x91   : > { %v448_v37 = vrot.slane %v7215_v34, 4  ;;  %v545_v38 = vrot.slane %v525_v35, 4 }
  0x92   : > { %830 = vrot.lane.b32.xlu0 %v7171_v9, %s7020_s12  ;;  %928 = vrot.lane.b32.xlu1 %v7171_v9, %s7021_s13 }
  0x93   : > { %v460_v39 = vsel %vm358_vm0, %v447_v27, %v448_v37  ;;  %v555_v40 = vsel %vm358_vm0, %v544_v36, %v545_v38  ;;  %v412_v36 = vld [vmem:[%s7080_s29 + $0x50] sm:$0xf] }
  0x94   : > { %v461_v41 = vsel %vm458_vm2, %v427_v25, %v460_v39  ;;  %v557_v42 = vsel %vm556_vm3, %v523_v24, %v555_v40  ;;  %v621_v43 = vpop.permute.xlu1 %620  ;;  %v7228_v44 = vpop.permute.xlu0 %526 }
  0x95   : > { %v546_v45 = vrot.slane %v7228_v44, 4  ;;  %v6192_v46 = vcombine.high %v459_v33, %v557_v42  ;;  %v6191_v47 = vcombine.low %v459_v33, %v557_v42  ;;  %v642_v52 = vrot.slane %v621_v43, 4 }
  0x96   : > { %636 = vrot.lane.b32.xlu0 %v7176_v10, %s7018_s10  ;;  %734 = vrot.lane.b32.xlu1 %v7176_v10, %s7019_s11 }
  0x97   : > { %v558_v48 = vsel %vm358_vm0, %v545_v38, %v546_v45  ;;  %1753 = vmatprep.subr.bf16.mxu0 %v6192_v46  ;;  %v510_v38 = vld [vmem:[%s7080_s29 + $0x50] sm:$0xf] }
  0x98   : > { %v559_v49 = vsel %vm556_vm3, %v525_v35, %v558_v48  ;;  %v719_v50 = vpop.permute.xlu1 %718  ;;  %v623_v51 = vpop.permute.xlu0 %622  ;;  %1754 = vmatpush1.bf16.msra.mxu0 %v6191_v47 }
  0x99   : > { %v643_v53 = vrot.slane %v623_v51, 4  ;;  %v6194_v54 = vcombine.high %v461_v41, %v559_v49  ;;  %v6193_v55 = vcombine.low %v461_v41, %v559_v49  ;;  %v740_v60 = vrot.slane %v719_v50, 4  ;;  %v290_v49 = vld [vmem:[%s7080_s29 + $0x50] sm:$0xf] }
  0x9a   : > { %1026 = vrot.lane.b32.xlu0 %v7171_v9, %s7022_s14  ;;  %832 = vrot.lane.b32.xlu1 %v7176_v10, %s7020_s12  ;;  %302 = vst.msk [vmem:[#allocation2 + $0x50] sm:$0xf] %vm301_vm8, %v290_v49 }
  0x9b   : > { %v653_v56 = vsel %vm358_vm0, %v642_v52, %v643_v53  ;;  %1796 = vmatprep.subr.bf16.mxu1 %v6194_v54 }
  0x9c   : > { %v655_v57 = vsel %vm654_vm4, %v621_v43, %v653_v56  ;;  %v7245_v58 = vpop.permute.xlu1 %624  ;;  %v721_v59 = vpop.permute.xlu0 %720  ;;  %1797 = vmatpush1.bf16.msra.mxu1 %v6193_v55 }
  0x9d   : > { %v644_v61 = vrot.slane %v7245_v58, 4  ;;  %v741_v62 = vrot.slane %v721_v59, 4 }
  0x9e   : > { %930 = vrot.lane.b32.xlu0 %v7176_v10, %s7021_s13  ;;  %1028 = vrot.lane.b32.xlu1 %v7176_v10, %s7022_s14  ;;  %v7265_v10 = vld [vmem:[%s7080_s29 + $0x40] sm:$0xff] }
  0x9f   : > { %v656_v63 = vsel %vm358_vm0, %v643_v53, %v644_v61  ;;  %v751_v0 = vsel %vm358_vm0, %v740_v60, %v741_v62 }
  0xa0   : > { %v657_v2 = vsel %vm654_vm4, %v623_v51, %v656_v63  ;;  %v753_v3 = vsel %vm752_vm5, %v719_v50, %v751_v0  ;;  %v817_v4 = vpop.permute.xlu1 %816  ;;  %v7261_v6 = vpop.permute.xlu0 %722  ;;  %v706_v63 = vld [vmem:[%s7080_s29 + $0x50] sm:$0xf] }
  0xa1   : > { %v742_v7 = vrot.slane %v7261_v6, 4  ;;  %v6213_v9 = vcombine.high %v655_v57, %v753_v3  ;;  %v6212_v13 = vcombine.low %v655_v57, %v753_v3  ;;  %v838_v21 = vrot.slane %v817_v4, 4 }
  0xa2   : > { %343 = vrot.lane.b32.xlu0 %v7257_v1, %s7015_s30  ;;  %442 = vrot.lane.b32.xlu1 %v7257_v1, %s7016_s8 }
  0xa3   : > { %v754_v14 = vsel %vm358_vm0, %v741_v62, %v742_v7  ;;  %1755 = vmatprep.subr.bf16.mxu0 %v6213_v9  ;;  %v608_v62 = vld [vmem:[%s7080_s29 + $0x50] sm:$0xf] }
  0xa4   : > { %v755_v17 = vsel %vm752_vm5, %v721_v59, %v754_v14  ;;  %v915_v18 = vpop.permute.xlu1 %914  ;;  %v819_v20 = vpop.permute.xlu0 %818  ;;  %1756 = vmatpush1.bf16.msra.mxu0 %v6212_v13 }
  0xa5   : > { %v839_v22 = vrot.slane %v819_v20, 4  ;;  %v6215_v23 = vcombine.high %v657_v2, %v755_v17  ;;  %v6214_v24 = vcombine.low %v657_v2, %v755_v17  ;;  %v936_v29 = vrot.slane %v915_v18, 4 }
  0xa6   : > { %540 = vrot.lane.b32.xlu0 %v7257_v1, %s7017_s9  ;;  %345 = vrot.lane.b32.xlu1 %v313_v15, %s7015_s30 }
  0xa7   : > { %v849_v25 = vsel %vm358_vm0, %v838_v21, %v839_v22  ;;  %1798 = vmatprep.subr.bf16.mxu1 %v6215_v23 }
  0xa8   : > { %v851_v26 = vsel %vm850_vm6, %v817_v4, %v849_v25  ;;  %v7281_v27 = vpop.permute.xlu1 %820  ;;  %v917_v28 = vpop.permute.xlu0 %916  ;;  %1799 = vmatpush1.bf16.msra.mxu1 %v6214_v24 }
  0xa9   : > { %v840_v30 = vrot.slane %v7281_v27, 4  ;;  %v937_v31 = vrot.slane %v917_v28, 4 }
  0xaa   : > { %638 = vrot.lane.b32.xlu0 %v7257_v1, %s7018_s10  ;;  %736 = vrot.lane.b32.xlu1 %v7257_v1, %s7019_s11 }
  0xab   : > { %v852_v33 = vsel %vm358_vm0, %v839_v22, %v840_v30  ;;  %v947_v35 = vsel %vm358_vm0, %v936_v29, %v937_v31  ;;  %v804_v22 = vld [vmem:[%s7080_s29 + $0x50] sm:$0xf] }
  0xac   : > { %v853_v39 = vsel %vm850_vm6, %v819_v20, %v852_v33  ;;  %v949_v40 = vsel %vm948_vm7, %v915_v18, %v947_v35  ;;  %v1013_v41 = vpop.permute.xlu1 %1012  ;;  %v7299_v42 = vpop.permute.xlu0 %918 }
  0xad   : > { %v938_v43 = vrot.slane %v7299_v42, 4  ;;  %v6234_v46 = vcombine.high %v851_v26, %v949_v40  ;;  %v6233_v47 = vcombine.low %v851_v26, %v949_v40  ;;  %v1034_v50 = vrot.slane %v1013_v41, 4 }
  0xae   : > { %444 = vrot.lane.b32.xlu0 %v412_v36, %s7016_s8  ;;  %542 = vrot.lane.b32.xlu1 %v510_v38, %s7017_s9  ;;  %v902_v38 = vld [vmem:[%s7080_s29 + $0x50] sm:$0xf] }
  0xaf   : > { %v950_v48 = vsel %vm358_vm0, %v937_v31, %v938_v43  ;;  %1757 = vmatprep.subr.bf16.mxu0 %v6234_v46 }
  0xb0   : > { %v951_v51 = vsel %vm948_vm7, %v917_v28, %v950_v48  ;;  %v7309_v52 = vpop.permute.xlu1 %1016  ;;  %v1015_v53 = vpop.permute.xlu0 %1014  ;;  %1758 = vmatpush1.bf16.msra.mxu0 %v6233_v47  ;;  %v7352_v28 = vld [vmem:[%s9449_s1] sm:$0xff]  }
  0xb1   : > { %v1036_v54 = vrot.slane %v7309_v52, 4  ;;  %v1035_v55 = vrot.slane %v1015_v53, 4  ;;  %v6236_v56 = vcombine.high %v853_v39, %v951_v51  ;;  %v6235_v57 = vcombine.low %v853_v39, %v951_v51  ;;  %v1000_v39 = vld [vmem:[%s7080_s29 + $0x50] sm:$0xf] }
  0xb2   : > { %834 = vrot.lane.b32.xlu0 %v7257_v1, %s7020_s12  ;;  %932 = vrot.lane.b32.xlu1 %v7257_v1, %s7021_s13 }
  0xb3   : > { %v1045_v59 = vsel %vm358_vm0, %v1034_v50, %v1035_v55  ;;  %v1048_v60 = vsel %vm358_vm0, %v1035_v55, %v1036_v54  ;;  %1800 = vmatprep.subr.bf16.mxu1 %v6236_v56  ;;  %v1189_v56 = vld [vmem:[%s9450_s2] sm:$0xff] }
  0xb4   : > { %v1047_v0 = vsel %vm1046_vm9, %v1013_v41, %v1045_v59  ;;  %v1049_v2 = vsel %vm1046_vm9, %v1015_v53, %v1048_v60  ;;  %v7325_v3 = vpop.permute.xlu1 %430  ;;  %v332_v4 = vpop.permute.xlu0 %331  ;;  %1801 = vmatpush1.bf16.msra.mxu1 %v6235_v57  ;;  %v1190_v57 = vld [vmem:[%s9450_s2 + $0x8] sm:$0xff] }
  0xb5   : > { %v449_v9 = vrot.slane %v7325_v3, 4  ;;  %v350_v13 = vrot.slane %v332_v4, 4  ;;  %v6255_v14 = vcombine.high %v1047_v0, %v1047_v0  ;;  %v6257_v15 = vcombine.high %v1049_v2, %v1049_v2 }
  0xb6   : > { %640 = vrot.lane.b32.xlu0 %v608_v62, %s7018_s10  ;;  %738 = vrot.lane.b32.xlu1 %v706_v63, %s7019_s11  ;;  %v6254_v17 = vcombine.low %v1047_v0, %v1047_v0  ;;  %v6256_v18 = vcombine.low %v1049_v2, %v1049_v2 }
  0xb7   : > { %v462_v20 = vsel %vm358_vm0, %v448_v37, %v449_v9  ;;  %v364_v21 = vsel %vm358_vm0, %v349_v16, %v350_v13  ;;  %6275 = vmatprep.subr.msk.bf16.mxu0 %vm358_vm0, %v6255_v14  ;;  %6277 = vmatprep.subr.msk.bf16.mxu1 %vm358_vm0, %v6257_v15 }
  0xb8   : > { %v463_v23 = vsel %vm458_vm2, %v7215_v34, %v462_v20  ;;  %v365_v24 = vsel %vm360_vm1, %v7185_v12, %v364_v21  ;;  %v7345_v25 = vpop.permute.xlu1 %333  ;;  %v529_v37 = vpop.permute.xlu0 %528  ;;  %v1689_v26 = vsel %vm358_vm0, %v6254_v17, 0  ;;  %v1695_v16 = vsel %vm358_vm0, %v6256_v18, 0  ;;  %v6997_v12 = vld [vmem:[#allocation2 + $0x10] sm:$0xff] }
  0xb9   : > { %v351_v29 = vrot.slane %v7345_v25, 4  ;;  %v547_v34 = vrot.slane %v529_v37, 4  ;;  %1760 = vmatpush1.bf16.msra.mxu0 %v1689_v26  ;;  %1803 = vmatpush1.bf16.msra.mxu1 %v1695_v16  ;;  %v6174_v31 = vcombine.low %v6997_v12, %v365_v24  ;;  %v6175_v33 = vcombine.high %v6997_v12, %v365_v24 }
  0xba   : > { %1030 = vrot.lane.b32.xlu0 %v7257_v1, %s7022_s14  ;;  %836 = vrot.lane.b32.xlu1 %v804_v22, %s7020_s12 }
  0xbb   : > { %v366_v35 = vsel %vm358_vm0, %v350_v13, %v351_v29  ;;  %v560_v36 = vsel %vm358_vm0, %v546_v45, %v547_v34  ;;  %1837 = vmatprep.subr.bf16.mxu0 %v6175_v33 }
  0xbc   : > { %v367_v40 = vsel %vm360_vm1, %v332_v4, %v366_v35  ;;  %v561_v41 = vsel %vm556_vm3, %v7228_v44, %v560_v36  ;;  %v725_v46 = vpop.permute.xlu1 %724  ;;  %v627_v1 = vpop.permute.xlu0 %626  ;;  %6276 = vmatmul.mubr.msk.bf16.vlgmr.msra.gmra.mrb[0].mxu0 %vm1683_vm10, %v7352_v28  ;;  %6278 = vmatmul.mubr.msk.bf16.vlgmr.msra.gmra.mrb[0].mxu1 %vm1683_vm10, %v7352_v28  ;;  %v6998_v44 = vld [vmem:[#allocation2 + $0x18] sm:$0xff] }
  0xbd   : > { %v743_v47 = vrot.slane %v725_v46, 4  ;;  %v645_v48 = vrot.slane %v627_v1, 4  ;;  %1838 = vmatpush1.bf16.msra.mxu0 %v6174_v31  ;;  %v6195_v45 = vcombine.low %v463_v23, %v561_v41  ;;  %v6196_v49 = vcombine.high %v463_v23, %v561_v41  ;;  %1869 = vmatprep.mubr.bf16.mxu0 %v7023_v5 }
  0xbe   : > { %934 = vrot.lane.b32.xlu0 %v902_v38, %s7021_s13  ;;  %1032 = vrot.lane.b32.xlu1 %v1000_v39, %s7022_s14  ;;  %v6176_v50 = vcombine.low %v6998_v44, %v367_v40  ;;  %v6177_v51 = vcombine.high %v6998_v44, %v367_v40 }
  0xbf   : > { %v756_v53 = vsel %vm358_vm0, %v742_v7, %v743_v47  ;;  %v658_v55 = vsel %vm358_vm0, %v644_v61, %v645_v48  ;;  %1839 = vmatprep.subr.bf16.mxu0 %v6196_v49  ;;  %1912 = vmatprep.mubr.bf16.mxu1 %v7023_v5 }
  0xc0   : > { %v757_v59 = vsel %vm752_vm5, %v7261_v6, %v756_v53  ;;  %v659_v7 = vsel %vm654_vm4, %v7245_v58, %v658_v55  ;;  %v7393_v60 = vpop.permute.xlu1 %530  ;;  %v7395_v61 = vpop.permute.xlu0 %432  ;;  %1880 = vmatprep.subr.bf16.mxu1 %v6177_v51 }
  0xc1   : > { %v548_v62 = vrot.slane %v7393_v60, 4  ;;  %v450_v63 = vrot.slane %v7395_v61, 4  ;;  %1840 = vmatpush1.bf16.msra.mxu0 %v6195_v45  ;;  %v6216_v0 = vcombine.low %v659_v7, %v757_v59  ;;  %v6217_v2 = vcombine.high %v659_v7, %v757_v59  ;;  %1881 = vmatpush1.bf16.msra.mxu1 %v6176_v50 }
  0xc2   : > { %1193 = vperm.xlu0 %6821, %v1189_v56   ;;  %1198 = vperm.xlu1 %6822, %v1190_v57  }
  0xc3   : > { %v562_v6 = vsel %vm358_vm0, %v547_v34, %v548_v62  ;;  %v464_v58 = vsel %vm358_vm0, %v449_v9, %v450_v63  ;;  %1841 = vmatprep.subr.bf16.mxu0 %v6217_v2 }
  0xc4   : > { %v563_v4 = vsel %vm556_vm3, %v529_v37, %v562_v6  ;;  %v465_v13 = vsel %vm458_vm2, %v7325_v3, %v464_v58  ;;  %v921_v14 = vpop.permute.xlu1 %920  ;;  %v823_v15 = vpop.permute.xlu0 %822 }
  0xc5   : > { %v939_v17 = vrot.slane %v921_v14, 4  ;;  %v841_v18 = vrot.slane %v823_v15, 4  ;;  %1842 = vmatpush1.bf16.msra.mxu0 %v6216_v0  ;;  %v6197_v20 = vcombine.low %v465_v13, %v563_v4  ;;  %v6198_v21 = vcombine.high %v465_v13, %v563_v4 }
  0xc7   : > { %v952_v22 = vsel %vm358_vm0, %v938_v43, %v939_v17  ;;  %v854_v9 = vsel %vm358_vm0, %v840_v30, %v841_v18  ;;  %1882 = vmatprep.subr.bf16.mxu1 %v6198_v21  ;;  %v6999_v21 = vld [vmem:[#allocation2 + $0x20] sm:$0xff] }
  0xc8   : > { %v953_v23 = vsel %vm948_vm7, %v7299_v42, %v952_v22  ;;  %v855_v3 = vsel %vm850_vm6, %v7281_v27, %v854_v9  ;;  %v7420_v24 = vpop.permute.xlu1 %726  ;;  %v7422_v37 = vpop.permute.xlu0 %628  ;;  %1883 = vmatpush1.bf16.msra.mxu1 %v6197_v20 }
  0xc9   : > { %v744_v26 = vrot.slane %v7420_v24, 4  ;;  %v646_v43 = vrot.slane %v7422_v37, 4  ;;  %v6237_v16 = vcombine.low %v855_v3, %v953_v23  ;;  %v6238_v34 = vcombine.high %v855_v3, %v953_v23 }
  0xcb   : > { %v758_v30 = vsel %vm358_vm0, %v743_v47, %v744_v26  ;;  %v660_v42 = vsel %vm358_vm0, %v645_v48, %v646_v43  ;;  %1843 = vmatprep.subr.bf16.mxu0 %v6238_v34 }
  0xcc   : > { %v759_v27 = vsel %vm752_vm5, %v725_v46, %v758_v30  ;;  %v661_v12 = vsel %vm654_vm4, %v627_v1, %v660_v42  ;;  %v7434_v31 = vpop.permute.xlu1 %824  ;;  %v1019_v33 = vpop.permute.xlu0 %1018  ;;  %1844 = vmatpush1.bf16.msra.mxu0 %v6237_v16 }
  0xcd   : > { %v842_v35 = vrot.slane %v7434_v31, 4  ;;  %v1037_v36 = vrot.slane %v1019_v33, 4  ;;  %v6218_v38 = vcombine.low %v661_v12, %v759_v27  ;;  %v6219_v39 = vcombine.high %v661_v12, %v759_v27 }
  0xcf   : > { %v856_v40 = vsel %vm358_vm0, %v841_v18, %v842_v35  ;;  %v1050_v41 = vsel %vm358_vm0, %v1036_v54, %v1037_v36  ;;  %1884 = vmatprep.subr.bf16.mxu1 %v6219_v39 }
  0xd0   : > { %v857_v46 = vsel %vm850_vm6, %v823_v15, %v856_v40  ;;  %v1051_v1 = vsel %vm1046_vm9, %v7309_v52, %v1050_v41  ;;  %v7446_v47 = vpop.permute.xlu1 %1020  ;;  %v7448_v48 = vpop.permute.xlu0 %922  ;;  %1885 = vmatpush1.bf16.msra.mxu1 %v6218_v38 }
  0xd1   : > { %v1038_v45 = vrot.slane %v7446_v47, 4  ;;  %v940_v49 = vrot.slane %v7448_v48, 4  ;;  %v6259_v44 = vcombine.high %v1051_v1, %v1051_v1  ;;  %v6258_v50 = vcombine.low %v1051_v1, %v1051_v1 }
  0xd3   : > { %v1052_v54 = vsel %vm358_vm0, %v1037_v36, %v1038_v45  ;;  %v954_v51 = vsel %vm358_vm0, %v939_v17, %v940_v49  ;;  %6279 = vmatprep.subr.msk.bf16.mxu0 %vm358_vm0, %v6259_v44  ;;  %v1701_v52 = vsel %vm358_vm0, %v6258_v50, 0 }
  0xd4   : > { %v1053_v53 = vsel %vm1046_vm9, %v1019_v33, %v1052_v54  ;;  %v955_v55 = vsel %vm948_vm7, %v921_v14, %v954_v51  ;;  %v435_v56 = vpop.permute.xlu1 %434  ;;  %v336_v57 = vpop.permute.xlu0 %335  ;;  %1846 = vmatpush1.bf16.msra.mxu0 %v1701_v52 }
  0xd5   : > { %v451_v59 = vrot.slane %v435_v56, 4  ;;  %v352_v7 = vrot.slane %v336_v57, 4  ;;  %v6239_v0 = vcombine.low %v857_v46, %v955_v55  ;;  %v6240_v2 = vcombine.high %v857_v46, %v955_v55 }
  0xd6   : > { %v6261_v6 = vcombine.high %v1053_v53, %v1053_v53  ;;  %v6260_v58 = vcombine.low %v1053_v53, %v1053_v53 }
  0xd7   : > { %v466_v4 = vsel %vm358_vm0, %v450_v63, %v451_v59  ;;  %v368_v13 = vsel %vm358_vm0, %v351_v29, %v352_v7  ;;  %6280 = vmatmul.mubr.msk.bf16.vlgmr.msra.gmra.mrb[4].mxu0 %vm1683_vm10, %v7352_v28  ;;  %1886 = vmatprep.subr.bf16.mxu1 %v6240_v2 }
  0xd8   : > { %v467_v14 = vsel %vm458_vm2, %v7395_v61, %v466_v4  ;;  %v369_v15 = vsel %vm360_vm1, %v7345_v25, %v368_v13  ;;  %v7474_v17 = vpop.permute.xlu1 %337  ;;  %v533_v18 = vpop.permute.xlu0 %532  ;;  %1887 = vmatpush1.bf16.msra.mxu1 %v6239_v0  ;;  %v1707_v63 = vsel %vm358_vm0, %v6260_v58, 0  ;;  %1955 = vmatprep.mubr.bf16.mxu0 %v7023_v5 }
  0xd9   : > { %v353_v29 = vrot.slane %v7474_v17, 4  ;;  %v549_v20 = vrot.slane %v533_v18, 4  ;;  %6281 = vmatprep.subr.msk.bf16.mxu1 %vm358_vm0, %v6261_v6  ;;  %v6178_v22 = vcombine.low %v6999_v21, %v369_v15  ;;  %v6179_v9 = vcombine.high %v6999_v21, %v369_v15 }
  0xdb   : > { %v370_v25 = vsel %vm358_vm0, %v352_v7, %v353_v29  ;;  %v564_v61 = vsel %vm358_vm0, %v548_v62, %v549_v20  ;;  %1923 = vmatprep.subr.bf16.mxu0 %v6179_v9 }
  0xdc   : > { %v371_v23 = vsel %vm360_vm1, %v336_v57, %v370_v25  ;;  %v565_v3 = vsel %vm556_vm3, %v7393_v60, %v564_v61  ;;  %v729_v16 = vpop.permute.xlu1 %728  ;;  %v631_v34 = vpop.permute.xlu0 %630  ;;  %1889 = vmatpush1.bf16.msra.mxu1 %v1707_v63  ;;  %1924 = vmatpush1.bf16.msra.mxu0 %v6178_v22 }
  0xdd   : > { %v745_v30 = vrot.slane %v729_v16, 4  ;;  %v647_v42 = vrot.slane %v631_v34, 4  ;;  %v6199_v27 = vcombine.low %v467_v14, %v565_v3  ;;  %v6200_v12 = vcombine.high %v467_v14, %v565_v3 }
  0xde   : > { %v6180_v33 = vcombine.low %v7158_v8, %v371_v23  ;;  %v6181_v36 = vcombine.high %v7158_v8, %v371_v23 }
  0xdf   : > { %v760_v62 = vsel %vm358_vm0, %v744_v26, %v745_v30  ;;  %v662_v60 = vsel %vm358_vm0, %v646_v43, %v647_v42  ;;  %6282 = vmatmul.mubr.msk.bf16.vlgmr.msra.gmra.mrb[4].mxu1 %vm1683_vm10, %v7352_v28  ;;  %1925 = vmatprep.subr.bf16.mxu0 %v6200_v12 }
  0xe0   : > { %v761_v38 = vsel %vm752_vm5, %v7420_v24, %v760_v62  ;;  %v663_v39 = vsel %vm654_vm4, %v7422_v37, %v662_v60  ;;  %v7503_v40 = vpop.permute.xlu1 %534  ;;  %v7505_v8 = vpop.permute.xlu0 %436  ;;  %1926 = vmatpush1.bf16.msra.mxu0 %v6199_v27  ;;  %1966 = vmatprep.subr.bf16.mxu1 %v6181_v36 }
  0xe1   : > { %v550_v26 = vrot.slane %v7503_v40, 4  ;;  %v452_v43 = vrot.slane %v7505_v8, 4  ;;  %v6220_v41 = vcombine.low %v663_v39, %v761_v38  ;;  %v6221_v46 = vcombine.high %v663_v39, %v761_v38  ;;  %1967 = vmatpush1.bf16.msra.mxu1 %v6180_v33  ;;  %1998 = vmatprep.mubr.bf16.mxu1 %v7023_v5 }
  0xe3   : > { %v566_v24 = vsel %vm358_vm0, %v549_v20, %v550_v26  ;;  %v468_v37 = vsel %vm358_vm0, %v451_v59, %v452_v43  ;;  %1927 = vmatprep.subr.bf16.mxu0 %v6221_v46 }
  0xe4   : > { %v567_v1 = vsel %vm556_vm3, %v533_v18, %v566_v24  ;;  %v469_v44 = vsel %vm458_vm2, %v435_v56, %v468_v37  ;;  %v925_v50 = vpop.permute.xlu1 %924  ;;  %v827_v54 = vpop.permute.xlu0 %826  ;;  %1928 = vmatpush1.bf16.msra.mxu0 %v6220_v41 }
  0xe5   : > { %v941_v51 = vrot.slane %v925_v50, 4  ;;  %v843_v52 = vrot.slane %v827_v54, 4  ;;  %v6201_v53 = vcombine.low %v469_v44, %v567_v1  ;;  %v6202_v55 = vcombine.high %v469_v44, %v567_v1 }
  0xe7   : > { %v956_v57 = vsel %vm358_vm0, %v940_v49, %v941_v51  ;;  %v858_v59 = vsel %vm358_vm0, %v842_v35, %v843_v52  ;;  %1968 = vmatprep.subr.bf16.mxu1 %v6202_v55 }
  0xe8   : > { %v957_v7 = vsel %vm948_vm7, %v7448_v48, %v956_v57  ;;  %v859_v56 = vsel %vm850_vm6, %v7434_v31, %v858_v59  ;;  %v7528_v0 = vpop.permute.xlu0 %632  ;;  %v7530_v2 = vpop.permute.xlu1 %730  ;;  %1969 = vmatpush1.bf16.msra.mxu1 %v6201_v53 }
  0xe9   : > { %v648_v6 = vrot.slane %v7528_v0, 4  ;;  %v746_v49 = vrot.slane %v7530_v2, 4  ;;  %v6241_v58 = vcombine.low %v859_v56, %v957_v7  ;;  %v6242_v4 = vcombine.high %v859_v56, %v957_v7 }
  0xeb   : > { %v664_v35 = vsel %vm358_vm0, %v647_v42, %v648_v6  ;;  %v762_v48 = vsel %vm358_vm0, %v745_v30, %v746_v49  ;;  %1929 = vmatprep.subr.bf16.mxu0 %v6242_v4 }
  0xec   : > { %v665_v31 = vsel %vm654_vm4, %v631_v34, %v664_v35  ;;  %v763_v13 = vsel %vm752_vm5, %v729_v16, %v762_v48  ;;  %v1023_v14 = vpop.permute.xlu0 %1022  ;;  %v7542_v15 = vpop.permute.xlu1 %828  ;;  %1930 = vmatpush1.bf16.msra.mxu0 %v6241_v58 }
  0xed   : > { %v1039_v18 = vrot.slane %v1023_v14, 4  ;;  %v844_v63 = vrot.slane %v7542_v15, 4  ;;  %v6222_v20 = vcombine.low %v665_v31, %v763_v13  ;;  %v6223_v21 = vcombine.high %v665_v31, %v763_v13 }
  0xef   : > { %v1054_v22 = vsel %vm358_vm0, %v1038_v45, %v1039_v18  ;;  %v860_v9 = vsel %vm358_vm0, %v843_v52, %v844_v63  ;;  %1970 = vmatprep.subr.bf16.mxu1 %v6223_v21 }
  0xf0   : > { %v1055_v25 = vsel %vm1046_vm9, %v7446_v47, %v1054_v22  ;;  %v861_v61 = vsel %vm850_vm6, %v827_v54, %v860_v9  ;;  %v7554_v23 = vpop.permute.xlu0 %926  ;;  %v7556_v3 = vpop.permute.xlu1 %1024  ;;  %1971 = vmatpush1.bf16.msra.mxu1 %v6222_v20 }
  0xf1   : > { %v942_v16 = vrot.slane %v7554_v23, 4  ;;  %v1040_v34 = vrot.slane %v7556_v3, 4  ;;  %v6263_v45 = vcombine.high %v1055_v25, %v1055_v25  ;;  %v6262_v30 = vcombine.low %v1055_v25, %v1055_v25 }
  0xf3   : > { %v958_v42 = vsel %vm358_vm0, %v941_v51, %v942_v16  ;;  %v1056_v47 = vsel %vm358_vm0, %v1039_v18, %v1040_v34  ;;  %6283 = vmatprep.subr.msk.bf16.mxu0 %vm358_vm0, %v6263_v45  ;;  %v1713_v27 = vsel %vm358_vm0, %v6262_v30, 0 }
  0xf4   : > { %v959_v12 = vsel %vm948_vm7, %v925_v50, %v958_v42  ;;  %v1057_v33 = vsel %vm1046_vm9, %v1023_v14, %v1056_v47  ;;  %v340_v36 = vpop.permute.xlu0 %339  ;;  %v439_v62 = vpop.permute.xlu1 %438  ;;  %1932 = vmatpush1.bf16.msra.mxu0 %v1713_v27 }
  0xf5   : > { %v354_v60 = vrot.slane %v340_v36, 4  ;;  %v453_v38 = vrot.slane %v439_v62, 4  ;;  %v6243_v39 = vcombine.low %v861_v61, %v959_v12  ;;  %v6244_v41 = vcombine.high %v861_v61, %v959_v12 }
  0xf6   : > { %v6265_v46 = vcombine.high %v1057_v33, %v1057_v33  ;;  %v6264_v24 = vcombine.low %v1057_v33, %v1057_v33 }
  0xf7   : > { %v372_v37 = vsel %vm358_vm0, %v353_v29, %v354_v60  ;;  %v470_v1 = vsel %vm358_vm0, %v452_v43, %v453_v38  ;;  %6284 = vmatmul.mubr.msk.bf16.vlgmr.msra.gmra.mrb[8].mxu0 %vm1683_vm10, %v7352_v28  ;;  %1972 = vmatprep.subr.bf16.mxu1 %v6244_v41 }
  0xf8   : > { %v373_v44 = vsel %vm360_vm1, %v7474_v17, %v372_v37  ;;  %v471_v50 = vsel %vm458_vm2, %v7505_v8, %v470_v1  ;;  %v537_v54 = vpop.permute.xlu0 %536  ;;  %v7582_v51 = vpop.permute.xlu1 %341  ;;  %1973 = vmatpush1.bf16.msra.mxu1 %v6243_v39  ;;  %v1719_v29 = vsel %vm358_vm0, %v6264_v24, 0  ;;  %2041 = vmatprep.mubr.bf16.mxu0 %v7023_v5 }
  0xf9   : > { %v551_v52 = vrot.slane %v537_v54, 4  ;;  %v355_v43 = vrot.slane %v7582_v51, 4  ;;  %6285 = vmatprep.subr.msk.bf16.mxu1 %vm358_vm0, %v6265_v46  ;;  %v6182_v53 = vcombine.low %v7179_v11, %v373_v44  ;;  %v6183_v17 = vcombine.high %v7179_v11, %v373_v44 }
  0xfb   : > { %v568_v8 = vsel %vm358_vm0, %v550_v26, %v551_v52  ;;  %v374_v55 = vsel %vm358_vm0, %v354_v60, %v355_v43  ;;  %2009 = vmatprep.subr.bf16.mxu0 %v6183_v17 }
  0xfc   : > { %v569_v57 = vsel %vm556_vm3, %v7503_v40, %v568_v8  ;;  %v375_v59 = vsel %vm360_vm1, %v340_v36, %v374_v55  ;;  %v635_v7 = vpop.permute.xlu0 %634  ;;  %v733_v56 = vpop.permute.xlu1 %732  ;;  %1975 = vmatpush1.bf16.msra.mxu1 %v1719_v29  ;;  %2010 = vmatpush1.bf16.msra.mxu0 %v6182_v53 }
  0xfd   : > { %v649_v58 = vrot.slane %v635_v7, 4  ;;  %v747_v11 = vrot.slane %v733_v56, 4  ;;  %v6203_v4 = vcombine.low %v471_v50, %v569_v57  ;;  %v6204_v35 = vcombine.high %v471_v50, %v569_v57 }
  0xfe   : > { %v6184_v26 = vcombine.low %v7193_v19, %v375_v59  ;;  %v6185_v48 = vcombine.high %v7193_v19, %v375_v59 }
  0xff   : > { %v666_v31 = vsel %vm358_vm0, %v648_v6, %v649_v58  ;;  %v764_v40 = vsel %vm358_vm0, %v746_v49, %v747_v11  ;;  %6286 = vmatmul.mubr.msk.bf16.vlgmr.msra.gmra.mrb[8].mxu1 %vm1683_vm10, %v7352_v28  ;;  %2011 = vmatprep.subr.bf16.mxu0 %v6204_v35 }
 0x100   : > { %v667_v13 = vsel %vm654_vm4, %v7528_v0, %v666_v31  ;;  %v765_v14 = vsel %vm752_vm5, %v7530_v2, %v764_v40  ;;  %v7613_v18 = vpop.permute.xlu0 %440  ;;  %v7615_v19 = vpop.permute.xlu1 %538  ;;  %2012 = vmatpush1.bf16.msra.mxu0 %v6203_v4  ;;  %2052 = vmatprep.subr.bf16.mxu1 %v6185_v48 }
 0x101   : > { %v454_v6 = vrot.slane %v7613_v18, 4  ;;  %v552_v49 = vrot.slane %v7615_v19, 4  ;;  %v6224_v20 = vcombine.low %v667_v13, %v765_v14  ;;  %v6225_v21 = vcombine.high %v667_v13, %v765_v14  ;;  %2053 = vmatpush1.bf16.msra.mxu1 %v6184_v26  ;;  %2084 = vmatprep.mubr.bf16.mxu1 %v7023_v5 }
 0x103   : > { %v472_v0 = vsel %vm358_vm0, %v453_v38, %v454_v6  ;;  %v570_v2 = vsel %vm358_vm0, %v551_v52, %v552_v49  ;;  %2013 = vmatprep.subr.bf16.mxu0 %v6225_v21 }
 0x104   : > { %v473_v22 = vsel %vm458_vm2, %v439_v62, %v472_v0  ;;  %v571_v9 = vsel %vm556_vm3, %v537_v54, %v570_v2  ;;  %v831_v25 = vpop.permute.xlu0 %830  ;;  %v929_v61 = vpop.permute.xlu1 %928  ;;  %2014 = vmatpush1.bf16.msra.mxu0 %v6224_v20 }
 0x105   : > { %v845_v45 = vrot.slane %v831_v25, 4  ;;  %v943_v30 = vrot.slane %v929_v61, 4  ;;  %v6205_v42 = vcombine.low %v473_v22, %v571_v9  ;;  %v6206_v47 = vcombine.high %v473_v22, %v571_v9 }
 0x107   : > { %v862_v27 = vsel %vm358_vm0, %v844_v63, %v845_v45  ;;  %v960_v12 = vsel %vm358_vm0, %v942_v16, %v943_v30  ;;  %2054 = vmatprep.subr.bf16.mxu1 %v6206_v47 }
 0x108   : > { %v863_v33 = vsel %vm850_vm6, %v7542_v15, %v862_v27  ;;  %v961_v36 = vsel %vm948_vm7, %v7554_v23, %v960_v12  ;;  %v7638_v62 = vpop.permute.xlu0 %636  ;;  %v7640_v60 = vpop.permute.xlu1 %734  ;;  %2055 = vmatpush1.bf16.msra.mxu1 %v6205_v42 }
 0x109   : > { %v650_v38 = vrot.slane %v7638_v62, 4  ;;  %v748_v63 = vrot.slane %v7640_v60, 4  ;;  %v6245_v39 = vcombine.low %v863_v33, %v961_v36  ;;  %v6246_v41 = vcombine.high %v863_v33, %v961_v36 }
 0x10b   : > { %v668_v16 = vsel %vm358_vm0, %v649_v58, %v650_v38  ;;  %v766_v15 = vsel %vm358_vm0, %v747_v11, %v748_v63  ;;  %2015 = vmatprep.subr.bf16.mxu0 %v6246_v41 }
 0x10c   : > { %v669_v23 = vsel %vm654_vm4, %v635_v7, %v668_v16  ;;  %v767_v46 = vsel %vm752_vm5, %v733_v56, %v766_v15  ;;  %v1027_v24 = vpop.permute.xlu0 %1026  ;;  %v7652_v37 = vpop.permute.xlu1 %832  ;;  %2016 = vmatpush1.bf16.msra.mxu0 %v6245_v39 }
 0x10d   : > { %v1041_v1 = vrot.slane %v1027_v24, 4  ;;  %v846_v44 = vrot.slane %v7652_v37, 4  ;;  %v6226_v50 = vcombine.low %v669_v23, %v767_v46  ;;  %v6227_v54 = vcombine.high %v669_v23, %v767_v46 }
 0x10f   : > { %v1058_v29 = vsel %vm358_vm0, %v1040_v34, %v1041_v1  ;;  %v864_v52 = vsel %vm358_vm0, %v845_v45, %v846_v44  ;;  %2056 = vmatprep.subr.bf16.mxu1 %v6227_v54 }
 0x110   : > { %v1059_v53 = vsel %vm1046_vm9, %v7556_v3, %v1058_v29  ;;  %v865_v17 = vsel %vm850_vm6, %v831_v25, %v864_v52  ;;  %v7664_v8 = vpop.permute.xlu0 %930  ;;  %v7666_v55 = vpop.permute.xlu1 %1028  ;;  %2057 = vmatpush1.bf16.msra.mxu1 %v6226_v50 }
 0x111   : > { %v944_v57 = vrot.slane %v7664_v8, 4  ;;  %v1042_v59 = vrot.slane %v7666_v55, 4  ;;  %v6267_v34 = vcombine.high %v1059_v53, %v1059_v53  ;;  %v6266_v7 = vcombine.low %v1059_v53, %v1059_v53 }
 0x113   : > { %v962_v56 = vsel %vm358_vm0, %v943_v30, %v944_v57  ;;  %v1060_v3 = vsel %vm358_vm0, %v1041_v1, %v1042_v59  ;;  %6287 = vmatprep.subr.msk.bf16.mxu0 %vm358_vm0, %v6267_v34  ;;  %v1725_v58 = vsel %vm358_vm0, %v6266_v7, 0 }
 0x114   : > { %v963_v11 = vsel %vm948_vm7, %v929_v61, %v962_v56  ;;  %v1061_v4 = vsel %vm1046_vm9, %v1027_v24, %v1060_v3  ;;  %v344_v35 = vpop.permute.xlu0 %343  ;;  %v443_v26 = vpop.permute.xlu1 %442  ;;  %2018 = vmatpush1.bf16.msra.mxu0 %v1725_v58 }
 0x115   : > { %v356_v48 = vrot.slane %v344_v35, 4  ;;  %v455_v31 = vrot.slane %v443_v26, 4  ;;  %v6247_v40 = vcombine.low %v865_v17, %v963_v11  ;;  %v6248_v13 = vcombine.high %v865_v17, %v963_v11 }
 0x116   : > { %v6269_v14 = vcombine.high %v1061_v4, %v1061_v4  ;;  %v6268_v20 = vcombine.low %v1061_v4, %v1061_v4 }
 0x117   : > { %v376_v21 = vsel %vm358_vm0, %v355_v43, %v356_v48  ;;  %v474_v0 = vsel %vm358_vm0, %v454_v6, %v455_v31  ;;  %6288 = vmatmul.mubr.msk.bf16.vlgmr.msra.gmra.mrb[12].mxu0 %vm1683_vm10, %v7352_v28  ;;  %2058 = vmatprep.subr.bf16.mxu1 %v6248_v13 }
 0x118   : > { %v377_v2 = vsel %vm360_vm1, %v7582_v51, %v376_v21  ;;  %v475_v22 = vsel %vm458_vm2, %v7613_v18, %v474_v0  ;;  %v541_v9 = vpop.permute.xlu0 %540  ;;  %v346_v25 = vpop.permute.xlu1 %345  ;;  %2059 = vmatpush1.bf16.msra.mxu1 %v6247_v40  ;;  %v1731_v61 = vsel %vm358_vm0, %v6268_v20, 0  ;;  %2127 = vmatprep.mubr.bf16.mxu0 %v7023_v5 }
 0x119   : > { %v553_v43 = vrot.slane %v541_v9, 4  ;;  %v357_v45 = vrot.slane %v346_v25, 4  ;;  %401 = vst.msk [vmem:[#allocation2 + $0xa4] sm:$0xf] %vm301_vm8, %v346_v25  ;;  %6289 = vmatprep.subr.msk.bf16.mxu1 %vm358_vm0, %v6269_v14  ;;  %v6186_v6 = vcombine.low %v7265_v10, %v377_v2  ;;  %v6187_v51 = vcombine.high %v7265_v10, %v377_v2 }
 0x11b   : > { %v572_v18 = vsel %vm358_vm0, %v552_v49, %v553_v43  ;;  %v378_v30 = vsel %vm358_vm0, %v356_v48, %v357_v45  ;;  %2095 = vmatprep.subr.bf16.mxu0 %v6187_v51 }
 0x11c   : > { %v573_v42 = vsel %vm556_vm3, %v7615_v19, %v572_v18  ;;  %v379_v47 = vsel %vm360_vm1, %v344_v35, %v378_v30  ;;  %v639_v27 = vpop.permute.xlu0 %638  ;;  %v737_v12 = vpop.permute.xlu1 %736  ;;  %2061 = vmatpush1.bf16.msra.mxu1 %v1731_v61  ;;  %2096 = vmatpush1.bf16.msra.mxu0 %v6186_v6 }
 0x11d   : > { %v651_v33 = vrot.slane %v639_v27, 4  ;;  %v749_v36 = vrot.slane %v737_v12, 4  ;;  %v6207_v39 = vcombine.low %v475_v22, %v573_v42  ;;  %v6208_v10 = vcombine.high %v475_v22, %v573_v42 }
 0x11e   : > { %v6188_v41 = vcombine.low %v7285_v32, %v379_v47  ;;  %v6189_v49 = vcombine.high %v7285_v32, %v379_v47 }
 0x11f   : > { %v670_v16 = vsel %vm358_vm0, %v650_v38, %v651_v33  ;;  %v768_v19 = vsel %vm358_vm0, %v748_v63, %v749_v36  ;;  %6290 = vmatmul.mubr.msk.bf16.vlgmr.msra.gmra.mrb[12].mxu1 %vm1683_vm10, %v7352_v28  ;;  %2097 = vmatprep.subr.bf16.mxu0 %v6208_v10 }
 0x120   : > { %v671_v15 = vsel %vm654_vm4, %v7638_v62, %v670_v16  ;;  %v769_v23 = vsel %vm752_vm5, %v7640_v60, %v768_v19  ;;  %v445_v46 = vpop.permute.xlu0 %444  ;;  %v543_v32 = vpop.permute.xlu1 %542  ;;  %2098 = vmatpush1.bf16.msra.mxu0 %v6207_v39  ;;  %2138 = vmatprep.subr.bf16.mxu1 %v6189_v49 }
 0x121   : > { %v456_v24 = vrot.slane %v445_v46, 4  ;;  %499 = vst.msk [vmem:[#allocation2 + $0xf8] sm:$0xf] %vm301_vm8, %v445_v46  ;;  %v554_v38 = vrot.slane %v543_v32, 4  ;;  %597 = vst.msk [vmem:[#allocation2 + $0x14c] sm:$0xf] %vm301_vm8, %v543_v32  ;;  %v6228_v63 = vcombine.low %v671_v15, %v769_v23  ;;  %v6229_v1 = vcombine.high %v671_v15, %v769_v23  ;;  %2139 = vmatpush1.bf16.msra.mxu1 %v6188_v41 }
 0x122   : > { %2170 = vmatprep.mubr.bf16.mxu1 %v7023_v5  ;;  %v7000_v41 = vld [vmem:[%s9449_s1] sm:$0xff]   ;;  %v2270_v32 = vlaneseq }
 0x123   : > { %v476_v28 = vsel %vm358_vm0, %v455_v31, %v456_v24  ;;  %v574_v62 = vsel %vm358_vm0, %v553_v43, %v554_v38  ;;  %2099 = vmatprep.subr.bf16.mxu0 %v6229_v1 }
 0x124   : > { %v477_v60 = vsel %vm458_vm2, %v443_v26, %v476_v28  ;;  %v575_v50 = vsel %vm556_vm3, %v541_v9, %v574_v62  ;;  %v835_v54 = vpop.permute.xlu0 %834  ;;  %v933_v29 = vpop.permute.xlu1 %932  ;;  %2100 = vmatpush1.bf16.msra.mxu0 %v6228_v63  ;;  %v7767_v24 = vshrl.u32 %v2270_v32, 7  ;;  %v7780_v28 = vld [vmem:[%s9453_s5] sm:$0xff] }
 0x125   : > { %v847_v52 = vrot.slane %v835_v54, 4  ;;  %v945_v53 = vrot.slane %v933_v29, 4  ;;  %v6209_v17 = vcombine.low %v477_v60, %v575_v50  ;;  %v6210_v34 = vcombine.high %v477_v60, %v575_v50 }
 0x126   : > { %v7770_v38 = vsub.s32 0, %v7767_v24  ;;  %v7773_v63 = vsub.s32 2, %v7767_v24  ;;  %v7783_v62 = vsub.s32 1, %v7767_v24  ;;  %v7786_v60 = vsub.s32 3, %v7767_v24 }
 0x127   : > { %v866_v7 = vsel %vm358_vm0, %v846_v44, %v847_v52  ;;  %v964_v56 = vsel %vm358_vm0, %v944_v57, %v945_v53  ;;  %2140 = vmatprep.subr.bf16.mxu1 %v6210_v34 }
 0x128   : > { %v867_v3 = vsel %vm850_vm6, %v7652_v37, %v866_v7  ;;  %v965_v58 = vsel %vm948_vm7, %v7664_v8, %v964_v56  ;;  %v641_v11 = vpop.permute.xlu0 %640  ;;  %v739_v4 = vpop.permute.xlu1 %738  ;;  %2141 = vmatpush1.bf16.msra.mxu1 %v6209_v17  ;;  %v6825_v49 = vld [vmem:[#allocation2 + $0xf8] ss:$84 sps:$4 sm:$0xff]   ;;  %v2281_v34 = vrot.slane %v7780_v28, %v7773_v63 }
 0x129   : > { %v652_v35 = vrot.slane %v641_v11, 4  ;;  %695 = vst.msk [vmem:[#allocation2 + $0x1a0] sm:$0xf] %vm301_vm8, %v641_v11  ;;  %v750_v26 = vrot.slane %v739_v4, 4  ;;  %793 = vst.msk [vmem:[#allocation2 + $0x1f4] sm:$0xf] %vm301_vm8, %v739_v4  ;;  %v6249_v44 = vcombine.low %v867_v3, %v965_v58  ;;  %v6250_v48 = vcombine.high %v867_v3, %v965_v58 }
 0x12a   : > { %v2277_v58 = vrot.slane %v7780_v28, %v7783_v62  ;;  %v2285_v4 = vrot.slane %v7780_v28, %v7786_v60 }
 0x12b   : > { %v672_v57 = vsel %vm358_vm0, %v651_v33, %v652_v35  ;;  %v770_v31 = vsel %vm358_vm0, %v749_v36, %v750_v26  ;;  %2101 = vmatprep.subr.bf16.mxu0 %v6250_v48  ;;  %v7024_v36 = vmov 0.0  }
 0x12c   : > { %v673_v37 = vsel %vm654_vm4, %v639_v27, %v672_v57  ;;  %v771_v8 = vsel %vm752_vm5, %v737_v12, %v770_v31  ;;  %v1031_v40 = vpop.permute.xlu0 %1030  ;;  %v837_v13 = vpop.permute.xlu1 %836  ;;  %2102 = vmatpush1.bf16.msra.mxu0 %v6249_v44  ;;  %v6824_v27 = vld [vmem:[#allocation2 + $0x50] ss:$84 sps:$4 sm:$0xff]  }
 0x12d   : > { %v1043_v14 = vrot.slane %v1031_v40, 4  ;;  %v848_v20 = vrot.slane %v837_v13, 4  ;;  %891 = vst.msk [vmem:[#allocation2 + $0x248] sm:$0xf] %vm301_vm8, %v837_v13  ;;  %v6230_v21 = vcombine.low %v673_v37, %v771_v8  ;;  %v6231_v0 = vcombine.high %v673_v37, %v771_v8 }
 0x12f   : > { %v1062_v2 = vsel %vm358_vm0, %v1042_v59, %v1043_v14  ;;  %v868_v22 = vsel %vm358_vm0, %v847_v52, %v848_v20  ;;  %2142 = vmatprep.subr.bf16.mxu1 %v6231_v0 }
 0x130   : > { %v1063_v9 = vsel %vm1046_vm9, %v7666_v55, %v1062_v2  ;;  %v869_v25 = vsel %vm850_vm6, %v835_v54, %v868_v22  ;;  %v935_v61 = vpop.permute.xlu0 %934  ;;  %v1033_v43 = vpop.permute.xlu1 %1032  ;;  %2143 = vmatpush1.bf16.msra.mxu1 %v6230_v21  ;;  %v6826_v19 = vld [vmem:[#allocation2 + $0x1a0] ss:$84 sps:$4 sm:$0xff]  }
 0x131   : > { %v946_v45 = vrot.slane %v935_v61, 4  ;;  %989 = vst.msk [vmem:[#allocation2 + $0x29c] sm:$0xf] %vm301_vm8, %v935_v61  ;;  %v1044_v6 = vrot.slane %v1033_v43, 4  ;;  %1087 = vst.msk [vmem:[#allocation2 + $0x2f0] sm:$0xf] %vm301_vm8, %v1033_v43  ;;  %v6271_v51 = vcombine.high %v1063_v9, %v1063_v9  ;;  %v6270_v18 = vcombine.low %v1063_v9, %v1063_v9 }
 0x133   : > { %v966_v59 = vsel %vm358_vm0, %v945_v53, %v946_v45  ;;  %v1064_v30 = vsel %vm358_vm0, %v1043_v14, %v1044_v6  ;;  %6291 = vmatprep.subr.msk.bf16.mxu0 %vm358_vm0, %v6271_v51  ;;  %v1737_v55 = vsel %vm358_vm0, %v6270_v18, 0  ;;  %v2273_v53 = vrot.slane %v7780_v28, %v7770_v38 }
 0x134   : > { %v967_v42 = vsel %vm948_vm7, %v933_v29, %v966_v59  ;;  %v1065_v47 = vsel %vm1046_vm9, %v1031_v40, %v1064_v30  ;;  %2104 = vmatpush1.bf16.msra.mxu0 %v1737_v55 }
 0x135   : > { %v6251_v12 = vcombine.low %v869_v25, %v967_v42  ;;  %v6252_v33 = vcombine.high %v869_v25, %v967_v42  ;;  %6779 = vmatprep.subr.bf16.mxu0 %v7024_v36  ;;  %v6273_v39 = vcombine.high %v1065_v47, %v1065_v47  ;;  %v6272_v10 = vcombine.low %v1065_v47, %v1065_v47 }
 0x136   : > { %v7821_v47 = vsub.s32 4, %v7767_v24 }
 0x137   : > { %6292 = vmatmul.mubr.msk.bf16.vlgmr.msra.gmra.mrb[16].mxu0 %vm1683_vm10, %v7000_v41  ;;  %2144 = vmatprep.subr.bf16.mxu1 %v6252_v33  ;;  %v1743_v16 = vsel %vm358_vm0, %v6272_v10, 0 }
 0x138   : > { %2145 = vmatpush1.bf16.msra.mxu1 %v6251_v12  ;;  %6780 = vmatpush3.bf16.msra.mxu0 %v6824_v27  ;;  %v6827_v15 = vld [vmem:[#allocation2 + $0x248] ss:$84 sps:$4 sm:$0xff]   ;;  %v6828_v23 = vld [vmem:[#allocation2 + $0x2f0] ss:$0 sps:$4 sm:$0xff]   ;;  %v2292_v12 = vsub.s32 5, %v7767_v24 }
 0x139   : > { %6293 = vmatprep.subr.msk.bf16.mxu1 %vm358_vm0, %v6273_v39  ;;  %6781 = vmatprep.subr.bf16.mxu0 %v7024_v36  ;;  %v1749_v46 = vsel %vm358_vm0, %v6828_v23, 0 }
 0x13a   : > { %6789 = vmatprep.mubr.msk.bf16.mxu0 %vm7025_vm11, %v7024_v36  ;;  %v2293_v23 = vrot.slane %v7780_v28, %v2292_v12 }
 0x13c   : > { %2147 = vmatpush1.bf16.msra.mxu1 %v1743_v16  ;;  %6782 = vmatpush3.bf16.msra.mxu0 %v6825_v49  ;;  %v2289_v49 = vrot.slane %v7780_v28, %v7821_v47 }
 0x13d   : > { %6783 = vmatprep.subr.bf16.mxu0 %v7024_v36 }
 0x13f   : > { %6294 = vmatmul.mubr.msk.bf16.vlgmr.msra.gmra.mrb[16].mxu1 %vm1683_vm10, %v7000_v41 }
 0x140   : > { %6784 = vmatpush3.bf16.msra.mxu0 %v6826_v19 }
 0x141   : > { %6785 = vmatprep.subr.bf16.mxu0 %v7024_v36  ;;  %v7775_v1 = vpop.permute.xlu0 %1193  ;;  %v7788_v50 = vpop.permute.xlu1 %1198 }
 0x144   : > { %6786 = vmatpush3.bf16.msra.mxu0 %v6827_v15 }
 0x145   : > { %6787 = vmatprep.subr.bf16.mxu0 %v7024_v36 }
 0x148   : > { %6788 = vmatpush3.bf16.msra.mxu0 %v1749_v46 }
 0x14b   : > { %6790 = vmatmul.mubr.msk.bf16.vlgmr.msra.gmra.mrb[20].mxu0 %vm1683_vm10, %v7000_v41 }
 0x18f   : > { %v1785_v54 = vpop.f32.mrb[0].mxu0  ;;  %v1828_v29 = vpop.f32.mrb[0].mxu1 }
 0x190   : > { %v1786_v52 = vadd.f32 %v1785_v54, %v7775_v1  ;;  %v1829_v17 = vadd.f32 %v1828_v29, %v7775_v1  ;;  %v1787_v7 = vpop.f32.mrb[1].mxu0  ;;  %v1830_v56 = vpop.f32.mrb[1].mxu1 }
 0x191   : > { %v1788_v3 = vadd.f32 %v1787_v7, %v7775_v1  ;;  %v1831_v11 = vadd.f32 %v1830_v56, %v7775_v1  ;;  %v1789_v35 = vpop.f32.mrb[2].mxu0  ;;  %v1832_v26 = vpop.f32.mrb[2].mxu1  ;;  %v2300_v56 = vsub.s32 7, %v7767_v24 }
 0x192   : > { %v2222_v44 = vmax.f32 %v1786_v52, 0.0  ;;  %v2224_v48 = vmax.f32 %v1829_v17, 0.0  ;;  %v1790_v57 = vadd.f32 %v1789_v35, %v7788_v50  ;;  %v1833_v31 = vadd.f32 %v1832_v26, %v7788_v50  ;;  %v1791_v37 = vpop.f32.mrb[3].mxu0  ;;  %v1834_v8 = vpop.f32.mrb[3].mxu1 }
 0x193   : > { %v2223_v40 = vmax.f32 %v1788_v3, 0.0  ;;  %v2225_v13 = vmax.f32 %v1831_v11, 0.0  ;;  %v1792_v14 = vadd.f32 %v1791_v37, %v7788_v50  ;;  %v1835_v20 = vadd.f32 %v1834_v8, %v7788_v50 }
 0x194   : > { %v2243_v21 = vmax.f32 %v1790_v57, 0.0  ;;  %v2245_v0 = vmax.f32 %v1833_v31, 0.0  ;;  %v2375_v9 = vmul.f32 %v2273_v53, %v2222_v44  ;;  %v2377_v25 = vmul.f32 %v2281_v34, %v2224_v48 }
 0x195   : > { %v2244_v2 = vmax.f32 %v1792_v14, 0.0  ;;  %v2246_v22 = vmax.f32 %v1835_v20, 0.0  ;;  %v2376_v45 = vmul.f32 %v2277_v58, %v2223_v40  ;;  %v2378_v6 = vmul.f32 %v2285_v4, %v2225_v13 }
 0x196   : > { %v2396_v61 = vmul.f32 %v2273_v53, %v2243_v21  ;;  %v2398_v43 = vmul.f32 %v2281_v34, %v2245_v0  ;;  %v2296_v53 = vsub.s32 6, %v7767_v24  ;;  %v2301_v8 = vrot.slane %v7780_v28, %v2300_v56 }
 0x197   : > { %v2397_v51 = vmul.f32 %v2277_v58, %v2244_v2  ;;  %v2399_v18 = vmul.f32 %v2285_v4, %v2246_v22 }
 0x198   : > { %v2417_v59 = vpack.c.bf16 %v2396_v61, %v2375_v9  ;;  %v2419_v30 = vpack.c.bf16 %v2398_v43, %v2377_v25  ;;  %v2297_v48 = vrot.slane %v7780_v28, %v2296_v53  ;;  %v7885_v25 = vld [vmem:[%s9453_s5 + $0x8] sm:$0xff] }
 0x199   : > { %v7806_v55 = vpack.c.bf16 %v2397_v51, %v2376_v45  ;;  %v7808_v42 = vpack.c.bf16 %v2399_v18, %v2378_v6  ;;  %v2305_v18 = vrot.slane %v7885_v25, %v7770_v38 }
 0x19a   : > { %2485 = vrot.lane.b32.xlu0 %v2419_v30, %s7015_s30  ;;  %2481 = vrot.lane.b32.xlu1 %v2417_v59, %s7015_s30 }
 0x19b   : > { %3555 = vmatprep.subr.bf16.mxu1 %v7806_v55  ;;  %3608 = vmatprep.subr.bf16.mxu0 %v7808_v42 }
 0x19c   : > { %3556 = vmatpush1.bf16.msra.mxu1 %v2417_v59  ;;  %3609 = vmatpush1.bf16.msra.mxu0 %v2419_v30 }
 0x19e   : > { %2585 = vrot.lane.b32.xlu0 %v2417_v59, %s7016_s8  ;;  %2589 = vrot.lane.b32.xlu1 %v2419_v30, %s7016_s8 }
 0x1a2   : > { %2693 = vrot.lane.b32.xlu0 %v2419_v30, %s7017_s9  ;;  %2689 = vrot.lane.b32.xlu1 %v2417_v59, %s7017_s9 }
 0x1a6   : > { %2793 = vrot.lane.b32.xlu0 %v2417_v59, %s7018_s10  ;;  %2797 = vrot.lane.b32.xlu1 %v2419_v30, %s7018_s10 }
 0x1aa   : > { %2901 = vrot.lane.b32.xlu0 %v2419_v30, %s7019_s11  ;;  %2897 = vrot.lane.b32.xlu1 %v2417_v59, %s7019_s11  ;;  %v1871_v27 = vpop.f32.mrb[4].mxu0 }
 0x1ab   : > { %v1872_v33 = vadd.f32 %v1871_v27, %v7775_v1  ;;  %v1873_v36 = vpop.f32.mrb[5].mxu0 }
 0x1ac   : > { %v1874_v39 = vadd.f32 %v1873_v36, %v7775_v1  ;;  %v1875_v10 = vpop.f32.mrb[6].mxu0 }
 0x1ad   : > { %v2226_v41 = vmax.f32 %v1872_v33, 0.0  ;;  %v1876_v16 = vadd.f32 %v1875_v10, %v7788_v50  ;;  %v1877_v19 = vpop.f32.mrb[7].mxu0  ;;  %v2309_v33 = vrot.slane %v7885_v25, %v7783_v62 }
 0x1ae   : > { %v2227_v15 = vmax.f32 %v1874_v39, 0.0  ;;  %v1878_v46 = vadd.f32 %v1877_v19, %v7788_v50  ;;  %3001 = vrot.lane.b32.xlu0 %v2417_v59, %s7020_s12  ;;  %3005 = vrot.lane.b32.xlu1 %v2419_v30, %s7020_s12 }
 0x1af   : > { %v2247_v32 = vmax.f32 %v1876_v16, 0.0  ;;  %v2379_v29 = vmul.f32 %v2289_v49, %v2226_v41 }
 0x1b0   : > { %v2248_v54 = vmax.f32 %v1878_v46, 0.0  ;;  %v2380_v17 = vmul.f32 %v2293_v23, %v2227_v15 }
 0x1b1   : > { %v2400_v52 = vmul.f32 %v2289_v49, %v2247_v32 }
 0x1b2   : > { %v2401_v34 = vmul.f32 %v2293_v23, %v2248_v54  ;;  %3109 = vrot.lane.b32.xlu0 %v2419_v30, %s7021_s13  ;;  %3105 = vrot.lane.b32.xlu1 %v2417_v59, %s7021_s13  ;;  %v1914_v7 = vpop.f32.mrb[4].mxu1 }
 0x1b3   : > { %v7841_v3 = vpack.c.bf16 %v2400_v52, %v2379_v29  ;;  %v1915_v58 = vadd.f32 %v1914_v7, %v7775_v1  ;;  %v1916_v11 = vpop.f32.mrb[5].mxu1 }
 0x1b4   : > { %v7844_v4 = vpack.c.bf16 %v2401_v34, %v2380_v17  ;;  %v1917_v35 = vadd.f32 %v1916_v11, %v7775_v1  ;;  %v1918_v26 = vpop.f32.mrb[6].mxu1  ;;  %v2313_v34 = vrot.slane %v7885_v25, %v7773_v63 }
 0x1b5   : > { %v2228_v44 = vmax.f32 %v1915_v58, 0.0  ;;  %v1919_v57 = vadd.f32 %v1918_v26, %v7788_v50  ;;  %v1920_v31 = vpop.f32.mrb[7].mxu1 }
 0x1b6   : > { %v2229_v37 = vmax.f32 %v1917_v35, 0.0  ;;  %v1921_v40 = vadd.f32 %v1920_v31, %v7788_v50  ;;  %3209 = vrot.lane.b32.xlu0 %v2417_v59, %s7022_s14  ;;  %3213 = vrot.lane.b32.xlu1 %v2419_v30, %s7022_s14  ;;  %v2317_v35 = vrot.slane %v7885_v25, %v7786_v60 }
 0x1b7   : > { %v2249_v13 = vmax.f32 %v1919_v57, 0.0  ;;  %v2381_v20 = vmul.f32 %v2297_v48, %v2228_v44 }
 0x1b8   : > { %v2250_v14 = vmax.f32 %v1921_v40, 0.0  ;;  %v2382_v0 = vmul.f32 %v2301_v8, %v2229_v37 }
 0x1b9   : > { %v2402_v21 = vmul.f32 %v2297_v48, %v2249_v13 }
 0x1ba   : > { %v2403_v2 = vmul.f32 %v2301_v8, %v2250_v14  ;;  %2587 = vrot.lane.b32.xlu0 %v7806_v55, %s7016_s8  ;;  %2483 = vrot.lane.b32.xlu1 %v7806_v55, %s7015_s30 }
 0x1bb   : > { %v7861_v22 = vpack.c.bf16 %v2402_v21, %v2381_v20 }
 0x1bc   : > { %v7863_v28 = vpack.c.bf16 %v2403_v2, %v2382_v0  ;;  %v2325_v2 = vrot.slane %v7885_v25, %v2292_v12 }
 0x1bd   : > { %2444 = vst [vmem:[#allocation3 + $0x30] sm:$0xff] %v7861_v22 }
 0x1be   : > { %2795 = vrot.lane.b32.xlu0 %v7806_v55, %s7018_s10  ;;  %2691 = vrot.lane.b32.xlu1 %v7806_v55, %s7017_s9 }
 0x1c2   : > { %3003 = vrot.lane.b32.xlu0 %v7806_v55, %s7020_s12  ;;  %2899 = vrot.lane.b32.xlu1 %v7806_v55, %s7019_s11 }
 0x1c6   : > { %3211 = vrot.lane.b32.xlu0 %v7806_v55, %s7022_s14  ;;  %3107 = vrot.lane.b32.xlu1 %v7806_v55, %s7021_s13  ;;  %v7895_v55 = vld [vmem:[%s9451_s3 + $0x4] ss:$8 sps:$4 sm:$0xff]  }
 0x1c7   : > { %6300 = vmatprep.mubr.msk.bf16.mxu1 %vm3548_vm12, %v7895_v55  ;;  %6302 = vmatprep.mubr.msk.bf16.mxu0 %vm3548_vm12, %v7895_v55 }
 0x1ca   : > { %2489 = vrot.lane.b32.xlu0 %v7841_v3, %s7015_s30  ;;  %2487 = vrot.lane.b32.xlu1 %v7808_v42, %s7015_s30  ;;  %v1957_v9 = vpop.f32.mrb[8].mxu0 }
 0x1cb   : > { %v1958_v61 = vadd.f32 %v1957_v9, %v7775_v1  ;;  %v1959_v43 = vpop.f32.mrb[9].mxu0 }
 0x1cc   : > { %v1960_v45 = vadd.f32 %v1959_v43, %v7775_v1  ;;  %v1961_v6 = vpop.f32.mrb[10].mxu0 }
 0x1cd   : > { %v2230_v51 = vmax.f32 %v1958_v61, 0.0  ;;  %v1962_v59 = vadd.f32 %v1961_v6, %v7788_v50  ;;  %v1963_v30 = vpop.f32.mrb[11].mxu0 }
 0x1ce   : > { %v2231_v27 = vmax.f32 %v1960_v45, 0.0  ;;  %v1964_v36 = vadd.f32 %v1963_v30, %v7788_v50  ;;  %2593 = vrot.lane.b32.xlu0 %v7841_v3, %s7016_s8  ;;  %2591 = vrot.lane.b32.xlu1 %v7808_v42, %s7016_s8 }
 0x1cf   : > { %v2251_v39 = vmax.f32 %v1962_v59, 0.0  ;;  %v2383_v41 = vmul.f32 %v2305_v18, %v2230_v51 }
 0x1d0   : > { %v2252_v10 = vmax.f32 %v1964_v36, 0.0  ;;  %v2384_v16 = vmul.f32 %v2309_v33, %v2231_v27 }
 0x1d1   : > { %v2404_v49 = vmul.f32 %v2305_v18, %v2251_v39 }
 0x1d2   : > { %v2405_v19 = vmul.f32 %v2309_v33, %v2252_v10  ;;  %2493 = vrot.lane.b32.xlu0 %v7861_v22, %s7015_s30  ;;  %2695 = vrot.lane.b32.xlu1 %v7808_v42, %s7017_s9  ;;  %v2000_v15 = vpop.f32.mrb[8].mxu1 }
 0x1d3   : > { %v7912_v23 = vpack.c.bf16 %v2404_v49, %v2383_v41  ;;  %v2001_v46 = vadd.f32 %v2000_v15, %v7775_v1  ;;  %v2002_v32 = vpop.f32.mrb[9].mxu1  ;;  %v2329_v41 = vrot.slane %v7885_v25, %v2296_v53  ;;  %v2333_v15 = vrot.slane %v7885_v25, %v2300_v56 }
 0x1d4   : > { %v7915_v54 = vpack.c.bf16 %v2405_v19, %v2384_v16  ;;  %v2003_v29 = vadd.f32 %v2002_v32, %v7775_v1  ;;  %v2004_v52 = vpop.f32.mrb[10].mxu1 }
 0x1d5   : > { %2446 = vst [vmem:[#allocation3 + $0x40] sm:$0xff] %v7912_v23  ;;  %v2232_v17 = vmax.f32 %v2001_v46, 0.0  ;;  %v2005_v7 = vadd.f32 %v2004_v52, %v7788_v50  ;;  %v2006_v58 = vpop.f32.mrb[11].mxu1 }
 0x1d6   : > { %v2233_v11 = vmax.f32 %v2003_v29, 0.0  ;;  %v2007_v26 = vadd.f32 %v2006_v58, %v7788_v50  ;;  %2697 = vrot.lane.b32.xlu0 %v7841_v3, %s7017_s9  ;;  %2799 = vrot.lane.b32.xlu1 %v7808_v42, %s7018_s10 }
 0x1d7   : > { %v2253_v44 = vmax.f32 %v2005_v7, 0.0  ;;  %v2385_v57 = vmul.f32 %v2313_v34, %v2232_v17 }
 0x1d8   : > { %v2254_v48 = vmax.f32 %v2007_v26, 0.0  ;;  %v2386_v37 = vmul.f32 %v2317_v35, %v2233_v11 }
 0x1d9   : > { %v2406_v31 = vmul.f32 %v2313_v34, %v2253_v44 }
 0x1da   : > { %v2407_v8 = vmul.f32 %v2317_v35, %v2254_v48  ;;  %2597 = vrot.lane.b32.xlu0 %v7861_v22, %s7016_s8  ;;  %2903 = vrot.lane.b32.xlu1 %v7808_v42, %s7019_s11  ;;  %v8022_v48 = vld [vmem:[%s9453_s5 + $0x10] sm:$0x1f] }
 0x1db   : > { %v7933_v40 = vpack.c.bf16 %v2406_v31, %v2385_v57 }
 0x1dc   : > { %v7935_v13 = vpack.c.bf16 %v2407_v8, %v2386_v37 }
 0x1dd   : > { %2448 = vst [vmem:[#allocation3 + $0x50] sm:$0xff] %v7933_v40 }
 0x1de   : > { %2449 = vst [vmem:[#allocation3 + $0x58] sm:$0xff] %v7935_v13  ;;  %2801 = vrot.lane.b32.xlu0 %v7841_v3, %s7018_s10  ;;  %3007 = vrot.lane.b32.xlu1 %v7808_v42, %s7020_s12 }
 0x1e2   : > { %2701 = vrot.lane.b32.xlu0 %v7861_v22, %s7017_s9  ;;  %3111 = vrot.lane.b32.xlu1 %v7808_v42, %s7021_s13 }
 0x1e6   : > { %2905 = vrot.lane.b32.xlu0 %v7841_v3, %s7019_s11  ;;  %3215 = vrot.lane.b32.xlu1 %v7808_v42, %s7022_s14  ;;  %v2321_v42 = vrot.slane %v7885_v25, %v7821_v47 }
 0x1ea   : > { %2805 = vrot.lane.b32.xlu0 %v7861_v22, %s7018_s10  ;;  %2491 = vrot.lane.b32.xlu1 %v7844_v4, %s7015_s30  ;;  %v2043_v14 = vpop.f32.mrb[12].mxu0 }
 0x1eb   : > { %v2044_v20 = vadd.f32 %v2043_v14, %v7775_v1  ;;  %v2045_v21 = vpop.f32.mrb[13].mxu0 }
 0x1ec   : > { %v2046_v0 = vadd.f32 %v2045_v21, %v7775_v1  ;;  %v2047_v9 = vpop.f32.mrb[14].mxu0 }
 0x1ed   : > { %v2234_v61 = vmax.f32 %v2044_v20, 0.0  ;;  %v2048_v43 = vadd.f32 %v2047_v9, %v7788_v50  ;;  %v2049_v45 = vpop.f32.mrb[15].mxu0  ;;  %v2337_v20 = vrot.slane %v8022_v48, %v7770_v38  ;;  %v2341_v9 = vrot.slane %v8022_v48, %v7783_v62 }
 0x1ee   : > { %v2235_v6 = vmax.f32 %v2046_v0, 0.0  ;;  %v2050_v51 = vadd.f32 %v2049_v45, %v7788_v50  ;;  %3009 = vrot.lane.b32.xlu0 %v7841_v3, %s7020_s12  ;;  %2595 = vrot.lane.b32.xlu1 %v7844_v4, %s7016_s8 }
 0x1ef   : > { %v2255_v18 = vmax.f32 %v2048_v43, 0.0  ;;  %v2387_v30 = vmul.f32 %v2321_v42, %v2234_v61 }
 0x1f0   : > { %v2388_v59 = vmul.f32 %v2325_v2, %v2235_v6  ;;  %v2256_v12 = vmax.f32 %v2050_v51, 0.0 }
 0x1f1   : > { %v2408_v27 = vmul.f32 %v2321_v42, %v2255_v18 }
 0x1f2   : > { %v2409_v33 = vmul.f32 %v2325_v2, %v2256_v12  ;;  %2909 = vrot.lane.b32.xlu0 %v7861_v22, %s7019_s11  ;;  %2699 = vrot.lane.b32.xlu1 %v7844_v4, %s7017_s9  ;;  %v2086_v36 = vpop.f32.mrb[12].mxu1 }
 0x1f3   : > { %v7972_v39 = vpack.c.bf16 %v2408_v27, %v2387_v30  ;;  %v2087_v10 = vadd.f32 %v2086_v36, %v7775_v1  ;;  %v2088_v49 = vpop.f32.mrb[13].mxu1 }
 0x1f4   : > { %v7978_v16 = vpack.c.bf16 %v2409_v33, %v2388_v59  ;;  %v2089_v19 = vadd.f32 %v2088_v49, %v7775_v1  ;;  %v2090_v46 = vpop.f32.mrb[14].mxu1 }
 0x1f5   : > { %2450 = vst [vmem:[#allocation3 + $0x60] sm:$0xff] %v7972_v39  ;;  %v2236_v32 = vmax.f32 %v2087_v10, 0.0  ;;  %v2091_v29 = vadd.f32 %v2090_v46, %v7788_v50  ;;  %v2092_v52 = vpop.f32.mrb[15].mxu1 }
 0x1f6   : > { %2451 = vst [vmem:[#allocation3 + $0x68] sm:$0xff] %v7978_v16  ;;  %v2237_v17 = vmax.f32 %v2089_v19, 0.0  ;;  %v2093_v53 = vadd.f32 %v2092_v52, %v7788_v50  ;;  %3113 = vrot.lane.b32.xlu0 %v7841_v3, %s7021_s13  ;;  %2803 = vrot.lane.b32.xlu1 %v7844_v4, %s7018_s10  ;;  %v2349_v52 = vrot.slane %v8022_v48, %v7786_v60 }
 0x1f7   : > { %v2389_v24 = vmul.f32 %v2329_v41, %v2236_v32  ;;  %v2257_v56 = vmax.f32 %v2091_v29, 0.0 }
 0x1f8   : > { %v2390_v25 = vmul.f32 %v2333_v15, %v2237_v17  ;;  %v2258_v34 = vmax.f32 %v2093_v53, 0.0 }
 0x1f9   : > { %v2410_v7 = vmul.f32 %v2329_v41, %v2257_v56 }
 0x1fa   : > { %v2411_v58 = vmul.f32 %v2333_v15, %v2258_v34  ;;  %3013 = vrot.lane.b32.xlu0 %v7861_v22, %s7020_s12  ;;  %2907 = vrot.lane.b32.xlu1 %v7844_v4, %s7019_s11  ;;  %v2345_v15 = vrot.slane %v8022_v48, %v7773_v63 }
 0x1fb   : > { %v7996_v11 = vpack.c.bf16 %v2410_v7, %v2389_v24 }
 0x1fc   : > { %v7998_v35 = vpack.c.bf16 %v2411_v58, %v2390_v25 }
 0x1fd   : > { %2452 = vst [vmem:[#allocation3 + $0x70] sm:$0xff] %v7996_v11 }
 0x1fe   : > { %2453 = vst [vmem:[#allocation3 + $0x78] sm:$0xff] %v7998_v35  ;;  %3217 = vrot.lane.b32.xlu0 %v7841_v3, %s7022_s14  ;;  %3011 = vrot.lane.b32.xlu1 %v7844_v4, %s7020_s12 }
 0x202   : > { %3117 = vrot.lane.b32.xlu0 %v7861_v22, %s7021_s13  ;;  %3115 = vrot.lane.b32.xlu1 %v7844_v4, %s7021_s13 }
 0x206   : > { %3221 = vrot.lane.b32.xlu0 %v7861_v22, %s7022_s14  ;;  %3219 = vrot.lane.b32.xlu1 %v7844_v4, %s7022_s14 }
 0x20a   : > { %2497 = vrot.lane.b32.xlu0 %v7912_v23, %s7015_s30  ;;  %2495 = vrot.lane.b32.xlu1 %v7863_v28, %s7015_s30  ;;  %v2129_v26 = vpop.f32.mrb[16].mxu0 }
 0x20b   : > { %v2130_v44 = vadd.f32 %v2129_v26, %v7775_v1  ;;  %v2131_v57 = vpop.f32.mrb[17].mxu0 }
 0x20c   : > { %v8024_v31 = vpop.permute.xlu0 %2485  ;;  %v2132_v22 = vadd.f32 %v2131_v57, %v7775_v1  ;;  %v8027_v37 = vpop.permute.xlu1 %2481 }
 0x20d   : > { %v2133_v8 = vpop.f32.mrb[18].mxu0  ;;  %v2238_v14 = vmax.f32 %v2130_v44, 0.0 }
 0x20e   : > { %v2134_v21 = vadd.f32 %v2133_v8, %v7788_v50  ;;  %v2135_v0 = vpop.f32.mrb[19].mxu0  ;;  %2601 = vrot.lane.b32.xlu0 %v7912_v23, %s7016_s8  ;;  %2599 = vrot.lane.b32.xlu1 %v7863_v28, %s7016_s8  ;;  %v2239_v2 = vmax.f32 %v2132_v22, 0.0 }
 0x20f   : > { %v2136_v61 = vadd.f32 %v2135_v0, %v7788_v50  ;;  %v2391_v6 = vmul.f32 %v2337_v20, %v2238_v14 }
 0x210   : > { %v2259_v42 = vmax.f32 %v2134_v21, 0.0  ;;  %v8039_v43 = vpop.permute.xlu0 %2585  ;;  %v8041_v45 = vpop.permute.xlu1 %2589  ;;  %v2392_v59 = vmul.f32 %v2341_v9, %v2239_v2 }
 0x211   : > { %v2260_v38 = vmax.f32 %v2136_v61, 0.0 }
 0x212   : > { %v2412_v51 = vmul.f32 %v2337_v20, %v2259_v42  ;;  %2501 = vrot.lane.b32.xlu0 %v7933_v40, %s7015_s30  ;;  %2703 = vrot.lane.b32.xlu1 %v7863_v28, %s7017_s9  ;;  %v2172_v18 = vpop.f32.mrb[16].mxu1 }
 0x213   : > { %v2413_v12 = vmul.f32 %v2341_v9, %v2260_v38  ;;  %v2173_v62 = vadd.f32 %v2172_v18, %v7775_v1  ;;  %v2174_v30 = vpop.f32.mrb[17].mxu1  ;;  %v2353_v9 = vrot.slane %v8022_v48, %v7821_v47 }
 0x214   : > { %v8048_v27 = vpack.c.bf16 %v2412_v51, %v2391_v6  ;;  %v2175_v33 = vadd.f32 %v2174_v30, %v7775_v1  ;;  %v8051_v36 = vpop.permute.xlu0 %2693  ;;  %v8053_v10 = vpop.permute.xlu1 %2689 }
 0x215   : > { %v8055_v41 = vpack.c.bf16 %v2413_v12, %v2392_v59  ;;  %v2176_v49 = vpop.f32.mrb[18].mxu1  ;;  %v2240_v19 = vmax.f32 %v2173_v62, 0.0 }
 0x216   : > { %2454 = vst [vmem:[#allocation3 + $0x80] sm:$0xff] %v8048_v27  ;;  %v2177_v46 = vadd.f32 %v2176_v49, %v7788_v50  ;;  %v2178_v32 = vpop.f32.mrb[19].mxu1  ;;  %2705 = vrot.lane.b32.xlu0 %v7912_v23, %s7017_s9  ;;  %2807 = vrot.lane.b32.xlu1 %v7863_v28, %s7018_s10  ;;  %v2241_v29 = vmax.f32 %v2175_v33, 0.0 }
 0x217   : > { %2455 = vst [vmem:[#allocation3 + $0x88] sm:$0xff] %v8055_v41  ;;  %v2179_v17 = vadd.f32 %v2178_v32, %v7788_v50  ;;  %v2393_v25 = vmul.f32 %v2345_v15, %v2240_v19 }
 0x218   : > { %v2261_v53 = vmax.f32 %v2177_v46, 0.0  ;;  %v2794_v24 = vpop.permute.xlu0 %2793  ;;  %v8069_v63 = vpop.permute.xlu1 %2797  ;;  %v2394_v7 = vmul.f32 %v2349_v52, %v2241_v29 }
 0x219   : > { %v2262_v56 = vmax.f32 %v2179_v17, 0.0 }
 0x21a   : > { %v2414_v34 = vmul.f32 %v2345_v15, %v2261_v53  ;;  %2605 = vrot.lane.b32.xlu0 %v7933_v40, %s7016_s8  ;;  %2911 = vrot.lane.b32.xlu1 %v7863_v28, %s7019_s11 }
 0x21b   : > { %v2415_v58 = vmul.f32 %v2349_v52, %v2262_v56 }
 0x21c   : > { %v8075_v26 = vpack.c.bf16 %v2414_v34, %v2393_v25  ;;  %v8077_v60 = vpop.permute.xlu0 %2901  ;;  %v2898_v44 = vpop.permute.xlu1 %2897 }
 0x21d   : > { %v8079_v57 = vpack.c.bf16 %v2415_v58, %v2394_v7 }
 0x21e   : > { %2456 = vst [vmem:[#allocation3 + $0x90] sm:$0xff] %v8075_v26  ;;  %2809 = vrot.lane.b32.xlu0 %v7912_v23, %s7018_s10  ;;  %3015 = vrot.lane.b32.xlu1 %v7863_v28, %s7020_s12  ;;  %v2215_v22 = vpop.f32.mrb[20].mxu0 }
 0x21f   : > { %2457 = vst [vmem:[#allocation3 + $0x98] sm:$0xff] %v8079_v57  ;;  %v2216_v8 = vadd.f32 %v2215_v22, %v7775_v1  ;;  %v6791_v14 = vpop.f32.mrb[21].mxu0 }
 0x220   : > { %v3002_v20 = vpop.permute.xlu0 %3001  ;;  %v8088_v21 = vpop.permute.xlu1 %3005 }
 0x221   : > { %v2218_v0 = vpop.f32.mrb[22].mxu0  ;;  %v2242_v2 = vmax.f32 %v2216_v8, 0.0 }
 0x222   : > { %v2219_v61 = vadd.f32 %v2218_v0, %v7788_v50  ;;  %2709 = vrot.lane.b32.xlu0 %v7933_v40, %s7017_s9  ;;  %3119 = vrot.lane.b32.xlu1 %v7863_v28, %s7021_s13  ;;  %v6792_v42 = vpop.f32.mrb[23].mxu0 }
 0x223   : > { %v2395_v51 = vmul.f32 %v2353_v9, %v2242_v2 }
 0x224   : > { %v2263_v38 = vmax.f32 %v2219_v61, 0.0  ;;  %v8097_v1 = vpop.permute.xlu0 %3109  ;;  %v3106_v6 = vpop.permute.xlu1 %3105 }
 0x226   : > { %v2416_v18 = vmul.f32 %v2353_v9, %v2263_v38  ;;  %2913 = vrot.lane.b32.xlu0 %v7912_v23, %s7019_s11  ;;  %3223 = vrot.lane.b32.xlu1 %v7863_v28, %s7022_s14 }
 0x228   : > { %v8103_v50 = vpack.c.bf16 %v2416_v18, %v2395_v51  ;;  %v3210_v47 = vpop.permute.xlu0 %3209  ;;  %v8105_v48 = vpop.permute.xlu1 %3213 }
 0x22a   : > { %2813 = vrot.lane.b32.xlu0 %v7933_v40, %s7018_s10  ;;  %2499 = vrot.lane.b32.xlu1 %v7915_v54, %s7015_s30  ;;  %2459 = vst.msk [vmem:[#allocation3 + $0xa0] sm:$0xff] %vm2458_vm13, %v8103_v50 }
 0x22c   : > { %v2588_v59 = vpop.permute.xlu0 %2587  ;;  %v2484_v12 = vpop.permute.xlu1 %2483 }
 0x22d   : > { %v2627_v62 = vsel %vm458_vm2, %v8039_v43, %v2588_v59  ;;  %v2628_v30 = vsel %vm458_vm2, %v2588_v59, %v8041_v45  ;;  %v2523_v33 = vsel %vm360_vm1, %v8027_v37, %v2484_v12  ;;  %v2524_v49 = vsel %vm360_vm1, %v2484_v12, %v8024_v31 }
 0x22e   : > { %3017 = vrot.lane.b32.xlu0 %v7912_v23, %s7020_s12  ;;  %2603 = vrot.lane.b32.xlu1 %v7915_v54, %s7016_s8 }
 0x22f   : > { %3557 = vmatprep.subr.bf16.mxu1 %v2524_v49 }
 0x230   : > { %v2796_v19 = vpop.permute.xlu0 %2795  ;;  %v2692_v15 = vpop.permute.xlu1 %2691  ;;  %3558 = vmatpush1.bf16.msra.mxu1 %v2523_v33 }
 0x231   : > { %v2835_v43 = vsel %vm654_vm4, %v2794_v24, %v2796_v19  ;;  %v2836_v46 = vsel %vm654_vm4, %v2796_v19, %v8069_v63  ;;  %v2731_v37 = vsel %vm556_vm3, %v8053_v10, %v2692_v15  ;;  %v2732_v32 = vsel %vm556_vm3, %v2692_v15, %v8051_v36  ;;  %3559 = vmatprep.subr.bf16.mxu1 %v2628_v30 }
 0x232   : > { %2917 = vrot.lane.b32.xlu0 %v7933_v40, %s7019_s11  ;;  %2707 = vrot.lane.b32.xlu1 %v7915_v54, %s7017_s9 }
 0x234   : > { %v3004_v29 = vpop.permute.xlu0 %3003  ;;  %v2900_v52 = vpop.permute.xlu1 %2899  ;;  %3560 = vmatpush1.bf16.msra.mxu1 %v2627_v62 }
 0x235   : > { %v3043_v17 = vsel %vm850_vm6, %v3002_v20, %v3004_v29  ;;  %v3044_v53 = vsel %vm850_vm6, %v3004_v29, %v8088_v21  ;;  %v2939_v10 = vsel %vm752_vm5, %v2898_v44, %v2900_v52  ;;  %v2940_v24 = vsel %vm752_vm5, %v2900_v52, %v8077_v60  ;;  %3561 = vmatprep.subr.bf16.mxu1 %v2732_v32 }
 0x236   : > { %3121 = vrot.lane.b32.xlu0 %v7912_v23, %s7021_s13  ;;  %2811 = vrot.lane.b32.xlu1 %v7915_v54, %s7018_s10 }
 0x238   : > { %v3212_v56 = vpop.permute.xlu0 %3211  ;;  %v3108_v25 = vpop.permute.xlu1 %3107  ;;  %3562 = vmatpush1.bf16.msra.mxu1 %v2731_v37 }
 0x239   : > { %v3251_v34 = vsel %vm1046_vm9, %v3210_v47, %v3212_v56  ;;  %v3252_v7 = vsel %vm1046_vm9, %v3212_v56, %v8105_v48  ;;  %v3147_v58 = vsel %vm948_vm7, %v3106_v6, %v3108_v25  ;;  %v3148_v44 = vsel %vm948_vm7, %v3108_v25, %v8097_v1  ;;  %3563 = vmatprep.subr.bf16.mxu1 %v2836_v46 }
 0x23a   : > { %3021 = vrot.lane.b32.xlu0 %v7933_v40, %s7020_s12  ;;  %2915 = vrot.lane.b32.xlu1 %v7915_v54, %s7019_s11 }
 0x23c   : > { %v8156_v22 = vpop.permute.xlu0 %2489  ;;  %v2488_v8 = vpop.permute.xlu1 %2487  ;;  %3564 = vmatpush1.bf16.msra.mxu1 %v2835_v43 }
 0x23d   : > { %v2525_v14 = vsel %vm360_vm1, %v8024_v31, %v2488_v8  ;;  %v2526_v20 = vsel %vm360_vm1, %v2488_v8, %v8156_v22  ;;  %3565 = vmatprep.subr.bf16.mxu1 %v2940_v24 }
 0x23e   : > { %3225 = vrot.lane.b32.xlu0 %v7912_v23, %s7022_s14  ;;  %3019 = vrot.lane.b32.xlu1 %v7915_v54, %s7020_s12 }
 0x23f   : > { %3610 = vmatprep.subr.bf16.mxu0 %v2526_v20 }
 0x240   : > { %v8166_v0 = vpop.permute.xlu0 %2593  ;;  %v2592_v2 = vpop.permute.xlu1 %2591  ;;  %3566 = vmatpush1.bf16.msra.mxu1 %v2939_v10  ;;  %3611 = vmatpush1.bf16.msra.mxu0 %v2525_v14 }
 0x241   : > { %v2629_v9 = vsel %vm458_vm2, %v8041_v45, %v2592_v2  ;;  %v2630_v31 = vsel %vm458_vm2, %v2592_v2, %v8166_v0  ;;  %3567 = vmatprep.subr.bf16.mxu1 %v3044_v53 }
 0x242   : > { %3125 = vrot.lane.b32.xlu0 %v7933_v40, %s7021_s13  ;;  %3123 = vrot.lane.b32.xlu1 %v7915_v54, %s7021_s13 }
 0x243   : > { %3612 = vmatprep.subr.bf16.mxu0 %v2630_v31 }
 0x244   : > { %v8176_v23 = vpop.permute.xlu0 %2493  ;;  %v2696_v61 = vpop.permute.xlu1 %2695  ;;  %3568 = vmatpush1.bf16.msra.mxu1 %v3043_v17  ;;  %3613 = vmatpush1.bf16.msra.mxu0 %v2629_v9 }
 0x245   : > { %v2733_v42 = vsel %vm556_vm3, %v8051_v36, %v2696_v61  ;;  %3569 = vmatprep.subr.bf16.mxu1 %v3148_v44 }
 0x246   : > { %3229 = vrot.lane.b32.xlu0 %v7933_v40, %s7022_s14  ;;  %3227 = vrot.lane.b32.xlu1 %v7915_v54, %s7022_s14  ;;  %v8197_v40 = vld [vmem:[%s9451_s3] ss:$8 sps:$4 sm:$0xff]  }
 0x248   : > { %v8184_v45 = vpop.permute.xlu0 %2697  ;;  %v2800_v38 = vpop.permute.xlu1 %2799  ;;  %3570 = vmatpush1.bf16.msra.mxu1 %v3147_v58 }
 0x249   : > { %v2734_v6 = vsel %vm556_vm3, %v2696_v61, %v8184_v45  ;;  %v2837_v51 = vsel %vm654_vm4, %v8069_v63, %v2800_v38  ;;  %3571 = vmatprep.subr.bf16.mxu1 %v3252_v7  ;;  %v8204_v63 = vld [vmem:[%s9451_s3 + $0x14] ss:$8 sps:$4 sm:$0xff]  }
 0x24a   : > { %2505 = vrot.lane.b32.xlu0 %v7972_v39, %s7015_s30  ;;  %2503 = vrot.lane.b32.xlu1 %v7935_v13, %s7015_s30 }
 0x24b   : > { %3614 = vmatprep.subr.bf16.mxu0 %v2734_v6  ;;  %v3323_v6 = vld [vmem:[#allocation3 + $0x30] sm:$0xff] }
 0x24c   : > { %v8199_v36 = vpop.permute.xlu0 %2597  ;;  %v2904_v18 = vpop.permute.xlu1 %2903  ;;  %3572 = vmatpush1.bf16.msra.mxu1 %v3251_v34  ;;  %3615 = vmatpush1.bf16.msra.mxu0 %v2733_v42 }
 0x24d   : > { %v2941_v47 = vsel %vm752_vm5, %v8077_v60, %v2904_v18  ;;  %3661 = vmatprep.subr.bf16.mxu1 %v7844_v4  ;;  %v8227_v60 = vld [vmem:[%s9451_s3 + $0x10] ss:$8 sps:$4 sm:$0xff]  }
 0x24e   : > { %2609 = vrot.lane.b32.xlu0 %v7972_v39, %s7016_s8  ;;  %2607 = vrot.lane.b32.xlu1 %v7935_v13, %s7016_s8 }
 0x24f   : > { %3588 = vmatmul.mubr.bf16.vlgmr.msra.gmra.mrb[20].mxu1 %v8197_v40 }
 0x250   : > { %v2802_v59 = vpop.permute.xlu0 %2801  ;;  %v3008_v12 = vpop.permute.xlu1 %3007  ;;  %3662 = vmatpush1.bf16.msra.mxu1 %v7841_v3  ;;  %6301 = vmatprep.mubr.msk.bf16.mxu1 %vm3548_vm12, %v8204_v63 }
 0x251   : > { %v2838_v62 = vsel %vm654_vm4, %v2800_v38, %v2802_v59  ;;  %v3045_v4 = vsel %vm850_vm6, %v8088_v21, %v3008_v12 }
 0x252   : > { %2509 = vrot.lane.b32.xlu0 %v7996_v11, %s7015_s30  ;;  %2711 = vrot.lane.b32.xlu1 %v7935_v13, %s7017_s9 }
 0x253   : > { %3616 = vmatprep.subr.bf16.mxu0 %v2838_v62 }
 0x254   : > { %v8229_v3 = vpop.permute.xlu0 %2701  ;;  %v3112_v30 = vpop.permute.xlu1 %3111  ;;  %3617 = vmatpush1.bf16.msra.mxu0 %v2837_v51 }
 0x255   : > { %v3149_v33 = vsel %vm948_vm7, %v8097_v1, %v3112_v30 }
 0x256   : > { %2713 = vrot.lane.b32.xlu0 %v7972_v39, %s7017_s9  ;;  %2815 = vrot.lane.b32.xlu1 %v7935_v13, %s7018_s10 }
 0x257   : > { %3598 = vmatmul.mubr.bf16.gmra.mrb[24].mxu1 %v8227_v60 }
 0x258   : > { %v2906_v21 = vpop.permute.xlu0 %2905  ;;  %v3216_v49 = vpop.permute.xlu1 %3215  ;;  %6304 = vmatprep.mubr.msk.bf16.mxu1 %vm3548_vm12, %v7895_v55 }
 0x259   : > { %v2942_v19 = vsel %vm752_vm5, %v2904_v18, %v2906_v21  ;;  %v3253_v15 = vsel %vm1046_vm9, %v8105_v48, %v3216_v49 }
 0x25a   : > { %2613 = vrot.lane.b32.xlu0 %v7996_v11, %s7016_s8  ;;  %2919 = vrot.lane.b32.xlu1 %v7935_v13, %s7019_s11 }
 0x25b   : > { %3618 = vmatprep.subr.bf16.mxu0 %v2942_v19 }
 0x25c   : > { %v8247_v1 = vpop.permute.xlu0 %2805  ;;  %v2492_v43 = vpop.permute.xlu1 %2491  ;;  %3619 = vmatpush1.bf16.msra.mxu0 %v2941_v47 }
 0x25d   : > { %v2527_v46 = vsel %vm360_vm1, %v8156_v22, %v2492_v43  ;;  %v2528_v37 = vsel %vm360_vm1, %v2492_v43, %v8176_v23 }
 0x25e   : > { %2817 = vrot.lane.b32.xlu0 %v7972_v39, %s7018_s10  ;;  %3023 = vrot.lane.b32.xlu1 %v7935_v13, %s7020_s12 }
 0x25f   : > { %3663 = vmatprep.subr.bf16.mxu1 %v2528_v37 }
 0x260   : > { %v3010_v48 = vpop.permute.xlu0 %3009  ;;  %v2596_v32 = vpop.permute.xlu1 %2595  ;;  %3664 = vmatpush1.bf16.msra.mxu1 %v2527_v46 }
 0x261   : > { %v3046_v29 = vsel %vm850_vm6, %v3008_v12, %v3010_v48  ;;  %v2631_v52 = vsel %vm458_vm2, %v8166_v0, %v2596_v32  ;;  %v2632_v17 = vsel %vm458_vm2, %v2596_v32, %v8199_v36 }
 0x262   : > { %2717 = vrot.lane.b32.xlu0 %v7996_v11, %s7017_s9  ;;  %3127 = vrot.lane.b32.xlu1 %v7935_v13, %s7021_s13 }
 0x263   : > { %3620 = vmatprep.subr.bf16.mxu0 %v3046_v29  ;;  %3665 = vmatprep.subr.bf16.mxu1 %v2632_v17 }
 0x264   : > { %v8266_v53 = vpop.permute.xlu0 %2909  ;;  %v2700_v10 = vpop.permute.xlu1 %2699  ;;  %3621 = vmatpush1.bf16.msra.mxu0 %v3045_v4  ;;  %3666 = vmatpush1.bf16.msra.mxu1 %v2631_v52 }
 0x265   : > { %v2735_v24 = vsel %vm556_vm3, %v8184_v45, %v2700_v10  ;;  %v2736_v56 = vsel %vm556_vm3, %v2700_v10, %v8229_v3 }
 0x266   : > { %2921 = vrot.lane.b32.xlu0 %v7972_v39, %s7019_s11  ;;  %3231 = vrot.lane.b32.xlu1 %v7935_v13, %s7022_s14 }
 0x267   : > { %3667 = vmatprep.subr.bf16.mxu1 %v2736_v56 }
 0x268   : > { %v3114_v25 = vpop.permute.xlu0 %3113  ;;  %v2804_v34 = vpop.permute.xlu1 %2803  ;;  %3668 = vmatpush1.bf16.msra.mxu1 %v2735_v24 }
 0x269   : > { %v3150_v7 = vsel %vm948_vm7, %v3112_v30, %v3114_v25  ;;  %v2839_v58 = vsel %vm654_vm4, %v2802_v59, %v2804_v34  ;;  %v2840_v44 = vsel %vm654_vm4, %v2804_v34, %v8247_v1  ;;  %v3325_v30 = vld [vmem:[#allocation3 + $0x40] sm:$0xff] }
 0x26a   : > { %2821 = vrot.lane.b32.xlu0 %v7996_v11, %s7018_s10  ;;  %2507 = vrot.lane.b32.xlu1 %v7978_v16, %s7015_s30 }
 0x26b   : > { %3622 = vmatprep.subr.bf16.mxu0 %v3150_v7  ;;  %3669 = vmatprep.subr.bf16.mxu1 %v2840_v44 }
 0x26c   : > { %v8284_v13 = vpop.permute.xlu0 %3013  ;;  %v2908_v22 = vpop.permute.xlu1 %2907  ;;  %3623 = vmatpush1.bf16.msra.mxu0 %v3149_v33  ;;  %3670 = vmatpush1.bf16.msra.mxu1 %v2839_v58 }
 0x26d   : > { %v2943_v8 = vsel %vm752_vm5, %v2906_v21, %v2908_v22  ;;  %v2944_v14 = vsel %vm752_vm5, %v2908_v22, %v8266_v53 }
 0x26e   : > { %3025 = vrot.lane.b32.xlu0 %v7972_v39, %s7020_s12  ;;  %2611 = vrot.lane.b32.xlu1 %v7978_v16, %s7016_s8 }
 0x26f   : > { %3671 = vmatprep.subr.bf16.mxu1 %v2944_v14 }
 0x270   : > { %v3218_v20 = vpop.permute.xlu0 %3217  ;;  %v3012_v0 = vpop.permute.xlu1 %3011  ;;  %3672 = vmatpush1.bf16.msra.mxu1 %v2943_v8 }
 0x271   : > { %v3254_v2 = vsel %vm1046_vm9, %v3216_v49, %v3218_v20  ;;  %v3047_v9 = vsel %vm850_vm6, %v3010_v48, %v3012_v0  ;;  %v3048_v31 = vsel %vm850_vm6, %v3012_v0, %v8284_v13 }
 0x272   : > { %2925 = vrot.lane.b32.xlu0 %v7996_v11, %s7019_s11  ;;  %2715 = vrot.lane.b32.xlu1 %v7978_v16, %s7017_s9 }
 0x273   : > { %3624 = vmatprep.subr.bf16.mxu0 %v3254_v2  ;;  %3673 = vmatprep.subr.bf16.mxu1 %v3048_v31 }
 0x274   : > { %v8301_v61 = vpop.permute.xlu0 %3117  ;;  %v3116_v42 = vpop.permute.xlu1 %3115  ;;  %3625 = vmatpush1.bf16.msra.mxu0 %v3253_v15  ;;  %3674 = vmatpush1.bf16.msra.mxu1 %v3047_v9 }
 0x275   : > { %v3151_v45 = vsel %vm948_vm7, %v3114_v25, %v3116_v42  ;;  %v3152_v38 = vsel %vm948_vm7, %v3116_v42, %v8301_v61  ;;  %3714 = vmatprep.subr.bf16.mxu0 %v7863_v28 }
 0x276   : > { %3129 = vrot.lane.b32.xlu0 %v7972_v39, %s7021_s13  ;;  %2819 = vrot.lane.b32.xlu1 %v7978_v16, %s7018_s10 }
 0x277   : > { %3675 = vmatprep.subr.bf16.mxu1 %v3152_v38  ;;  %3641 = vmatmul.mubr.bf16.vlgmr.msra.gmra.mrb[24].mxu0 %v8197_v40 }
 0x278   : > { %v8312_v51 = vpop.permute.xlu0 %3221  ;;  %v3220_v18 = vpop.permute.xlu1 %3219  ;;  %3676 = vmatpush1.bf16.msra.mxu1 %v3151_v45  ;;  %3715 = vmatpush1.bf16.msra.mxu0 %v3323_v6 }
 0x279   : > { %v3255_v47 = vsel %vm1046_vm9, %v3218_v20, %v3220_v18  ;;  %v3256_v28 = vsel %vm1046_vm9, %v3220_v18, %v8312_v51  ;;  %6303 = vmatprep.mubr.msk.bf16.mxu0 %vm3548_vm12, %v8204_v63 }
 0x27a   : > { %3029 = vrot.lane.b32.xlu0 %v7996_v11, %s7020_s12  ;;  %2923 = vrot.lane.b32.xlu1 %v7978_v16, %s7019_s11 }
 0x27b   : > { %3677 = vmatprep.subr.bf16.mxu1 %v3256_v28 }
 0x27c   : > { %v8323_v59 = vpop.permute.xlu0 %2497  ;;  %v2496_v12 = vpop.permute.xlu1 %2495  ;;  %3678 = vmatpush1.bf16.msra.mxu1 %v3255_v47 }
 0x27d   : > { %v2529_v62 = vsel %vm360_vm1, %v8176_v23, %v2496_v12  ;;  %v2530_v4 = vsel %vm360_vm1, %v2496_v12, %v8323_v59  ;;  %3767 = vmatprep.subr.bf16.mxu1 %v7915_v54 }
 0x27e   : > { %3233 = vrot.lane.b32.xlu0 %v7972_v39, %s7022_s14  ;;  %3027 = vrot.lane.b32.xlu1 %v7978_v16, %s7020_s12 }
 0x27f   : > { %3716 = vmatprep.subr.bf16.mxu0 %v2530_v4  ;;  %3694 = vmatmul.mubr.bf16.vlgmr.msra.gmra.mrb[28].mxu1 %v8197_v40 }
 0x280   : > { %v8335_v33 = vpop.permute.xlu0 %2601  ;;  %v2600_v21 = vpop.permute.xlu1 %2599  ;;  %3717 = vmatpush1.bf16.msra.mxu0 %v2529_v62  ;;  %3768 = vmatpush1.bf16.msra.mxu1 %v3325_v30 }
 0x281   : > { %v2633_v23 = vsel %vm458_vm2, %v8199_v36, %v2600_v21  ;;  %v2634_v54 = vsel %vm458_vm2, %v2600_v21, %v8335_v33  ;;  %6305 = vmatprep.mubr.msk.bf16.mxu1 %vm3548_vm12, %v8204_v63  ;;  %3651 = vmatmul.mubr.bf16.gmra.mrb[28].mxu0 %v8227_v60 }
 0x282   : > { %3133 = vrot.lane.b32.xlu0 %v7996_v11, %s7021_s13  ;;  %3131 = vrot.lane.b32.xlu1 %v7978_v16, %s7021_s13 }
 0x283   : > { %3718 = vmatprep.subr.bf16.mxu0 %v2634_v54  ;;  %6306 = vmatprep.mubr.msk.bf16.mxu0 %vm3548_vm12, %v7895_v55  ;;  %v3327_v54 = vld [vmem:[#allocation3 + $0x50] sm:$0xff] }
 0x284   : > { %v8350_v39 = vpop.permute.xlu0 %2501  ;;  %v2704_v36 = vpop.permute.xlu1 %2703  ;;  %3719 = vmatpush1.bf16.msra.mxu0 %v2633_v23 }
 0x285   : > { %v2737_v49 = vsel %vm556_vm3, %v8229_v3, %v2704_v36 }
 0x286   : > { %3237 = vrot.lane.b32.xlu0 %v7996_v11, %s7022_s14  ;;  %3235 = vrot.lane.b32.xlu1 %v7978_v16, %s7022_s14 }
 0x287   : > { %3704 = vmatmul.mubr.bf16.gmra.mrb[32].mxu1 %v8227_v60 }
 0x288   : > { %v2706_v19 = vpop.permute.xlu0 %2705  ;;  %v2808_v15 = vpop.permute.xlu1 %2807  ;;  %6308 = vmatprep.mubr.msk.bf16.mxu1 %vm3548_vm12, %v7895_v55 }
 0x289   : > { %v2738_v43 = vsel %vm556_vm3, %v2704_v36, %v2706_v19  ;;  %v2841_v46 = vsel %vm654_vm4, %v8247_v1, %v2808_v15 }
 0x28a   : > { %2513 = vrot.lane.b32.xlu0 %v8048_v27, %s7015_s30  ;;  %2511 = vrot.lane.b32.xlu1 %v7998_v35, %s7015_s30 }
 0x28b   : > { %3720 = vmatprep.subr.bf16.mxu0 %v2738_v43 }
 0x28c   : > { %v8368_v16 = vpop.permute.xlu0 %2605  ;;  %v2912_v11 = vpop.permute.xlu1 %2911  ;;  %3721 = vmatpush1.bf16.msra.mxu0 %v2737_v49 }
 0x28d   : > { %v2945_v3 = vsel %vm752_vm5, %v8266_v53, %v2912_v11 }
 0x28e   : > { %2617 = vrot.lane.b32.xlu0 %v8048_v27, %s7016_s8  ;;  %2615 = vrot.lane.b32.xlu1 %v7998_v35, %s7016_s8 }
 0x290   : > { %v2810_v55 = vpop.permute.xlu0 %2809  ;;  %v3016_v1 = vpop.permute.xlu1 %3015 }
 0x291   : > { %v2842_v37 = vsel %vm654_vm4, %v2808_v15, %v2810_v55  ;;  %v3049_v48 = vsel %vm850_vm6, %v8284_v13, %v3016_v1 }
 0x292   : > { %2517 = vrot.lane.b32.xlu0 %v8075_v26, %s7015_s30  ;;  %2719 = vrot.lane.b32.xlu1 %v7998_v35, %s7017_s9 }
 0x293   : > { %3722 = vmatprep.subr.bf16.mxu0 %v2842_v37 }
 0x294   : > { %v8383_v32 = vpop.permute.xlu0 %2709  ;;  %v3120_v29 = vpop.permute.xlu1 %3119  ;;  %3723 = vmatpush1.bf16.msra.mxu0 %v2841_v46  ;;  %v3330_v46 = vld [vmem:[#allocation3 + $0x68] sm:$0xff] }
 0x295   : > { %v3153_v52 = vsel %vm948_vm7, %v8301_v61, %v3120_v29 }
 0x296   : > { %2721 = vrot.lane.b32.xlu0 %v8048_v27, %s7017_s9  ;;  %2823 = vrot.lane.b32.xlu1 %v7998_v35, %s7018_s10 }
 0x298   : > { %v2914_v17 = vpop.permute.xlu0 %2913  ;;  %v3224_v53 = vpop.permute.xlu1 %3223 }
 0x299   : > { %v2946_v10 = vsel %vm752_vm5, %v2912_v11, %v2914_v17  ;;  %v3257_v24 = vsel %vm1046_vm9, %v8312_v51, %v3224_v53 }
 0x29a   : > { %2621 = vrot.lane.b32.xlu0 %v8075_v26, %s7016_s8  ;;  %2927 = vrot.lane.b32.xlu1 %v7998_v35, %s7019_s11 }
 0x29b   : > { %3724 = vmatprep.subr.bf16.mxu0 %v2946_v10 }
 0x29c   : > { %v8398_v56 = vpop.permute.xlu0 %2813  ;;  %v2500_v25 = vpop.permute.xlu1 %2499  ;;  %3725 = vmatpush1.bf16.msra.mxu0 %v2945_v3 }
 0x29d   : > { %v2531_v34 = vsel %vm360_vm1, %v8323_v59, %v2500_v25  ;;  %v2532_v7 = vsel %vm360_vm1, %v2500_v25, %v8350_v39 }
 0x29e   : > { %2825 = vrot.lane.b32.xlu0 %v8048_v27, %s7018_s10  ;;  %3031 = vrot.lane.b32.xlu1 %v7998_v35, %s7020_s12 }
 0x29f   : > { %3769 = vmatprep.subr.bf16.mxu1 %v2532_v7 }
 0x2a0   : > { %v3018_v58 = vpop.permute.xlu0 %3017  ;;  %v2604_v44 = vpop.permute.xlu1 %2603  ;;  %3770 = vmatpush1.bf16.msra.mxu1 %v2531_v34 }
 0x2a1   : > { %v3050_v13 = vsel %vm850_vm6, %v3016_v1, %v3018_v58  ;;  %v2635_v22 = vsel %vm458_vm2, %v8335_v33, %v2604_v44  ;;  %v2636_v8 = vsel %vm458_vm2, %v2604_v44, %v8368_v16  ;;  %v3328_v33 = vld [vmem:[#allocation3 + $0x58] sm:$0xff]  ;;  %v3329_v1 = vld [vmem:[#allocation3 + $0x60] sm:$0xff] }
 0x2a2   : > { %2725 = vrot.lane.b32.xlu0 %v8075_v26, %s7017_s9  ;;  %2515 = vrot.lane.b32.xlu1 %v8055_v41, %s7015_s30 }
 0x2a3   : > { %3726 = vmatprep.subr.bf16.mxu0 %v3050_v13  ;;  %3771 = vmatprep.subr.bf16.mxu1 %v2636_v8 }
 0x2a4   : > { %v8417_v14 = vpop.permute.xlu0 %2917  ;;  %v2708_v20 = vpop.permute.xlu1 %2707  ;;  %3727 = vmatpush1.bf16.msra.mxu0 %v3049_v48  ;;  %3772 = vmatpush1.bf16.msra.mxu1 %v2635_v22 }
 0x2a5   : > { %v2739_v0 = vsel %vm556_vm3, %v2706_v19, %v2708_v20  ;;  %v2740_v2 = vsel %vm556_vm3, %v2708_v20, %v8383_v32 }
 0x2a6   : > { %2929 = vrot.lane.b32.xlu0 %v8048_v27, %s7019_s11  ;;  %2619 = vrot.lane.b32.xlu1 %v8055_v41, %s7016_s8 }
 0x2a7   : > { %3773 = vmatprep.subr.bf16.mxu1 %v2740_v2  ;;  %v7003_v2 = vld [vmem:[#allocation3 + $0x98] sm:$0xff] }
 0x2a8   : > { %v3122_v9 = vpop.permute.xlu0 %3121  ;;  %v2812_v31 = vpop.permute.xlu1 %2811  ;;  %3774 = vmatpush1.bf16.msra.mxu1 %v2739_v0 }
 0x2a9   : > { %v3154_v61 = vsel %vm948_vm7, %v3120_v29, %v3122_v9  ;;  %v2843_v42 = vsel %vm654_vm4, %v2810_v55, %v2812_v31  ;;  %v2844_v45 = vsel %vm654_vm4, %v2812_v31, %v8398_v56  ;;  %v7001_v55 = vld [vmem:[#allocation3 + $0x78] sm:$0xff] }
 0x2aa   : > { %2829 = vrot.lane.b32.xlu0 %v8075_v26, %s7018_s10  ;;  %2723 = vrot.lane.b32.xlu1 %v8055_v41, %s7017_s9 }
 0x2ab   : > { %3728 = vmatprep.subr.bf16.mxu0 %v3154_v61  ;;  %3775 = vmatprep.subr.bf16.mxu1 %v2844_v45 }
 0x2ac   : > { %v8434_v38 = vpop.permute.xlu0 %3021  ;;  %v2916_v6 = vpop.permute.xlu1 %2915  ;;  %3729 = vmatpush1.bf16.msra.mxu0 %v3153_v52  ;;  %3776 = vmatpush1.bf16.msra.mxu1 %v2843_v42 }
 0x2ad   : > { %v2947_v51 = vsel %vm752_vm5, %v2914_v17, %v2916_v6  ;;  %v2948_v18 = vsel %vm752_vm5, %v2916_v6, %v8417_v14 }
 0x2ae   : > { %3033 = vrot.lane.b32.xlu0 %v8048_v27, %s7020_s12  ;;  %2827 = vrot.lane.b32.xlu1 %v8055_v41, %s7018_s10 }
 0x2af   : > { %3777 = vmatprep.subr.bf16.mxu1 %v2948_v18 }
 0x2b0   : > { %v3226_v47 = vpop.permute.xlu0 %3225  ;;  %v3020_v28 = vpop.permute.xlu1 %3019  ;;  %3778 = vmatpush1.bf16.msra.mxu1 %v2947_v51 }
 0x2b1   : > { %v3258_v59 = vsel %vm1046_vm9, %v3224_v53, %v3226_v47  ;;  %v3051_v12 = vsel %vm850_vm6, %v3018_v58, %v3020_v28  ;;  %v3052_v62 = vsel %vm850_vm6, %v3020_v28, %v8434_v38 }
 0x2b2   : > { %2933 = vrot.lane.b32.xlu0 %v8075_v26, %s7019_s11  ;;  %2931 = vrot.lane.b32.xlu1 %v8055_v41, %s7019_s11 }
 0x2b3   : > { %3730 = vmatprep.subr.bf16.mxu0 %v3258_v59  ;;  %3779 = vmatprep.subr.bf16.mxu1 %v3052_v62  ;;  %v3506_v62 = vld [vmem:[%s9452_s4] sm:$0xff] }
 0x2b4   : > { %v8451_v4 = vpop.permute.xlu0 %3125  ;;  %v3124_v30 = vpop.permute.xlu1 %3123  ;;  %3731 = vmatpush1.bf16.msra.mxu0 %v3257_v24  ;;  %3780 = vmatpush1.bf16.msra.mxu1 %v3051_v12  ;;  %v3507_v12 = vld [vmem:[%s9452_s4 + $0x8] sm:$0xff] }
 0x2b5   : > { %v3155_v21 = vsel %vm948_vm7, %v3122_v9, %v3124_v30  ;;  %v3156_v23 = vsel %vm948_vm7, %v3124_v30, %v8451_v4  ;;  %3820 = vmatprep.subr.bf16.mxu0 %v3328_v33 }
 0x2b6   : > { %3137 = vrot.lane.b32.xlu0 %v8048_v27, %s7021_s13  ;;  %3135 = vrot.lane.b32.xlu1 %v7998_v35, %s7021_s13 }
 0x2b7   : > { %3747 = vmatmul.mubr.bf16.vlgmr.msra.gmra.mrb[32].mxu0 %v8197_v40  ;;  %3781 = vmatprep.subr.bf16.mxu1 %v3156_v23  ;;  %v3509_v23 = vld [vmem:[%s9452_s4 + $0x18] sm:$0xff] }
 0x2b8   : > { %v8461_v36 = vpop.permute.xlu0 %3229  ;;  %v3228_v49 = vpop.permute.xlu1 %3227  ;;  %3782 = vmatpush1.bf16.msra.mxu1 %v3155_v21  ;;  %3821 = vmatpush1.bf16.msra.mxu0 %v3327_v54  ;;  %v3508_v54 = vld [vmem:[%s9452_s4 + $0x10] sm:$0xff] }
 0x2b9   : > { %v3259_v19 = vsel %vm1046_vm9, %v3226_v47, %v3228_v49  ;;  %v3260_v15 = vsel %vm1046_vm9, %v3228_v49, %v8461_v36  ;;  %6307 = vmatprep.mubr.msk.bf16.mxu0 %vm3548_vm12, %v8204_v63 }
 0x2ba   : > { %3037 = vrot.lane.b32.xlu0 %v8075_v26, %s7020_s12  ;;  %3035 = vrot.lane.b32.xlu1 %v8055_v41, %s7020_s12 }
 0x2bb   : > { %3783 = vmatprep.subr.bf16.mxu1 %v3260_v15 }
 0x2bc   : > { %v8472_v35 = vpop.permute.xlu0 %2505  ;;  %v2504_v43 = vpop.permute.xlu1 %2503  ;;  %3784 = vmatpush1.bf16.msra.mxu1 %v3259_v19 }
 0x2bd   : > { %v2533_v11 = vsel %vm360_vm1, %v8350_v39, %v2504_v43  ;;  %v2534_v3 = vsel %vm360_vm1, %v2504_v43, %v8472_v35  ;;  %3873 = vmatprep.subr.bf16.mxu1 %v3330_v46 }
 0x2be   : > { %3241 = vrot.lane.b32.xlu0 %v8048_v27, %s7022_s14  ;;  %3239 = vrot.lane.b32.xlu1 %v7001_v55, %s7022_s14  ;;  %v8498_v27 = vld [vmem:[%s9451_s3 + $0x4] ss:$8 sps:$4 sm:$0xff]  }
 0x2bf   : > { %3757 = vmatmul.mubr.bf16.gmra.mrb[36].mxu0 %v8227_v60  ;;  %3800 = vmatmul.mubr.bf16.vlgmr.msra.gmra.mrb[36].mxu1 %v8197_v40  ;;  %v3332_v55 = vld [vmem:[#allocation3 + $0x78] sm:$0xff] }
 0x2c0   : > { %v8483_v37 = vpop.permute.xlu0 %2609  ;;  %v2608_v48 = vpop.permute.xlu1 %2607  ;;  %3822 = vmatprep.subr.bf16.mxu0 %v2534_v3  ;;  %3874 = vmatpush1.bf16.msra.mxu1 %v3329_v1 }
 0x2c1   : > { %v2637_v39 = vsel %vm458_vm2, %v8368_v16, %v2608_v48  ;;  %v2638_v29 = vsel %vm458_vm2, %v2608_v48, %v8483_v37  ;;  %3823 = vmatpush1.bf16.msra.mxu0 %v2533_v11  ;;  %6309 = vmatprep.mubr.msk.bf16.mxu1 %vm3548_vm12, %v8204_v63 }
 0x2c2   : > { %3141 = vrot.lane.b32.xlu0 %v8075_v26, %s7021_s13  ;;  %3139 = vrot.lane.b32.xlu1 %v8055_v41, %s7021_s13 }
 0x2c3   : > { %3824 = vmatprep.subr.bf16.mxu0 %v2638_v29  ;;  %6310 = vmatprep.mubr.msk.bf16.mxu0 %vm3548_vm12, %v8498_v27  ;;  %v3331_v29 = vld [vmem:[#allocation3 + $0x70] sm:$0xff] }
 0x2c4   : > { %v8502_v16 = vpop.permute.xlu0 %2509  ;;  %v2712_v52 = vpop.permute.xlu1 %2711 }
 0x2c5   : > { %v2741_v17 = vsel %vm556_vm3, %v8383_v32, %v2712_v52  ;;  %3825 = vmatpush1.bf16.msra.mxu0 %v2637_v39 }
 0x2c6   : > { %3245 = vrot.lane.b32.xlu0 %v8075_v26, %s7022_s14  ;;  %3243 = vrot.lane.b32.xlu1 %v8055_v41, %s7022_s14 }
 0x2c7   : > { %3810 = vmatmul.mubr.bf16.gmra.mrb[40].mxu1 %v8227_v60 }
 0x2c8   : > { %v2714_v53 = vpop.permute.xlu0 %2713  ;;  %v2816_v10 = vpop.permute.xlu1 %2815  ;;  %6312 = vmatprep.mubr.msk.bf16.mxu1 %vm3548_vm12, %v8498_v27 }
 0x2c9   : > { %v2742_v24 = vsel %vm556_vm3, %v2712_v52, %v2714_v53  ;;  %v2845_v25 = vsel %vm654_vm4, %v8398_v56, %v2816_v10 }
 0x2ca   : > { %2521 = vrot.lane.b32.xlu0 %v8103_v50, %s7015_s30  ;;  %2519 = vrot.lane.b32.xlu1 %v8079_v57, %s7015_s30 }
 0x2cb   : > { %3826 = vmatprep.subr.bf16.mxu0 %v2742_v24 }
 0x2cc   : > { %v8520_v41 = vpop.permute.xlu0 %2613  ;;  %v2920_v26 = vpop.permute.xlu1 %2919  ;;  %3827 = vmatpush1.bf16.msra.mxu0 %v2741_v17 }
 0x2cd   : > { %v2949_v32 = vsel %vm752_vm5, %v8417_v14, %v2920_v26 }
 0x2ce   : > { %2625 = vrot.lane.b32.xlu0 %v8103_v50, %s7016_s8  ;;  %2623 = vrot.lane.b32.xlu1 %v8079_v57, %s7016_s8 }
 0x2d0   : > { %v2818_v56 = vpop.permute.xlu0 %2817  ;;  %v3024_v34 = vpop.permute.xlu1 %3023 }
 0x2d1   : > { %v2846_v7 = vsel %vm654_vm4, %v2816_v10, %v2818_v56  ;;  %v3053_v58 = vsel %vm850_vm6, %v8434_v38, %v3024_v34 }
 0x2d2   : > { %2729 = vrot.lane.b32.xlu0 %v8103_v50, %s7017_s9  ;;  %2727 = vrot.lane.b32.xlu1 %v8079_v57, %s7017_s9  ;;  %s6488_s9 = sshll.u32 %s9457_s25, 5 }
 0x2d3   : > { %3828 = vmatprep.subr.bf16.mxu0 %v2846_v7 }
 0x2d4   : > { %v8535_v44 = vpop.permute.xlu0 %2717  ;;  %v3128_v13 = vpop.permute.xlu1 %3127  ;;  %3829 = vmatpush1.bf16.msra.mxu0 %v2845_v25 }
 0x2d5   : > { %v3157_v22 = vsel %vm948_vm7, %v8451_v4, %v3128_v13 }
 0x2d6   : > { %2833 = vrot.lane.b32.xlu0 %v8103_v50, %s7018_s10  ;;  %2831 = vrot.lane.b32.xlu1 %v8079_v57, %s7018_s10 }
 0x2d8   : > { %v2922_v8 = vpop.permute.xlu0 %2921  ;;  %v3232_v14 = vpop.permute.xlu1 %3231 }
 0x2d9   : > { %v2950_v20 = vsel %vm752_vm5, %v2920_v26, %v2922_v8  ;;  %v3261_v0 = vsel %vm1046_vm9, %v8461_v36, %v3232_v14  ;;  %v3334_v26 = vld [vmem:[#allocation3 + $0x88] sm:$0xff] }
 0x2da   : > { %2937 = vrot.lane.b32.xlu0 %v8103_v50, %s7019_s11  ;;  %2935 = vrot.lane.b32.xlu1 %v7003_v2, %s7019_s11 }
 0x2db   : > { %3830 = vmatprep.subr.bf16.mxu0 %v2950_v20 }
 0x2dc   : > { %v8549_v9 = vpop.permute.xlu0 %2821  ;;  %v2508_v31 = vpop.permute.xlu1 %2507  ;;  %3831 = vmatpush1.bf16.msra.mxu0 %v2949_v32 }
 0x2dd   : > { %v2535_v57 = vsel %vm360_vm1, %v8472_v35, %v2508_v31  ;;  %v2536_v61 = vsel %vm360_vm1, %v2508_v31, %v8502_v16 }
 0x2de   : > { %3041 = vrot.lane.b32.xlu0 %v8103_v50, %s7020_s12  ;;  %3039 = vrot.lane.b32.xlu1 %v7003_v2, %s7020_s12  ;;  %s278_s12 = scalar_lea.vmem %s9455_s7, %s6488_s9 }
 0x2df   : > { %3875 = vmatprep.subr.bf16.mxu1 %v2536_v61 }
 0x2e0   : > { %v3026_v42 = vpop.permute.xlu0 %3025  ;;  %v2612_v45 = vpop.permute.xlu1 %2611  ;;  %3876 = vmatpush1.bf16.msra.mxu1 %v2535_v57 }
 0x2e1   : > { %v3054_v38 = vsel %vm850_vm6, %v3024_v34, %v3026_v42  ;;  %v2639_v6 = vsel %vm458_vm2, %v8483_v37, %v2612_v45  ;;  %v2640_v51 = vsel %vm458_vm2, %v2612_v45, %v8520_v41  ;;  %v3333_v34 = vld [vmem:[#allocation3 + $0x80] sm:$0xff] }
 0x2e2   : > { %3145 = vrot.lane.b32.xlu0 %v8103_v50, %s7021_s13  ;;  %3143 = vrot.lane.b32.xlu1 %v7003_v2, %s7021_s13 }
 0x2e3   : > { %3832 = vmatprep.subr.bf16.mxu0 %v3054_v38  ;;  %3877 = vmatprep.subr.bf16.mxu1 %v2640_v51 }
 0x2e4   : > { %v8566_v18 = vpop.permute.xlu0 %2925  ;;  %v2716_v47 = vpop.permute.xlu1 %2715  ;;  %3833 = vmatpush1.bf16.msra.mxu0 %v3053_v58  ;;  %3878 = vmatpush1.bf16.msra.mxu1 %v2639_v6 }
 0x2e5   : > { %v2743_v28 = vsel %vm556_vm3, %v2714_v53, %v2716_v47  ;;  %v2744_v59 = vsel %vm556_vm3, %v2716_v47, %v8535_v44 }
 0x2e6   : > { %3249 = vrot.lane.b32.xlu0 %v8103_v50, %s7022_s14  ;;  %3247 = vrot.lane.b32.xlu1 %v7003_v2, %s7022_s14 }
 0x2e7   : > { %3879 = vmatprep.subr.bf16.mxu1 %v2744_v59 }
 0x2e8   : > { %v3130_v4 = vpop.permute.xlu0 %3129  ;;  %v2820_v30 = vpop.permute.xlu1 %2819  ;;  %3880 = vmatpush1.bf16.msra.mxu1 %v2743_v28 }
 0x2e9   : > { %v3158_v33 = vsel %vm948_vm7, %v3128_v13, %v3130_v4  ;;  %v2847_v21 = vsel %vm654_vm4, %v2818_v56, %v2820_v30  ;;  %v2848_v50 = vsel %vm654_vm4, %v2820_v30, %v8549_v9 }
 0x2ea   : > { %3517 = vperm.xlu0 %6821, %v3507_v12   ;;  %3512 = vperm.xlu1 %6822, %v3506_v62  }
 0x2eb   : > { %3834 = vmatprep.subr.bf16.mxu0 %v3158_v33  ;;  %3881 = vmatprep.subr.bf16.mxu1 %v2848_v50 }
 0x2ec   : > { %v8590_v36 = vpop.permute.xlu0 %3029  ;;  %v2924_v49 = vpop.permute.xlu1 %2923  ;;  %3835 = vmatpush1.bf16.msra.mxu0 %v3157_v22  ;;  %3882 = vmatpush1.bf16.msra.mxu1 %v2847_v21 }
 0x2ed   : > { %v2951_v19 = vsel %vm752_vm5, %v2922_v8, %v2924_v49  ;;  %v2952_v15 = vsel %vm752_vm5, %v2924_v49, %v8566_v18 }
 0x2ee   : > { %3527 = vperm.xlu0 %6821, %v3509_v23   ;;  %3522 = vperm.xlu1 %6822, %v3508_v54  }
 0x2ef   : > { %3883 = vmatprep.subr.bf16.mxu1 %v2952_v15 }
 0x2f0   : > { %v3234_v35 = vpop.permute.xlu0 %3233  ;;  %v3028_v43 = vpop.permute.xlu1 %3027  ;;  %3884 = vmatpush1.bf16.msra.mxu1 %v2951_v19 }
 0x2f1   : > { %v3262_v46 = vsel %vm1046_vm9, %v3232_v14, %v3234_v35  ;;  %v3055_v11 = vsel %vm850_vm6, %v3026_v42, %v3028_v43  ;;  %v3056_v3 = vsel %vm850_vm6, %v3028_v43, %v8590_v36 }
 0x2f2   : > { %3836 = vmatprep.subr.bf16.mxu0 %v3262_v46  ;;  %3885 = vmatprep.subr.bf16.mxu1 %v3056_v3 }
 0x2f3   : > { %3837 = vmatpush1.bf16.msra.mxu0 %v3261_v0 }
 0x2f4   : > { %v8599_v1 = vpop.permute.xlu0 %3133  ;;  %v3132_v37 = vpop.permute.xlu1 %3131  ;;  %3886 = vmatpush1.bf16.msra.mxu1 %v3055_v11  ;;  %3926 = vmatprep.subr.bf16.mxu0 %v3332_v55 }
 0x2f5   : > { %v3159_v48 = vsel %vm948_vm7, %v3130_v4, %v3132_v37  ;;  %v3160_v39 = vsel %vm948_vm7, %v3132_v37, %v8599_v1 }
 0x2f6   : > { %3853 = vmatmul.mubr.bf16.vlgmr.msra.gmra.mrb[40].mxu0 %v8197_v40  ;;  %3887 = vmatprep.subr.bf16.mxu1 %v3160_v39 }
 0x2f7   : > { %3927 = vmatpush1.bf16.msra.mxu0 %v3331_v29  ;;  %6311 = vmatprep.mubr.msk.bf16.mxu0 %vm3548_vm12, %v8204_v63 }
 0x2f8   : > { %v8607_v52 = vpop.permute.xlu0 %3237  ;;  %v3236_v17 = vpop.permute.xlu1 %3235  ;;  %3888 = vmatpush1.bf16.msra.mxu1 %v3159_v48 }
 0x2f9   : > { %v3263_v53 = vsel %vm1046_vm9, %v3234_v35, %v3236_v17  ;;  %v3264_v10 = vsel %vm1046_vm9, %v3236_v17, %v8607_v52 }
 0x2fa   : > { %3889 = vmatprep.subr.bf16.mxu1 %v3264_v10 }
 0x2fc   : > { %v2514_v24 = vpop.permute.xlu0 %2513  ;;  %v2512_v25 = vpop.permute.xlu1 %2511  ;;  %3890 = vmatpush1.bf16.msra.mxu1 %v3263_v53 }
 0x2fd   : > { %v2537_v32 = vsel %vm360_vm1, %v8502_v16, %v2512_v25  ;;  %v2538_v56 = vsel %vm360_vm1, %v2512_v25, %v2514_v24  ;;  %3979 = vmatprep.subr.bf16.mxu1 %v3334_v26 }
 0x2fe   : > { %3863 = vmatmul.mubr.bf16.gmra.mrb[44].mxu0 %v8227_v60  ;;  %3928 = vmatprep.subr.bf16.mxu0 %v2538_v56 }
 0x2ff   : > { %3906 = vmatmul.mubr.bf16.vlgmr.msra.gmra.mrb[44].mxu1 %v8197_v40  ;;  %3929 = vmatpush1.bf16.msra.mxu0 %v2537_v32 }
 0x300   : > { %v2618_v7 = vpop.permute.xlu0 %2617  ;;  %v2616_v58 = vpop.permute.xlu1 %2615  ;;  %3980 = vmatpush1.bf16.msra.mxu1 %v3333_v34  ;;  %6313 = vmatprep.mubr.msk.bf16.mxu1 %vm3548_vm12, %v8204_v63  ;;  %v3336_v34 = vld [vmem:[#allocation3 + $0x98] sm:$0xff] }
 0x301   : > { %v2641_v13 = vsel %vm458_vm2, %v8520_v41, %v2616_v58  ;;  %v2642_v16 = vsel %vm458_vm2, %v2616_v58, %v2618_v7  ;;  %6314 = vmatprep.mubr.msk.bf16.mxu0 %vm3548_vm12, %v8498_v27 }
 0x302   : > { %3930 = vmatprep.subr.bf16.mxu0 %v2642_v16 }
 0x303   : > { %3931 = vmatpush1.bf16.msra.mxu0 %v2641_v13 }
 0x304   : > { %v8624_v22 = vpop.permute.xlu0 %2517  ;;  %v2720_v40 = vpop.permute.xlu1 %2719 }
 0x305   : > { %v2745_v8 = vsel %vm556_vm3, %v8535_v44, %v2720_v40 }
 0x307   : > { %3916 = vmatmul.mubr.bf16.gmra.mrb[48].mxu1 %v8227_v60 }
 0x308   : > { %v2722_v14 = vpop.permute.xlu0 %2721  ;;  %v2824_v63 = vpop.permute.xlu1 %2823  ;;  %6316 = vmatprep.mubr.msk.bf16.mxu1 %vm3548_vm12, %v8498_v27 }
 0x309   : > { %v2746_v41 = vsel %vm556_vm3, %v2720_v40, %v2722_v14  ;;  %v2849_v20 = vsel %vm654_vm4, %v8549_v9, %v2824_v63  ;;  %v8699_v40 = vld [vmem:[%s9451_s3] ss:$8 sps:$4 sm:$0xff]  }
 0x30a   : > { %3932 = vmatprep.subr.bf16.mxu0 %v2746_v41 }
 0x30b   : > { %3933 = vmatpush1.bf16.msra.mxu0 %v2745_v8 }
 0x30c   : > { %v8634_v0 = vpop.permute.xlu0 %2621  ;;  %v2928_v2 = vpop.permute.xlu1 %2927 }
 0x30d   : > { %v2953_v44 = vsel %vm752_vm5, %v8566_v18, %v2928_v2 }
 0x310   : > { %v2826_v31 = vpop.permute.xlu0 %2825  ;;  %v3032_v60 = vpop.permute.xlu1 %3031 }
 0x311   : > { %v2850_v57 = vsel %vm654_vm4, %v2824_v63, %v2826_v31  ;;  %v3057_v61 = vsel %vm850_vm6, %v8590_v36, %v3032_v60  ;;  %v8707_v63 = vld [vmem:[%s9451_s3 + $0x14] ss:$8 sps:$4 sm:$0xff]  }
 0x312   : > { %3934 = vmatprep.subr.bf16.mxu0 %v2850_v57  ;;  %v8722_v57 = vld [vmem:[%s9451_s3 + $0x10] ss:$8 sps:$4 sm:$0xff]  }
 0x313   : > { %3935 = vmatpush1.bf16.msra.mxu0 %v2849_v20 }
 0x314   : > { %v8641_v42 = vpop.permute.xlu0 %2725  ;;  %v2516_v9 = vpop.permute.xlu1 %2515 }
 0x315   : > { %v2539_v45 = vsel %vm360_vm1, %v2514_v24, %v2516_v9  ;;  %v2540_v38 = vsel %vm360_vm1, %v2516_v9, %v8624_v22 }
 0x316   : > { %3981 = vmatprep.subr.bf16.mxu1 %v2540_v38 }
 0x317   : > { %3982 = vmatpush1.bf16.msra.mxu1 %v2539_v45 }
 0x318   : > { %v2930_v6 = vpop.permute.xlu0 %2929  ;;  %v2620_v51 = vpop.permute.xlu1 %2619 }
 0x319   : > { %v2954_v18 = vsel %vm752_vm5, %v2928_v2, %v2930_v6  ;;  %v2643_v47 = vsel %vm458_vm2, %v2618_v7, %v2620_v51  ;;  %v2644_v28 = vsel %vm458_vm2, %v2620_v51, %v8634_v0 }
 0x31a   : > { %3936 = vmatprep.subr.bf16.mxu0 %v2954_v18  ;;  %3983 = vmatprep.subr.bf16.mxu1 %v2644_v28 }
 0x31b   : > { %3937 = vmatpush1.bf16.msra.mxu0 %v2953_v44  ;;  %3984 = vmatpush1.bf16.msra.mxu1 %v2643_v47 }
 0x31c   : > { %v8650_v59 = vpop.permute.xlu0 %2829  ;;  %v2724_v12 = vpop.permute.xlu1 %2723 }
 0x31d   : > { %v2747_v62 = vsel %vm556_vm3, %v2722_v14, %v2724_v12  ;;  %v2748_v4 = vsel %vm556_vm3, %v2724_v12, %v8641_v42 }
 0x31e   : > { %3985 = vmatprep.subr.bf16.mxu1 %v2748_v4 }
 0x31f   : > { %3986 = vmatpush1.bf16.msra.mxu1 %v2747_v62 }
 0x320   : > { %v3034_v30 = vpop.permute.xlu0 %3033  ;;  %v2828_v33 = vpop.permute.xlu1 %2827 }
 0x321   : > { %v3058_v21 = vsel %vm850_vm6, %v3032_v60, %v3034_v30  ;;  %v2851_v50 = vsel %vm654_vm4, %v2826_v31, %v2828_v33  ;;  %v2852_v23 = vsel %vm654_vm4, %v2828_v33, %v8650_v59 }
 0x322   : > { %3938 = vmatprep.subr.bf16.mxu0 %v3058_v21  ;;  %3987 = vmatprep.subr.bf16.mxu1 %v2852_v23  ;;  %v8659_v54 = vpop.f32.mrb[20].mxu1 }
 0x323   : > { %3939 = vmatpush1.bf16.msra.mxu0 %v3057_v61  ;;  %3988 = vmatpush1.bf16.msra.mxu1 %v2851_v50  ;;  %v8661_v36 = vpop.f32.mrb[21].mxu1  ;;  %v3337_v61 = vld [vmem:[#allocation3 + $0xa0] sm:$0xff] }
 0x324   : > { %v8663_v49 = vpop.permute.xlu0 %2933  ;;  %v2932_v19 = vpop.permute.xlu1 %2931 }
 0x325   : > { %v2955_v15 = vsel %vm752_vm5, %v2930_v6, %v2932_v19  ;;  %v2956_v35 = vsel %vm752_vm5, %v2932_v19, %v8663_v49  ;;  %v8668_v43 = vpop.f32.mrb[22].mxu1 }
 0x326   : > { %3989 = vmatprep.subr.bf16.mxu1 %v2956_v35  ;;  %v8670_v46 = vpop.f32.mrb[23].mxu1 }
 0x327   : > { %3990 = vmatpush1.bf16.msra.mxu1 %v2955_v15 }
 0x328   : > { %v3138_v11 = vpop.permute.xlu0 %3137  ;;  %v3136_v3 = vpop.permute.xlu1 %3135 }
 0x329   : > { %v3161_v55 = vsel %vm948_vm7, %v8599_v1, %v3136_v3  ;;  %v3162_v37 = vsel %vm948_vm7, %v3136_v3, %v3138_v11 }
 0x32a   : > { %3940 = vmatprep.subr.bf16.mxu0 %v3162_v37  ;;  %v8675_v48 = vpop.f32.mrb[24].mxu1 }
 0x32b   : > { %3941 = vmatpush1.bf16.msra.mxu0 %v3161_v55  ;;  %v8677_v39 = vpop.f32.mrb[25].mxu1 }
 0x32c   : > { %v8679_v29 = vpop.permute.xlu0 %3037  ;;  %v3036_v17 = vpop.permute.xlu1 %3035 }
 0x32d   : > { %v3059_v53 = vsel %vm850_vm6, %v3034_v30, %v3036_v17  ;;  %v3060_v10 = vsel %vm850_vm6, %v3036_v17, %v8679_v29  ;;  %v8684_v24 = vpop.f32.mrb[26].mxu1 }
 0x32e   : > { %3991 = vmatprep.subr.bf16.mxu1 %v3060_v10  ;;  %v8686_v1 = vpop.f32.mrb[27].mxu1 }
 0x32f   : > { %3992 = vmatpush1.bf16.msra.mxu1 %v3059_v53 }
 0x330   : > { %v3242_v25 = vpop.permute.xlu0 %3241  ;;  %v3240_v26 = vpop.permute.xlu1 %3239 }
 0x331   : > { %v3265_v32 = vsel %vm1046_vm9, %v8607_v52, %v3240_v26  ;;  %v3266_v56 = vsel %vm1046_vm9, %v3240_v26, %v3242_v25  ;;  %v3335_v52 = vld [vmem:[#allocation3 + $0x90] sm:$0xff] }
 0x332   : > { %3942 = vmatprep.subr.bf16.mxu0 %v3266_v56 }
 0x333   : > { %3943 = vmatpush1.bf16.msra.mxu0 %v3265_v32 }
 0x334   : > { %v8691_v7 = vpop.permute.xlu0 %3141  ;;  %v3140_v58 = vpop.permute.xlu1 %3139  ;;  %4032 = vmatprep.subr.bf16.mxu0 %v3336_v34 }
 0x335   : > { %v3163_v13 = vsel %vm948_vm7, %v3138_v11, %v3140_v58  ;;  %v3164_v16 = vsel %vm948_vm7, %v3140_v58, %v8691_v7 }
 0x336   : > { %3959 = vmatmul.mubr.bf16.vlgmr.msra.gmra.mrb[48].mxu0 %v8699_v40  ;;  %3993 = vmatprep.subr.bf16.mxu1 %v3164_v16 }
 0x337   : > { %3994 = vmatpush1.bf16.msra.mxu1 %v3163_v13  ;;  %4033 = vmatpush1.bf16.msra.mxu0 %v3335_v52 }
 0x338   : > { %v8702_v8 = vpop.permute.xlu0 %3245  ;;  %v3244_v14 = vpop.permute.xlu1 %3243  ;;  %6315 = vmatprep.mubr.msk.bf16.mxu0 %vm3548_vm12, %v8707_v63 }
 0x339   : > { %v3267_v41 = vsel %vm1046_vm9, %v3242_v25, %v3244_v14  ;;  %v3268_v20 = vsel %vm1046_vm9, %v3244_v14, %v8702_v8 }
 0x33a   : > { %3995 = vmatprep.subr.bf16.mxu1 %v3268_v20  ;;  %v6835_v20 = vld [vmem:[%s9454_s6 + $0x40] sm:$0xff]  }
 0x33b   : > { %3996 = vmatpush1.bf16.msra.mxu1 %v3267_v41 }
 0x33c   : > { %v2522_v2 = vpop.permute.xlu0 %2521  ;;  %v2520_v44 = vpop.permute.xlu1 %2519  ;;  %4085 = vmatprep.subr.bf16.mxu1 %v7023_v5 }
 0x33d   : > { %2584 = vst.msk [vmem:[#allocation3 + $0x148] sm:$0xff] %vm2458_vm13, %v2522_v2  ;;  %v2541_v31 = vsel %vm360_vm1, %v8624_v22, %v2520_v44  ;;  %v2542_v60 = vsel %vm360_vm1, %v2520_v44, %v2522_v2 }
 0x33e   : > { %3969 = vmatmul.mubr.bf16.gmra.mrb[52].mxu0 %v8722_v57  ;;  %4012 = vmatmul.mubr.bf16.vlgmr.msra.gmra.mrb[52].mxu1 %v8699_v40 }
 0x33f   : > { %4034 = vmatprep.subr.bf16.mxu0 %v2542_v60  ;;  %4086 = vmatpush1.bf16.msra.mxu1 %v3337_v61 }
 0x340   : > { %v2626_v9 = vpop.permute.xlu0 %2625  ;;  %v2624_v45 = vpop.permute.xlu1 %2623  ;;  %4035 = vmatpush1.bf16.msra.mxu0 %v2541_v31  ;;  %4087 = vmatprep.subr.bf16.mxu1 %v7023_v5 }
 0x341   : > { %2688 = vst.msk [vmem:[#allocation3 + $0x1f0] sm:$0xff] %vm2458_vm13, %v2626_v9  ;;  %v2645_v22 = vsel %vm458_vm2, %v8634_v0, %v2624_v45  ;;  %v2646_v38 = vsel %vm458_vm2, %v2624_v45, %v2626_v9  ;;  %6317 = vmatprep.mubr.msk.bf16.mxu1 %vm3548_vm12, %v8707_v63  ;;  %6318 = vmatprep.mubr.msk.bf16.mxu0 %vm3548_vm12, %v8498_v27  ;;  %v6837_v9 = vld [vmem:[%s9454_s6 + $0x48] sm:$0xff]  }
 0x342   : > { %4036 = vmatprep.subr.bf16.mxu0 %v2646_v38 }
 0x344   : > { %v2730_v6 = vpop.permute.xlu0 %2729  ;;  %v2728_v51 = vpop.permute.xlu1 %2727  ;;  %4037 = vmatpush1.bf16.msra.mxu0 %v2645_v22  ;;  %v3358_v18 = vld [vmem:[#allocation3 + $0x148] sm:$0xff] }
 0x345   : > { %2792 = vst.msk [vmem:[#allocation3 + $0x298] sm:$0xff] %vm2458_vm13, %v2730_v6  ;;  %v2749_v47 = vsel %vm556_vm3, %v8641_v42, %v2728_v51  ;;  %v2750_v0 = vsel %vm556_vm3, %v2728_v51, %v2730_v6  ;;  %4088 = vmatpush1.bf16.msra.mxu1 %v3358_v18  ;;  %v6838_v22 = vld [vmem:[%s9454_s6 + $0xc0] sm:$0xff]   ;;  %v6839_v6 = vld [vmem:[%s9454_s6 + $0x8] sm:$0xff]   ;;  %v6841_v51 = vld [vmem:[%s9454_s6 + $0x50] sm:$0xff]  }
 0x346   : > { %4022 = vmatmul.mubr.bf16.gmra.mrb[56].mxu1 %v8722_v57  ;;  %4038 = vmatprep.subr.bf16.mxu0 %v2750_v0  ;;  %v6842_v18 = vld [vmem:[%s9454_s6 + $0xc8] sm:$0xff]  }
 0x347   : > { %4089 = vmatprep.subr.bf16.mxu1 %v7023_v5  ;;  %6320 = vmatprep.mubr.msk.bf16.mxu1 %vm3548_vm12, %v8498_v27  ;;  %v6844_v0 = vld [vmem:[%s9454_s6 + $0x88] sm:$0xff]  }
 0x348   : > { %v2834_v28 = vpop.permute.xlu0 %2833  ;;  %v2832_v12 = vpop.permute.xlu1 %2831  ;;  %4039 = vmatpush1.bf16.msra.mxu0 %v2749_v47  ;;  %v3379_v62 = vld [vmem:[#allocation3 + $0x1f0] sm:$0xff]  ;;  %v6843_v47 = vld [vmem:[%s9454_s6 + $0x10] sm:$0xff]  }
 0x349   : > { %2896 = vst.msk [vmem:[#allocation3 + $0x340] sm:$0xff] %vm2458_vm13, %v2834_v28  ;;  %v2853_v42 = vsel %vm654_vm4, %v8650_v59, %v2832_v12  ;;  %v2854_v4 = vsel %vm654_vm4, %v2832_v12, %v2834_v28  ;;  %4090 = vmatpush1.bf16.msra.mxu1 %v3379_v62  ;;  %v6845_v28 = vld [vmem:[%s9454_s6 + $0x58] sm:$0xff]  }
 0x34a   : > { %4040 = vmatprep.subr.bf16.mxu0 %v2854_v4  ;;  %4091 = vmatprep.subr.bf16.mxu1 %v7023_v5  ;;  %v8748_v30 = vpop.f32.mrb[24].mxu0  ;;  %v6847_v12 = vld [vmem:[%s9454_s6 + $0x18] sm:$0xff]   ;;  %v6849_v4 = vld [vmem:[%s9454_s6 + $0x60] sm:$0xff]  }
 0x34b   : > { %v8750_v33 = vpop.f32.mrb[25].mxu0 }
 0x34c   : > { %v2938_v27 = vpop.permute.xlu0 %2937  ;;  %v2936_v21 = vpop.permute.xlu1 %2935  ;;  %4041 = vmatpush1.bf16.msra.mxu0 %v2853_v42  ;;  %v3400_v50 = vld [vmem:[#allocation3 + $0x298] sm:$0xff] }
 0x34d   : > { %3000 = vst.msk [vmem:[#allocation3 + $0x3e8] sm:$0xff] %vm2458_vm13, %v2938_v27  ;;  %v2957_v23 = vsel %vm752_vm5, %v8663_v49, %v2936_v21  ;;  %v2958_v59 = vsel %vm752_vm5, %v2936_v21, %v2938_v27  ;;  %4092 = vmatpush1.bf16.msra.mxu1 %v3400_v50  ;;  %v8756_v19 = vpop.f32.mrb[26].mxu0 }
 0x34e   : > { %4042 = vmatprep.subr.bf16.mxu0 %v2958_v59  ;;  %4093 = vmatprep.subr.bf16.mxu1 %v7023_v5  ;;  %v8759_v15 = vpop.f32.mrb[27].mxu0  ;;  %v6850_v59 = vld [vmem:[%s9454_s6 + $0xd8] sm:$0xff]  }
 0x350   : > { %v3042_v35 = vpop.permute.xlu0 %3041  ;;  %v3040_v11 = vpop.permute.xlu1 %3039  ;;  %4043 = vmatpush1.bf16.msra.mxu0 %v2957_v23  ;;  %v3421_v3 = vld [vmem:[#allocation3 + $0x340] sm:$0xff] }
 0x351   : > { %3104 = vst.msk [vmem:[#allocation3 + $0x490] sm:$0xff] %vm2458_vm13, %v3042_v35  ;;  %v3061_v55 = vsel %vm850_vm6, %v8679_v29, %v3040_v11  ;;  %v3062_v49 = vsel %vm850_vm6, %v3040_v11, %v3042_v35  ;;  %4094 = vmatpush1.bf16.msra.mxu1 %v3421_v3 }
 0x352   : > { %4044 = vmatprep.subr.bf16.mxu0 %v3062_v49  ;;  %4095 = vmatprep.subr.bf16.mxu1 %v7023_v5  ;;  %v8766_v37 = vpop.f32.mrb[28].mxu1 }
 0x353   : > { %v8768_v17 = vpop.f32.mrb[29].mxu1 }
 0x354   : > { %v3146_v53 = vpop.permute.xlu0 %3145  ;;  %v3144_v10 = vpop.permute.xlu1 %3143  ;;  %4045 = vmatpush1.bf16.msra.mxu0 %v3061_v55  ;;  %v3442_v25 = vld [vmem:[#allocation3 + $0x3e8] sm:$0xff] }
 0x355   : > { %3208 = vst.msk [vmem:[#allocation3 + $0x538] sm:$0xff] %vm2458_vm13, %v3146_v53  ;;  %v3165_v26 = vsel %vm948_vm7, %v8691_v7, %v3144_v10  ;;  %v3166_v29 = vsel %vm948_vm7, %v3144_v10, %v3146_v53  ;;  %4096 = vmatpush1.bf16.msra.mxu1 %v3442_v25  ;;  %v8774_v32 = vpop.f32.mrb[30].mxu1  ;;  %v8776_v56 = vpop.f32.mrb[28].mxu0 }
 0x356   : > { %4046 = vmatprep.subr.bf16.mxu0 %v3166_v29  ;;  %4097 = vmatprep.subr.bf16.mxu1 %v7023_v5  ;;  %v3701_v34 = vpop.f32.mrb[31].mxu1  ;;  %v8779_v58 = vpop.f32.mrb[29].mxu0 }
 0x357   : > { %v8781_v13 = vpop.f32.mrb[30].mxu0 }
 0x358   : > { %v3250_v16 = vpop.permute.xlu0 %3249  ;;  %v3248_v52 = vpop.permute.xlu1 %3247  ;;  %4047 = vmatpush1.bf16.msra.mxu0 %v3165_v26  ;;  %v3463_v14 = vld [vmem:[#allocation3 + $0x490] sm:$0xff] }
 0x359   : > { %3312 = vst.msk [vmem:[#allocation3 + $0x5e0] sm:$0xff] %vm2458_vm13, %v3250_v16  ;;  %v3269_v7 = vsel %vm1046_vm9, %v8702_v8, %v3248_v52  ;;  %v3270_v41 = vsel %vm1046_vm9, %v3248_v52, %v3250_v16  ;;  %4098 = vmatpush1.bf16.msra.mxu1 %v3463_v14  ;;  %v8790_v2 = vpop.f32.mrb[31].mxu0  ;;  %v6836_v8 = vld [vmem:[%s9454_s6] sm:$0xff]   ;;  %v6852_v16 = vld [vmem:[%s9454_s6 + $0x98] sm:$0xff]   ;;  %v6853_v52 = vld [vmem:[%s9454_s6 + $0x68] sm:$0xff]  }
 0x35a   : > { %4048 = vmatprep.subr.bf16.mxu0 %v3270_v41  ;;  %4099 = vmatprep.subr.bf16.mxu1 %v7023_v5  ;;  %v8793_v44 = vpop.f32.mrb[32].mxu1  ;;  %v6854_v41 = vld [vmem:[%s9454_s6 + $0xe0] sm:$0xff]  }
 0x35b   : > { %v8795_v31 = vpop.f32.mrb[33].mxu1 }
 0x35c   : > { %4049 = vmatpush1.bf16.msra.mxu0 %v3269_v7  ;;  %v3484_v60 = vld [vmem:[#allocation3 + $0x538] sm:$0xff]  ;;  %v8800_v61 = vpop.f32.mrb[34].mxu1 }
 0x35d   : > { %4100 = vmatpush1.bf16.msra.mxu1 %v3484_v60  ;;  %6495 = vmatprep.subr.bf16.mxu0 %v6835_v20  ;;  %v3711_v45 = vpop.f32.mrb[35].mxu1 }
 0x35e   : > { %4101 = vmatprep.subr.bf16.mxu1 %v7023_v5  ;;  %v6840_v5 = vld [vmem:[%s9454_s6 + $0x80] sm:$0xff]  }
 0x35f   : > { %4065 = vmatmul.mubr.bf16.vlgmr.msra.gmra.mrb[56].mxu0 %v8699_v40 }
 0x360   : > { %v3505_v38 = vld [vmem:[#allocation3 + $0x5e0] sm:$0xff]  ;;  %6496 = vmatpush3.bf16.msra.mxu0 %v6836_v8  ;;  %6319 = vmatprep.mubr.msk.bf16.mxu0 %vm3548_vm12, %v8707_v63 }
 0x361   : > { %4102 = vmatpush1.bf16.msra.mxu1 %v3505_v38  ;;  %6497 = vmatprep.subr.bf16.mxu0 %v6837_v9  ;;  %v6855_v9 = vld [vmem:[%s9454_s6 + $0x28] sm:$0xff]  }
 0x362   : > { %6523 = vmatprep.subr.bf16.mxu1 %v6838_v22  ;;  %v6857_v22 = vld [vmem:[%s9454_s6 + $0x70] sm:$0xff]  }
 0x364   : > { %4118 = vmatmul.mubr.bf16.vlgmr.msra.gmra.mrb[60].mxu1 %v8699_v40  ;;  %6498 = vmatpush3.bf16.msra.mxu0 %v6839_v6  ;;  %v6846_v40 = vld [vmem:[%s9454_s6 + $0xd0] sm:$0xff]  }
 0x365   : > { %6524 = vmatpush3.bf16.msra.mxu1 %v6840_v5  ;;  %6499 = vmatprep.subr.bf16.mxu0 %v6841_v51 }
 0x366   : > { %6525 = vmatprep.subr.bf16.mxu1 %v6842_v18  ;;  %6321 = vmatprep.mubr.msk.bf16.mxu1 %vm3548_vm12, %v8707_v63  ;;  %v6848_v63 = vld [vmem:[%s9454_s6 + $0x90] sm:$0xff]  }
 0x367   : > { %4075 = vmatmul.mubr.bf16.gmra.mrb[60].mxu0 %v8722_v57 }
 0x368   : > { %6500 = vmatpush3.bf16.msra.mxu0 %v6843_v47 }
 0x369   : > { %v8843_v62 = vpop.permute.xlu0 %3517  ;;  %v8845_v42 = vpop.permute.xlu1 %3512  ;;  %6526 = vmatpush3.bf16.msra.mxu1 %v6844_v0  ;;  %6501 = vmatprep.subr.bf16.mxu0 %v6845_v28 }
 0x36a   : > { %v3649_v27 = vadd.f32 %v8759_v15, %v8843_v62  ;;  %v3698_v21 = vadd.f32 %v8768_v17, %v8845_v42  ;;  %v3702_v50 = vadd.f32 %v3701_v34, %v8843_v62  ;;  %v3592_v23 = vadd.f32 %v8661_v36, %v8845_v42  ;;  %6527 = vmatprep.subr.bf16.mxu1 %v6846_v40 }
 0x36b   : > { %v3596_v35 = vadd.f32 %v8670_v46, %v8843_v62  ;;  %v3645_v11 = vadd.f32 %v8750_v33, %v8845_v42  ;;  %v3590_v15 = vadd.f32 %v8659_v54, %v8845_v42  ;;  %v3594_v3 = vadd.f32 %v8668_v43, %v8843_v62  ;;  %v6851_v46 = vld [vmem:[%s9454_s6 + $0x20] sm:$0xff]  }
 0x36c   : > { %v4158_v55 = vmax.f32 %v3649_v27, 0.0  ;;  %v4139_v49 = vmax.f32 %v3698_v21, 0.0  ;;  %v4160_v36 = vmax.f32 %v3702_v50, 0.0  ;;  %v4135_v17 = vmax.f32 %v3592_v23, 0.0  ;;  %4126 = vmatmul.mubr.bf16.gmra.mrb[64].mxu1 %v8722_v57  ;;  %6502 = vmatpush3.bf16.msra.mxu0 %v6847_v12  ;;  %v6859_v12 = vld [vmem:[%s9454_s6 + $0x30] sm:$0xff]   ;;  %v6861_v27 = vld [vmem:[%s9454_s6 + $0x78] sm:$0xff]  }
 0x36d   : > { %v8875_v53 = vpop.permute.xlu0 %3527  ;;  %v8877_v33 = vpop.permute.xlu1 %3522  ;;  %v4156_v10 = vmax.f32 %v3596_v35, 0.0  ;;  %6528 = vmatpush3.bf16.msra.mxu1 %v6848_v63  ;;  %v4137_v54 = vmax.f32 %v3645_v11, 0.0  ;;  %6503 = vmatprep.subr.bf16.mxu0 %v6849_v4  ;;  %v4134_v43 = vmax.f32 %v3590_v15, 0.0  ;;  %v4155_v25 = vmax.f32 %v3594_v3, 0.0  ;;  %v6862_v3 = vld [vmem:[%s9454_s6 + $0xf0] sm:$0xff]  }
 0x36e   : > { %v8879_v26 = vpack.c.bf16 %v4160_v36, %v4139_v49  ;;  %v3659_v57 = vadd.f32 %v8790_v2, %v8875_v53  ;;  %v3708_v29 = vadd.f32 %v8795_v31, %v8877_v33  ;;  %v3712_v34 = vadd.f32 %v3711_v45, %v8875_v53  ;;  %6529 = vmatprep.subr.bf16.mxu1 %v6850_v59  ;;  %v6860_v59 = vld [vmem:[%s9454_s6 + $0xa8] sm:$0xff]   ;;  %v6863_v49 = vld [vmem:[%s9454_s6 + $0x38] sm:$0xff]  }
 0x36f   : > { %v4219_v14 = vpack.c.bf16 %v4156_v10, %v4135_v17  ;;  %v4221_v7 = vpack.c.bf16 %v4158_v55, %v4137_v54  ;;  %v8895_v20 = vpack.c.bf16 %v4155_v25, %v4134_v43  ;;  %v3602_v2 = vadd.f32 %v8677_v39, %v8877_v33  ;;  %v6864_v10 = vld [vmem:[%s9454_s6 + $0xb0] sm:$0xff]   ;;  %v6865_v54 = vld [vmem:[%s9454_s6 + $0xf8] sm:$0xff]   ;;  %v6868_v25 = vld [vmem:[%s9454_s6 + $0x100] sm:$0xff]  }
 0x370   : > { %v4200_v31 = vmax.f32 %v3659_v57, 0.0  ;;  %v4181_v60 = vmax.f32 %v3708_v29, 0.0  ;;  %v4202_v8 = vmax.f32 %v3712_v34, 0.0  ;;  %6504 = vmatpush3.bf16.msra.mxu0 %v6851_v46  ;;  %v3606_v45 = vadd.f32 %v8686_v1, %v8875_v53  ;;  %v6856_v1 = vld [vmem:[%s9454_s6 + $0xa0] sm:$0xff]   ;;  %v6869_v57 = vld [vmem:[%s9454_s6 + $0x148] sm:$0xff]   ;;  %v6867_v29 = vld [vmem:[%s9454_s6 + $0xb8] sm:$0xff]  }
 0x371   : > { %5594 = vmatprep.mubr.bf16.mxu0 %v4219_v14  ;;  %5643 = vmatprep.mubr.bf16.mxu1 %v4221_v7  ;;  %v4177_v38 = vmax.f32 %v3602_v2, 0.0  ;;  %v3643_v39 = vadd.f32 %v8748_v30, %v8845_v42  ;;  %v3647_v6 = vadd.f32 %v8756_v19, %v8843_v62  ;;  %v3655_v5 = vadd.f32 %v8779_v58, %v8877_v33  ;;  %v6858_v19 = vld [vmem:[%s9454_s6 + $0xe8] sm:$0xff]   ;;  %v6870_v34 = vld [vmem:[%s9454_s6 + $0x1c0] sm:$0xff]  }
 0x372   : > { %v8913_v51 = vpack.c.bf16 %v4202_v8, %v4181_v60  ;;  %6530 = vmatpush3.bf16.msra.mxu1 %v6852_v16  ;;  %6505 = vmatprep.subr.bf16.mxu0 %v6853_v52  ;;  %v4198_v18 = vmax.f32 %v3606_v45, 0.0  ;;  %v3600_v47 = vadd.f32 %v8675_v48, %v8877_v33  ;;  %v3604_v30 = vadd.f32 %v8684_v24, %v8875_v53  ;;  %v6871_v16 = vld [vmem:[%s9454_s6 + $0x108] sm:$0xff]   ;;  %v6873_v52 = vld [vmem:[%s9454_s6 + $0x150] sm:$0xff]   ;;  %v6872_v14 = vld [vmem:[%s9454_s6 + $0x180] sm:$0xff]  }
 0x373   : > { %6531 = vmatprep.subr.bf16.mxu1 %v6854_v41  ;;  %v4136_v58 = vmax.f32 %v3643_v39, 0.0  ;;  %v4157_v0 = vmax.f32 %v3647_v6, 0.0  ;;  %v4179_v28 = vmax.f32 %v3655_v5, 0.0  ;;  %v3653_v40 = vadd.f32 %v8776_v56, %v8877_v33  ;;  %v6874_v7 = vld [vmem:[%s9454_s6 + $0x1c8] sm:$0xff]   ;;  %v6875_v41 = vld [vmem:[%s9454_s6 + $0x110] sm:$0xff]   ;;  %v6879_v60 = vld [vmem:[%s9454_s6 + $0x118] sm:$0xff]  }
 0x374   : > { %6506 = vmatpush3.bf16.msra.mxu0 %v6855_v9  ;;  %v4240_v48 = vpack.c.bf16 %v4198_v18, %v4177_v38  ;;  %v4176_v63 = vmax.f32 %v3600_v47, 0.0  ;;  %v4197_v4 = vmax.f32 %v3604_v30, 0.0  ;;  %v3657_v24 = vadd.f32 %v8781_v13, %v8875_v53  ;;  %v6876_v2 = vld [vmem:[%s9454_s6 + $0x188] sm:$0xff]   ;;  %v6881_v8 = vld [vmem:[%s9454_s6 + $0x160] sm:$0xff]   ;;  %v6880_v45 = vld [vmem:[%s9454_s6 + $0x190] sm:$0xff]  }
 0x375   : > { %6507 = vmatprep.subr.bf16.mxu0 %v6857_v22  ;;  %v4220_v21 = vpack.c.bf16 %v4157_v0, %v4136_v58  ;;  %v4242_v50 = vpack.c.bf16 %v4200_v31, %v4179_v28  ;;  %v4178_v23 = vmax.f32 %v3653_v40, 0.0  ;;  %v3696_v56 = vadd.f32 %v8766_v37, %v8845_v42  ;;  %v6878_v31 = vld [vmem:[%s9454_s6 + $0x1d0] sm:$0xff]   ;;  %v6883_v5 = vld [vmem:[%s9454_s6 + $0x120] sm:$0xff]   ;;  %v6885_v47 = vld [vmem:[%s9454_s6 + $0x168] sm:$0xff]  }
 0x376   : > { %6532 = vmatpush3.bf16.msra.mxu1 %v6856_v1  ;;  %v4239_v35 = vpack.c.bf16 %v4197_v4, %v4176_v63  ;;  %v4199_v11 = vmax.f32 %v3657_v24, 0.0  ;;  %v3700_v13 = vadd.f32 %v8774_v32, %v8843_v62  ;;  %v3706_v15 = vadd.f32 %v8793_v44, %v8877_v33  ;;  %v6866_v44 = vld [vmem:[%s9454_s6 + $0x140] sm:$0xff]   ;;  %v6889_v4 = vld [vmem:[%s9454_s6 + $0x170] sm:$0xff]  }
 0x377   : > { %6533 = vmatprep.subr.bf16.mxu1 %v6858_v19  ;;  %v4138_v55 = vmax.f32 %v3696_v56, 0.0  ;;  %v3710_v37 = vadd.f32 %v8800_v61, %v8875_v53  ;;  %v6884_v19 = vld [vmem:[%s9454_s6 + $0x198] sm:$0xff]   ;;  %v6886_v28 = vld [vmem:[%s9454_s6 + $0x1e0] sm:$0xff]  }
 0x378   : > { %6508 = vmatpush3.bf16.msra.mxu0 %v6859_v12  ;;  %v4241_v36 = vpack.c.bf16 %v4199_v11, %v4178_v23  ;;  %v4159_v17 = vmax.f32 %v3700_v13, 0.0  ;;  %v4180_v32 = vmax.f32 %v3706_v15, 0.0  ;;  %v6890_v11 = vld [vmem:[%s9454_s6 + $0x1e8] sm:$0xff]  }
 0x379   : > { %6509 = vmatprep.subr.bf16.mxu0 %v6861_v27  ;;  %v4201_v46 = vmax.f32 %v3710_v37, 0.0  ;;  %v6891_v37 = vld [vmem:[%s9454_s6 + $0x130] sm:$0xff]  }
 0x37a   : > { %6534 = vmatpush3.bf16.msra.mxu1 %v6860_v59  ;;  %v8958_v61 = vpack.c.bf16 %v4159_v17, %v4138_v55 }
 0x37b   : > { %6535 = vmatprep.subr.bf16.mxu1 %v6862_v3  ;;  %v8963_v43 = vpack.c.bf16 %v4201_v46, %v4180_v32 }
 0x37c   : > { %6510 = vmatpush3.bf16.msra.mxu0 %v6863_v49 }
 0x37d   : > { %6551 = vmatprep.subr.bf16.mxu0 %v6866_v44  ;;  %v6893_v44 = vld [vmem:[%s9454_s6 + $0x178] sm:$0xff]  }
 0x37e   : > { %6536 = vmatpush3.bf16.msra.mxu1 %v6864_v10 }
 0x37f   : > { %5595 = vmatmul.mubr.bf16.vlgmr.msra.gmra.mrb[64].mxu0 %v8895_v20  ;;  %6537 = vmatprep.subr.bf16.mxu1 %v6865_v54  ;;  %v6877_v20 = vld [vmem:[%s9454_s6 + $0x158] sm:$0xff]   ;;  %v6892_v54 = vld [vmem:[%s9454_s6 + $0x1a8] sm:$0xff]  }
 0x380   : > { %5602 = vmatprep.mubr.bf16.mxu0 %v4240_v48  ;;  %6552 = vmatpush3.bf16.msra.mxu0 %v6868_v25  ;;  %v6887_v48 = vld [vmem:[%s9454_s6 + $0x128] sm:$0xff]  }
 0x381   : > { %6553 = vmatprep.subr.bf16.mxu0 %v6869_v57 }
 0x382   : > { %6538 = vmatpush3.bf16.msra.mxu1 %v6867_v29 }
 0x383   : > { %6579 = vmatprep.subr.bf16.mxu1 %v6870_v34 }
 0x384   : > { %6554 = vmatpush3.bf16.msra.mxu0 %v6871_v16  ;;  %v6894_v16 = vld [vmem:[%s9454_s6 + $0x1f0] sm:$0xff]  }
 0x385   : > { %5644 = vmatmul.mubr.bf16.vlgmr.msra.gmra.mrb[68].mxu1 %v4220_v21  ;;  %6555 = vmatprep.subr.bf16.mxu0 %v6873_v52 }
 0x386   : > { %5651 = vmatprep.mubr.bf16.mxu1 %v4242_v50  ;;  %6580 = vmatpush3.bf16.msra.mxu1 %v6872_v14  ;;  %v6888_v50 = vld [vmem:[%s9454_s6 + $0x1a0] sm:$0xff]  }
 0x387   : > { %5603 = vmatmul.mubr.bf16.gmra.mrb[68].mxu0 %v4239_v35  ;;  %6581 = vmatprep.subr.bf16.mxu1 %v6874_v7 }
 0x388   : > { %6556 = vmatpush3.bf16.msra.mxu0 %v6875_v41  ;;  %5692 = vmatprep.mubr.bf16.mxu0 %v8879_v26  ;;  %v6882_v26 = vld [vmem:[%s9454_s6 + $0x1d8] sm:$0xff]  }
 0x389   : > { %6557 = vmatprep.subr.bf16.mxu0 %v6877_v20  ;;  %v6895_v20 = vld [vmem:[%s9454_s6 + $0x138] sm:$0xff]  }
 0x38a   : > { %6582 = vmatpush3.bf16.msra.mxu1 %v6876_v2  ;;  %v3748_v9 = vpop.f32.mrb[32].mxu0 }
 0x38b   : > { %v3749_v22 = vadd.f32 %v3748_v9, %v8845_v42  ;;  %v3750_v38 = vpop.f32.mrb[33].mxu0  ;;  %6583 = vmatprep.subr.bf16.mxu1 %v6878_v31 }
 0x38c   : > { %v3751_v39 = vadd.f32 %v3750_v38, %v8845_v42  ;;  %v3752_v6 = vpop.f32.mrb[34].mxu0  ;;  %6558 = vmatpush3.bf16.msra.mxu0 %v6879_v60  ;;  %v6898_v60 = vld [vmem:[%s9454_s6 + $0x240] sm:$0xff]  }
 0x38d   : > { %5652 = vmatmul.mubr.bf16.gmra.mrb[72].mxu1 %v4241_v36  ;;  %v3753_v1 = vadd.f32 %v3752_v6, %v8843_v62  ;;  %v3754_v18 = vpop.f32.mrb[35].mxu0  ;;  %6559 = vmatprep.subr.bf16.mxu0 %v6881_v8  ;;  %v4140_v58 = vmax.f32 %v3749_v22, 0.0  ;;  %v6896_v22 = vld [vmem:[%s9454_s6 + $0x1b0] sm:$0xff]  }
 0x38e   : > { %6584 = vmatpush3.bf16.msra.mxu1 %v6880_v45  ;;  %v3755_v30 = vadd.f32 %v3754_v18, %v8843_v62  ;;  %v4141_v40 = vmax.f32 %v3751_v39, 0.0  ;;  %v6897_v39 = vld [vmem:[%s9454_s6 + $0x1f8] sm:$0xff]  }
 0x38f   : > { %v4161_v0 = vmax.f32 %v3753_v1, 0.0  ;;  %6585 = vmatprep.subr.bf16.mxu1 %v6882_v26  ;;  %v6900_v1 = vld [vmem:[%s9454_s6 + $0x200] sm:$0xff]  }
 0x390   : > { %v4162_v12 = vmax.f32 %v3755_v30, 0.0  ;;  %6560 = vmatpush3.bf16.msra.mxu0 %v6883_v5  ;;  %v6901_v30 = vld [vmem:[%s9454_s6 + $0x248] sm:$0xff]  }
 0x391   : > { %v9034_v63 = vpack.c.bf16 %v4161_v0, %v4140_v58  ;;  %6561 = vmatprep.subr.bf16.mxu0 %v6885_v47  ;;  %v6899_v58 = vld [vmem:[%s9454_s6 + $0x1b8] sm:$0xff]  }
 0x392   : > { %v4225_v24 = vpack.c.bf16 %v4162_v12, %v4141_v40  ;;  %6586 = vmatpush3.bf16.msra.mxu1 %v6884_v19  ;;  %v3758_v27 = vpop.f32.mrb[36].mxu0  ;;  %v3801_v21 = vpop.f32.mrb[36].mxu1  ;;  %v6911_v40 = vld [vmem:[%s9454_s6 + $0x2c0] sm:$0xff]  }
 0x393   : > { %v3759_v23 = vadd.f32 %v3758_v27, %v8877_v33  ;;  %v3802_v56 = vadd.f32 %v3801_v21, %v8845_v42  ;;  %v3760_v59 = vpop.f32.mrb[37].mxu0  ;;  %v3803_v35 = vpop.f32.mrb[37].mxu1  ;;  %6587 = vmatprep.subr.bf16.mxu1 %v6886_v28  ;;  %v6912_v21 = vld [vmem:[%s9454_s6 + $0x280] sm:$0xff]  }
 0x394   : > { %v3761_v13 = vadd.f32 %v3760_v59, %v8877_v33  ;;  %v3804_v15 = vadd.f32 %v3803_v35, %v8845_v42  ;;  %v3762_v3 = vpop.f32.mrb[38].mxu0  ;;  %v3805_v55 = vpop.f32.mrb[38].mxu1  ;;  %6562 = vmatpush3.bf16.msra.mxu0 %v6887_v48  ;;  %5741 = vmatprep.mubr.bf16.mxu1 %v4225_v24  ;;  %v6919_v59 = vld [vmem:[%s9454_s6 + $0x2d0] sm:$0xff]   ;;  %v6907_v35 = vld [vmem:[%s9454_s6 + $0x260] sm:$0xff]  }
 0x395   : > { %v3763_v49 = vadd.f32 %v3762_v3, %v8875_v53  ;;  %v3806_v36 = vadd.f32 %v3805_v55, %v8843_v62  ;;  %v3764_v17 = vpop.f32.mrb[39].mxu0  ;;  %v3807_v32 = vpop.f32.mrb[39].mxu1  ;;  %6563 = vmatprep.subr.bf16.mxu0 %v6889_v4  ;;  %v4182_v25 = vmax.f32 %v3759_v23, 0.0  ;;  %v4142_v57 = vmax.f32 %v3802_v56, 0.0  ;;  %v6902_v4 = vld [vmem:[%s9454_s6 + $0x208] sm:$0xff]   ;;  %v6905_v23 = vld [vmem:[%s9454_s6 + $0x258] sm:$0xff]  }
 0x396   : > { %6588 = vmatpush3.bf16.msra.mxu1 %v6888_v50  ;;  %v3765_v46 = vadd.f32 %v3764_v17, %v8875_v53  ;;  %v3808_v10 = vadd.f32 %v3807_v32, %v8843_v62  ;;  %v4183_v52 = vmax.f32 %v3761_v13, 0.0  ;;  %v4143_v14 = vmax.f32 %v3804_v15, 0.0  ;;  %v6904_v50 = vld [vmem:[%s9454_s6 + $0x210] sm:$0xff]   ;;  %v6916_v56 = vld [vmem:[%s9454_s6 + $0x288] sm:$0xff]   ;;  %v6908_v13 = vld [vmem:[%s9454_s6 + $0x220] sm:$0xff]  }
 0x397   : > { %v4203_v29 = vmax.f32 %v3763_v49, 0.0  ;;  %v4163_v34 = vmax.f32 %v3806_v36, 0.0  ;;  %6589 = vmatprep.subr.bf16.mxu1 %v6890_v11  ;;  %v6923_v11 = vld [vmem:[%s9454_s6 + $0x2d8] sm:$0xff]   ;;  %v6909_v15 = vld [vmem:[%s9454_s6 + $0x268] sm:$0xff]   ;;  %v6927_v55 = vld [vmem:[%s9454_s6 + $0x2e0] sm:$0xff]  }
 0x398   : > { %v4204_v7 = vmax.f32 %v3765_v46, 0.0  ;;  %v4164_v41 = vmax.f32 %v3808_v10, 0.0  ;;  %6564 = vmatpush3.bf16.msra.mxu0 %v6891_v37  ;;  %v6924_v3 = vld [vmem:[%s9454_s6 + $0x298] sm:$0xff]   ;;  %v6910_v37 = vld [vmem:[%s9454_s6 + $0x228] sm:$0xff]   ;;  %v6913_v49 = vld [vmem:[%s9454_s6 + $0x270] sm:$0xff]  }
 0x399   : > { %v9068_v2 = vpack.c.bf16 %v4203_v29, %v4182_v25  ;;  %v9070_v31 = vpack.c.bf16 %v4163_v34, %v4142_v57  ;;  %6565 = vmatprep.subr.bf16.mxu0 %v6893_v44  ;;  %v6928_v36 = vld [vmem:[%s9454_s6 + $0x2a0] sm:$0xff]   ;;  %v6931_v17 = vld [vmem:[%s9454_s6 + $0x2e8] sm:$0xff]   ;;  %v6914_v32 = vld [vmem:[%s9454_s6 + $0x230] sm:$0xff]  }
 0x39a   : > { %v4246_v8 = vpack.c.bf16 %v4204_v7, %v4183_v52  ;;  %v4227_v9 = vpack.c.bf16 %v4164_v41, %v4143_v14  ;;  %6590 = vmatpush3.bf16.msra.mxu1 %v6892_v54  ;;  %v3811_v45 = vpop.f32.mrb[40].mxu1  ;;  %v6917_v44 = vld [vmem:[%s9454_s6 + $0x278] sm:$0xff]   ;;  %v6932_v46 = vld [vmem:[%s9454_s6 + $0x2a8] sm:$0xff]   ;;  %v6935_v10 = vld [vmem:[%s9454_s6 + $0x2f0] sm:$0xff]  }
 0x39b   : > { %v3812_v38 = vadd.f32 %v3811_v45, %v8877_v33  ;;  %v3813_v26 = vpop.f32.mrb[41].mxu1  ;;  %6591 = vmatprep.subr.bf16.mxu1 %v6894_v16  ;;  %v6918_v54 = vld [vmem:[%s9454_s6 + $0x238] sm:$0xff]   ;;  %v6921_v25 = vld [vmem:[%s9454_s6 + $0x340] sm:$0xff]   ;;  %v6936_v57 = vld [vmem:[%s9454_s6 + $0x2b0] sm:$0xff]  }
 0x39c   : > { %v3814_v6 = vadd.f32 %v3813_v26, %v8877_v33  ;;  %v3815_v5 = vpop.f32.mrb[42].mxu1  ;;  %6566 = vmatpush3.bf16.msra.mxu0 %v6895_v20  ;;  %v6939_v29 = vld [vmem:[%s9454_s6 + $0x2f8] sm:$0xff]   ;;  %v6922_v34 = vld [vmem:[%s9454_s6 + $0x300] sm:$0xff]   ;;  %v6925_v16 = vld [vmem:[%s9454_s6 + $0x348] sm:$0xff]  }
 0x39d   : > { %v3816_v18 = vadd.f32 %v3815_v5, %v8875_v53  ;;  %v3817_v47 = vpop.f32.mrb[43].mxu1  ;;  %6607 = vmatprep.subr.bf16.mxu0 %v6898_v60  ;;  %v4184_v0 = vmax.f32 %v3812_v38, 0.0  ;;  %v6940_v52 = vld [vmem:[%s9454_s6 + $0x2b8] sm:$0xff]   ;;  %v6947_v14 = vld [vmem:[%s9454_s6 + $0x3c0] sm:$0xff]   ;;  %v6926_v7 = vld [vmem:[%s9454_s6 + $0x308] sm:$0xff]  }
 0x39e   : > { %6592 = vmatpush3.bf16.msra.mxu1 %v6896_v22  ;;  %v3818_v19 = vadd.f32 %v3817_v47, %v8875_v53  ;;  %v4185_v12 = vmax.f32 %v3814_v6, 0.0  ;;  %v6929_v41 = vld [vmem:[%s9454_s6 + $0x350] sm:$0xff]   ;;  %v6938_v6 = vld [vmem:[%s9454_s6 + $0x320] sm:$0xff]  }
 0x39f   : > { %v4205_v28 = vmax.f32 %v3816_v18, 0.0  ;;  %5693 = vmatmul.mubr.bf16.vlgmr.msra.gmra.mrb[72].mxu0 %v8958_v61  ;;  %6593 = vmatprep.subr.bf16.mxu1 %v6897_v39  ;;  %v6903_v61 = vld [vmem:[%s9454_s6 + $0x250] sm:$0xff]  }
 0x3a0   : > { %v4206_v48 = vmax.f32 %v3818_v19, 0.0  ;;  %5700 = vmatprep.mubr.bf16.mxu0 %v8913_v51  ;;  %6608 = vmatpush3.bf16.msra.mxu0 %v6900_v1  ;;  %v6915_v51 = vld [vmem:[%s9454_s6 + $0x2c8] sm:$0xff]   ;;  %v6930_v20 = vld [vmem:[%s9454_s6 + $0x310] sm:$0xff]  }
 0x3a1   : > { %v9102_v24 = vpack.c.bf16 %v4205_v28, %v4184_v0  ;;  %6609 = vmatprep.subr.bf16.mxu0 %v6901_v30  ;;  %v6941_v1 = vld [vmem:[%s9454_s6 + $0x368] sm:$0xff]  }
 0x3a2   : > { %v9107_v27 = vpack.c.bf16 %v4206_v48, %v4185_v12  ;;  %6594 = vmatpush3.bf16.msra.mxu1 %v6899_v58  ;;  %v6942_v0 = vld [vmem:[%s9454_s6 + $0x328] sm:$0xff]   ;;  %v6943_v12 = vld [vmem:[%s9454_s6 + $0x370] sm:$0xff]   ;;  %v6948_v48 = vld [vmem:[%s9454_s6 + $0x380] sm:$0xff]  }
 0x3a3   : > { %6635 = vmatprep.subr.bf16.mxu1 %v6911_v40 }
 0x3a4   : > { %6610 = vmatpush3.bf16.msra.mxu0 %v6902_v4 }
 0x3a5   : > { %5742 = vmatmul.mubr.bf16.vlgmr.msra.gmra.mrb[76].mxu1 %v9034_v63  ;;  %6611 = vmatprep.subr.bf16.mxu0 %v6903_v61  ;;  %v6906_v63 = vld [vmem:[%s9454_s6 + $0x218] sm:$0xff]  }
 0x3a6   : > { %5749 = vmatprep.mubr.bf16.mxu1 %v4246_v8  ;;  %6636 = vmatpush3.bf16.msra.mxu1 %v6912_v21  ;;  %v6937_v8 = vld [vmem:[%s9454_s6 + $0x360] sm:$0xff]  }
 0x3a7   : > { %5701 = vmatmul.mubr.bf16.gmra.mrb[76].mxu0 %v8963_v43  ;;  %6637 = vmatprep.subr.bf16.mxu1 %v6915_v51  ;;  %v6920_v43 = vld [vmem:[%s9454_s6 + $0x290] sm:$0xff]  }
 0x3a8   : > { %6612 = vmatpush3.bf16.msra.mxu0 %v6904_v50  ;;  %5790 = vmatprep.mubr.bf16.mxu0 %v4227_v9 }
 0x3a9   : > { %6613 = vmatprep.subr.bf16.mxu0 %v6905_v23 }
 0x3aa   : > { %6638 = vmatpush3.bf16.msra.mxu1 %v6916_v56 }
 0x3ab   : > { %6639 = vmatprep.subr.bf16.mxu1 %v6919_v59 }
 0x3ac   : > { %6614 = vmatpush3.bf16.msra.mxu0 %v6906_v63 }
 0x3ad   : > { %5750 = vmatmul.mubr.bf16.gmra.mrb[80].mxu1 %v9068_v2  ;;  %6615 = vmatprep.subr.bf16.mxu0 %v6907_v35  ;;  %v6933_v2 = vld [vmem:[%s9454_s6 + $0x358] sm:$0xff]  }
 0x3ae   : > { %6640 = vmatpush3.bf16.msra.mxu1 %v6920_v43  ;;  %v6944_v43 = vld [vmem:[%s9454_s6 + $0x330] sm:$0xff]  }
 0x3af   : > { %6641 = vmatprep.subr.bf16.mxu1 %v6923_v11 }
 0x3b0   : > { %6616 = vmatpush3.bf16.msra.mxu0 %v6908_v13 }
 0x3b1   : > { %6617 = vmatprep.subr.bf16.mxu0 %v6909_v15 }
 0x3b2   : > { %6642 = vmatpush3.bf16.msra.mxu1 %v6924_v3  ;;  %v6945_v3 = vld [vmem:[%s9454_s6 + $0x378] sm:$0xff]  }
 0x3b3   : > { %6643 = vmatprep.subr.bf16.mxu1 %v6927_v55  ;;  %v6950_v55 = vld [vmem:[%s9454_s6 + $0x388] sm:$0xff]  }
 0x3b4   : > { %6618 = vmatpush3.bf16.msra.mxu0 %v6910_v37 }
 0x3b5   : > { %6619 = vmatprep.subr.bf16.mxu0 %v6913_v49 }
 0x3b6   : > { %6644 = vmatpush3.bf16.msra.mxu1 %v6928_v36 }
 0x3b7   : > { %6645 = vmatprep.subr.bf16.mxu1 %v6931_v17  ;;  %v6951_v17 = vld [vmem:[%s9454_s6 + $0x3d0] sm:$0xff]  }
 0x3b8   : > { %6620 = vmatpush3.bf16.msra.mxu0 %v6914_v32 }
 0x3b9   : > { %6621 = vmatprep.subr.bf16.mxu0 %v6917_v44 }
 0x3ba   : > { %6646 = vmatpush3.bf16.msra.mxu1 %v6932_v46 }
 0x3bb   : > { %6647 = vmatprep.subr.bf16.mxu1 %v6935_v10 }
 0x3bc   : > { %6622 = vmatpush3.bf16.msra.mxu0 %v6918_v54 }
 0x3bd   : > { %6663 = vmatprep.subr.bf16.mxu0 %v6921_v25 }
 0x3be   : > { %6648 = vmatpush3.bf16.msra.mxu1 %v6936_v57 }
 0x3bf   : > { %5791 = vmatmul.mubr.bf16.vlgmr.msra.gmra.mrb[80].mxu0 %v9070_v31  ;;  %6649 = vmatprep.subr.bf16.mxu1 %v6939_v29  ;;  %v6934_v31 = vld [vmem:[%s9454_s6 + $0x318] sm:$0xff]  }
 0x3c0   : > { %5798 = vmatprep.mubr.bf16.mxu0 %v9107_v27  ;;  %6664 = vmatpush3.bf16.msra.mxu0 %v6922_v34  ;;  %v6949_v27 = vld [vmem:[%s9454_s6 + $0x3c8] sm:$0xff]   ;;  %v6946_v29 = vld [vmem:[%s9454_s6 + $0x338] sm:$0xff]  }
 0x3c1   : > { %6665 = vmatprep.subr.bf16.mxu0 %v6925_v16 }
 0x3c2   : > { %6650 = vmatpush3.bf16.msra.mxu1 %v6940_v52  ;;  %v6952_v52 = vld [vmem:[%s9454_s6 + $0x440] sm:$0xff]  }
 0x3c3   : > { %6691 = vmatprep.subr.bf16.mxu1 %v6947_v14 }
 0x3c4   : > { %6666 = vmatpush3.bf16.msra.mxu0 %v6926_v7 }
 0x3c5   : > { %6667 = vmatprep.subr.bf16.mxu0 %v6929_v41  ;;  %v6953_v41 = vld [vmem:[%s9454_s6 + $0x390] sm:$0xff]  }
 0x3c7   : > { %5799 = vmatmul.mubr.bf16.gmra.mrb[84].mxu0 %v9102_v24 }
 0x3c8   : > { %6668 = vmatpush3.bf16.msra.mxu0 %v6930_v20 }
 0x3c9   : > { %v3854_v60 = vpop.f32.mrb[40].mxu0  ;;  %6669 = vmatprep.subr.bf16.mxu0 %v6933_v2 }
 0x3ca   : > { %v3855_v9 = vadd.f32 %v3854_v60, %v8845_v42  ;;  %v3856_v45 = vpop.f32.mrb[41].mxu0 }
 0x3cb   : > { %v3857_v22 = vadd.f32 %v3856_v45, %v8845_v42  ;;  %v3858_v38 = vpop.f32.mrb[42].mxu0 }
 0x3cc   : > { %v3859_v26 = vadd.f32 %v3858_v38, %v8843_v62  ;;  %6670 = vmatpush3.bf16.msra.mxu0 %v6934_v31  ;;  %v3860_v39 = vpop.f32.mrb[43].mxu0  ;;  %v4144_v18 = vmax.f32 %v3855_v9, 0.0  ;;  %v6955_v31 = vld [vmem:[%s9454_s6 + $0x3d8] sm:$0xff]   ;;  %v6954_v9 = vld [vmem:[%s9454_s6 + $0x400] sm:$0xff]   ;;  %v6956_v38 = vld [vmem:[%s9454_s6 + $0x448] sm:$0xff]  }
 0x3cd   : > { %v3861_v5 = vadd.f32 %v3860_v39, %v8843_v62  ;;  %6671 = vmatprep.subr.bf16.mxu0 %v6937_v8  ;;  %v4145_v30 = vmax.f32 %v3857_v22, 0.0  ;;  %v6957_v39 = vld [vmem:[%s9454_s6 + $0x398] sm:$0xff]  }
 0x3ce   : > { %v4165_v47 = vmax.f32 %v3859_v26, 0.0 }
 0x3cf   : > { %v4166_v19 = vmax.f32 %v3861_v5, 0.0 }
 0x3d0   : > { %v4228_v58 = vpack.c.bf16 %v4165_v47, %v4144_v18  ;;  %6672 = vmatpush3.bf16.msra.mxu0 %v6938_v6 }
 0x3d1   : > { %v4229_v28 = vpack.c.bf16 %v4166_v19, %v4145_v30  ;;  %v3864_v40 = vpop.f32.mrb[44].mxu0  ;;  %6673 = vmatprep.subr.bf16.mxu0 %v6941_v1  ;;  %v6959_v1 = vld [vmem:[%s9454_s6 + $0x3e0] sm:$0xff]   ;;  %v6958_v30 = vld [vmem:[%s9454_s6 + $0x408] sm:$0xff]  }
 0x3d2   : > { %v3865_v4 = vadd.f32 %v3864_v40, %v8877_v33  ;;  %v3907_v24 = vpop.f32.mrb[44].mxu1  ;;  %v3866_v61 = vpop.f32.mrb[45].mxu0  ;;  %v6963_v40 = vld [vmem:[%s9454_s6 + $0x3e8] sm:$0xff]  }
 0x3d3   : > { %v3908_v21 = vadd.f32 %v3907_v24, %v8845_v42  ;;  %v3867_v51 = vadd.f32 %v3866_v61, %v8877_v33  ;;  %v3909_v50 = vpop.f32.mrb[45].mxu1  ;;  %v3868_v23 = vpop.f32.mrb[46].mxu0  ;;  %5839 = vmatprep.mubr.bf16.mxu1 %v4229_v28  ;;  %v6961_v28 = vld [vmem:[%s9454_s6 + $0x3a0] sm:$0xff]   ;;  %v6967_v24 = vld [vmem:[%s9454_s6 + $0x3f0] sm:$0xff]   ;;  %v6966_v61 = vld [vmem:[%s9454_s6 + $0x418] sm:$0xff]  }
 0x3d4   : > { %v3910_v56 = vadd.f32 %v3909_v50, %v8845_v42  ;;  %v3869_v59 = vadd.f32 %v3868_v23, %v8875_v53  ;;  %v3911_v63 = vpop.f32.mrb[46].mxu1  ;;  %6674 = vmatpush3.bf16.msra.mxu0 %v6942_v0  ;;  %v3870_v35 = vpop.f32.mrb[47].mxu0  ;;  %5840 = vmatmul.mubr.bf16.vlgmr.msra.gmra.mrb[84].mxu1 %v4228_v58  ;;  %v4186_v37 = vmax.f32 %v3865_v4, 0.0  ;;  %v6960_v58 = vld [vmem:[%s9454_s6 + $0x450] sm:$0xff]   ;;  %v6965_v4 = vld [vmem:[%s9454_s6 + $0x3a8] sm:$0xff]   ;;  %v6970_v50 = vld [vmem:[%s9454_s6 + $0x420] sm:$0xff]  }
 0x3d5   : > { %v3912_v11 = vadd.f32 %v3911_v63, %v8843_v62  ;;  %v3871_v13 = vadd.f32 %v3870_v35, %v8875_v53  ;;  %v3913_v15 = vpop.f32.mrb[47].mxu1  ;;  %6675 = vmatprep.subr.bf16.mxu0 %v6943_v12  ;;  %6692 = vmatpush3.bf16.msra.mxu1 %v6948_v48  ;;  %v4146_v32 = vmax.f32 %v3908_v21, 0.0  ;;  %v4187_v44 = vmax.f32 %v3867_v51, 0.0  ;;  %v6962_v12 = vld [vmem:[%s9454_s6 + $0x410] sm:$0xff]   ;;  %v6964_v48 = vld [vmem:[%s9454_s6 + $0x458] sm:$0xff]   ;;  %v6972_v23 = vld [vmem:[%s9454_s6 + $0x468] sm:$0xff]  }
 0x3d6   : > { %v4207_v49 = vmax.f32 %v3869_v59, 0.0  ;;  %v3914_v36 = vadd.f32 %v3913_v15, %v8843_v62  ;;  %6693 = vmatprep.subr.bf16.mxu1 %v6949_v27  ;;  %v4147_v54 = vmax.f32 %v3910_v56, 0.0  ;;  %v6968_v27 = vld [vmem:[%s9454_s6 + $0x460] sm:$0xff]   ;;  %v6969_v21 = vld [vmem:[%s9454_s6 + $0x3b0] sm:$0xff]   ;;  %v6971_v51 = vld [vmem:[%s9454_s6 + $0x3f8] sm:$0xff]  }
 0x3d7   : > { %v4167_v46 = vmax.f32 %v3912_v11, 0.0  ;;  %v4208_v10 = vmax.f32 %v3871_v13, 0.0  ;;  %v6973_v56 = vld [vmem:[%s9454_s6 + $0x3b8] sm:$0xff]   ;;  %v6979_v59 = vld [vmem:[%s9454_s6 + $0x4c0] sm:$0xff]   ;;  %v6974_v63 = vld [vmem:[%s9454_s6 + $0x428] sm:$0xff]  }
 0x3d8   : > { %v4249_v25 = vpack.c.bf16 %v4207_v49, %v4186_v37  ;;  %v4168_v57 = vmax.f32 %v3914_v36, 0.0  ;;  %6676 = vmatpush3.bf16.msra.mxu0 %v6944_v43  ;;  %v6975_v35 = vld [vmem:[%s9454_s6 + $0x470] sm:$0xff]   ;;  %v6977_v11 = vld [vmem:[%s9454_s6 + $0x478] sm:$0xff]   ;;  %v9359_v15 = vld [vmem:[%s9454_s6 + $0x500] sm:$0xff]  }
 0x3d9   : > { %v4230_v34 = vpack.c.bf16 %v4167_v46, %v4146_v32  ;;  %v4250_v16 = vpack.c.bf16 %v4208_v10, %v4187_v44  ;;  %6677 = vmatprep.subr.bf16.mxu0 %v6945_v3  ;;  %6694 = vmatpush3.bf16.msra.mxu1 %v6950_v55  ;;  %v6976_v43 = vld [vmem:[%s9454_s6 + $0x430] sm:$0xff]   ;;  %v6978_v13 = vld [vmem:[%s9454_s6 + $0x438] sm:$0xff]  }
 0x3da   : > { %v4231_v14 = vpack.c.bf16 %v4168_v57, %v4147_v54  ;;  %v3917_v7 = vpop.f32.mrb[48].mxu1  ;;  %6695 = vmatprep.subr.bf16.mxu1 %v6951_v17 }
 0x3db   : > { %v3918_v20 = vadd.f32 %v3917_v7, %v8877_v33  ;;  %v3919_v2 = vpop.f32.mrb[49].mxu1  ;;  %5847 = vmatprep.mubr.bf16.mxu1 %v4250_v16 }
 0x3dc   : > { %v3920_v60 = vadd.f32 %v3919_v2, %v8877_v33  ;;  %v3921_v8 = vpop.f32.mrb[50].mxu1  ;;  %6678 = vmatpush3.bf16.msra.mxu0 %v6946_v29  ;;  %5888 = vmatprep.mubr.bf16.mxu0 %v4231_v14  ;;  %v6981_v2 = vld [vmem:[%s9454_s6 + $0x4c8] sm:$0xff]  }
 0x3dd   : > { %v3922_v45 = vadd.f32 %v3921_v8, %v8875_v53  ;;  %v3923_v22 = vpop.f32.mrb[51].mxu1  ;;  %5848 = vmatmul.mubr.bf16.gmra.mrb[88].mxu1 %v4249_v25  ;;  %6719 = vmatprep.subr.bf16.mxu0 %v6952_v52  ;;  %v4188_v6 = vmax.f32 %v3918_v20, 0.0  ;;  %v6980_v52 = vld [vmem:[%s9454_s6 + $0x480] sm:$0xff]  }
 0x3de   : > { %v3924_v26 = vadd.f32 %v3923_v22, %v8875_v53  ;;  %6696 = vmatpush3.bf16.msra.mxu1 %v6953_v41  ;;  %v4189_v18 = vmax.f32 %v3920_v60, 0.0 }
 0x3df   : > { %v4209_v5 = vmax.f32 %v3922_v45, 0.0  ;;  %5889 = vmatmul.mubr.bf16.vlgmr.msra.gmra.mrb[88].mxu0 %v4230_v34  ;;  %6697 = vmatprep.subr.bf16.mxu1 %v6955_v31 }
 0x3e0   : > { %v4210_v47 = vmax.f32 %v3924_v26, 0.0  ;;  %6720 = vmatpush3.bf16.msra.mxu0 %v6954_v9 }
 0x3e1   : > { %v4251_v19 = vpack.c.bf16 %v4209_v5, %v4188_v6  ;;  %6721 = vmatprep.subr.bf16.mxu0 %v6956_v38  ;;  %v6982_v5 = vld [vmem:[%s9454_s6 + $0x488] sm:$0xff]  }
 0x3e2   : > { %v4252_v0 = vpack.c.bf16 %v4210_v47, %v4189_v18  ;;  %6698 = vmatpush3.bf16.msra.mxu1 %v6957_v39 }
 0x3e3   : > { %6699 = vmatprep.subr.bf16.mxu1 %v6959_v1 }
 0x3e4   : > { %5896 = vmatprep.mubr.bf16.mxu0 %v4252_v0  ;;  %6722 = vmatpush3.bf16.msra.mxu0 %v6958_v30 }
 0x3e5   : > { %6723 = vmatprep.subr.bf16.mxu0 %v6960_v58 }
 0x3e6   : > { %6700 = vmatpush3.bf16.msra.mxu1 %v6961_v28 }
 0x3e7   : > { %5897 = vmatmul.mubr.bf16.gmra.mrb[92].mxu0 %v4251_v19  ;;  %6701 = vmatprep.subr.bf16.mxu1 %v6963_v40  ;;  %v6983_v19 = vld [vmem:[%s9454_s6 + $0x4d0] sm:$0xff]  }
 0x3e8   : > { %6724 = vmatpush3.bf16.msra.mxu0 %v6962_v12 }
 0x3e9   : > { %6725 = vmatprep.subr.bf16.mxu0 %v6964_v48 }
 0x3ea   : > { %6702 = vmatpush3.bf16.msra.mxu1 %v6965_v4 }
 0x3eb   : > { %6703 = vmatprep.subr.bf16.mxu1 %v6967_v24 }
 0x3ec   : > { %6726 = vmatpush3.bf16.msra.mxu0 %v6966_v61 }
 0x3ed   : > { %6727 = vmatprep.subr.bf16.mxu0 %v6968_v27  ;;  %v6984_v27 = vld [vmem:[%s9454_s6 + $0x490] sm:$0xff]  }
 0x3ee   : > { %6704 = vmatpush3.bf16.msra.mxu1 %v6969_v21 }
 0x3ef   : > { %6705 = vmatprep.subr.bf16.mxu1 %v6971_v51 }
 0x3f0   : > { %6728 = vmatpush3.bf16.msra.mxu0 %v6970_v50  ;;  %v6985_v50 = vld [vmem:[%s9454_s6 + $0x4d8] sm:$0xff]  }
 0x3f1   : > { %6729 = vmatprep.subr.bf16.mxu0 %v6972_v23  ;;  %v6996_v23 = vld [vmem:[%s9454_s6 + $0x508] sm:$0xff]  }
 0x3f2   : > { %6706 = vmatpush3.bf16.msra.mxu1 %v6973_v56 }
 0x3f3   : > { %6747 = vmatprep.subr.bf16.mxu1 %v6979_v59 }
 0x3f4   : > { %6730 = vmatpush3.bf16.msra.mxu0 %v6974_v63 }
 0x3f5   : > { %6731 = vmatprep.subr.bf16.mxu0 %v6975_v35 }
 0x3f8   : > { %6732 = vmatpush3.bf16.msra.mxu0 %v6976_v43 }
 0x3f9   : > { %6733 = vmatprep.subr.bf16.mxu0 %v6977_v11  ;;  %v6986_v11 = vld [vmem:[%s9454_s6 + $0x498] sm:$0xff]  }
 0x3fc   : > { %6734 = vmatpush3.bf16.msra.mxu0 %v6978_v13 }
 0x3fd   : > { %6793 = vmatprep.subr.bf16.mxu0 %v9359_v15 }
 0x409   : > { %v3960_v3 = vpop.f32.mrb[48].mxu0 }
 0x40a   : > { %v3961_v55 = vadd.f32 %v3960_v3, %v8845_v42  ;;  %v3962_v37 = vpop.f32.mrb[49].mxu0 }
 0x40b   : > { %v3963_v49 = vadd.f32 %v3962_v37, %v8845_v42  ;;  %v3964_v36 = vpop.f32.mrb[50].mxu0 }
 0x40c   : > { %v3965_v17 = vadd.f32 %v3964_v36, %v8843_v62  ;;  %v3966_v32 = vpop.f32.mrb[51].mxu0  ;;  %v4148_v46 = vmax.f32 %v3961_v55, 0.0  ;;  %v6987_v55 = vld [vmem:[%s9454_s6 + $0x4e0] sm:$0xff]  }
 0x40d   : > { %v3967_v44 = vadd.f32 %v3966_v32, %v8843_v62  ;;  %v4149_v54 = vmax.f32 %v3963_v49, 0.0  ;;  %v6988_v32 = vld [vmem:[%s9454_s6 + $0x4a0] sm:$0xff]  }
 0x40e   : > { %v4169_v10 = vmax.f32 %v3965_v17, 0.0 }
 0x40f   : > { %v4170_v25 = vmax.f32 %v3967_v44, 0.0  ;;  %v6990_v44 = vld [vmem:[%s9454_s6 + $0x4a8] sm:$0xff]  }
 0x410   : > { %v4232_v57 = vpack.c.bf16 %v4169_v10, %v4148_v46  ;;  %v6991_v46 = vld [vmem:[%s9454_s6 + $0x4f0] sm:$0xff]  }
 0x411   : > { %v4233_v29 = vpack.c.bf16 %v4170_v25, %v4149_v54  ;;  %v3970_v34 = vpop.f32.mrb[52].mxu0  ;;  %v4013_v16 = vpop.f32.mrb[52].mxu1  ;;  %v6992_v10 = vld [vmem:[%s9454_s6 + $0x4b0] sm:$0xff]   ;;  %v6994_v54 = vld [vmem:[%s9454_s6 + $0x4f8] sm:$0xff]  }
 0x412   : > { %v3971_v14 = vadd.f32 %v3970_v34, %v8877_v33  ;;  %v4014_v7 = vadd.f32 %v4013_v16, %v8845_v42  ;;  %v3972_v41 = vpop.f32.mrb[53].mxu0  ;;  %v4015_v20 = vpop.f32.mrb[53].mxu1  ;;  %v6995_v25 = vld [vmem:[%s9454_s6 + $0x4b8] sm:$0xff]  }
 0x413   : > { %v3973_v31 = vadd.f32 %v3972_v41, %v8877_v33  ;;  %v4016_v60 = vadd.f32 %v4015_v20, %v8845_v42  ;;  %v3974_v8 = vpop.f32.mrb[54].mxu0  ;;  %v4017_v9 = vpop.f32.mrb[54].mxu1  ;;  %5937 = vmatprep.mubr.bf16.mxu1 %v4233_v29 }
 0x414   : > { %v3975_v45 = vadd.f32 %v3974_v8, %v8875_v53  ;;  %v4018_v22 = vadd.f32 %v4017_v9, %v8843_v62  ;;  %v3976_v38 = vpop.f32.mrb[55].mxu0  ;;  %v4019_v26 = vpop.f32.mrb[55].mxu1  ;;  %5938 = vmatmul.mubr.bf16.vlgmr.msra.gmra.mrb[92].mxu1 %v4232_v57  ;;  %v4190_v1 = vmax.f32 %v3971_v14, 0.0  ;;  %v4150_v18 = vmax.f32 %v4014_v7, 0.0 }
 0x415   : > { %v3977_v39 = vadd.f32 %v3976_v38, %v8875_v53  ;;  %v4020_v6 = vadd.f32 %v4019_v26, %v8843_v62  ;;  %6748 = vmatpush3.bf16.msra.mxu1 %v6980_v52  ;;  %v4191_v58 = vmax.f32 %v3973_v31, 0.0  ;;  %v4151_v0 = vmax.f32 %v4016_v60, 0.0 }
 0x416   : > { %v4211_v47 = vmax.f32 %v3975_v45, 0.0  ;;  %v4171_v30 = vmax.f32 %v4018_v22, 0.0  ;;  %6749 = vmatprep.subr.bf16.mxu1 %v6981_v2 }
 0x417   : > { %v4212_v28 = vmax.f32 %v3977_v39, 0.0  ;;  %v4172_v40 = vmax.f32 %v4020_v6, 0.0 }
 0x418   : > { %v4253_v12 = vpack.c.bf16 %v4211_v47, %v4190_v1  ;;  %v4234_v48 = vpack.c.bf16 %v4171_v30, %v4150_v18 }
 0x419   : > { %v4254_v4 = vpack.c.bf16 %v4212_v28, %v4191_v58  ;;  %v4235_v24 = vpack.c.bf16 %v4172_v40, %v4151_v0  ;;  %v4023_v61 = vpop.f32.mrb[56].mxu1  ;;  %6750 = vmatpush3.bf16.msra.mxu1 %v6982_v5 }
 0x41a   : > { %v4024_v21 = vadd.f32 %v4023_v61, %v8877_v33  ;;  %v4025_v51 = vpop.f32.mrb[57].mxu1  ;;  %6751 = vmatprep.subr.bf16.mxu1 %v6983_v19 }
 0x41b   : > { %v4026_v56 = vadd.f32 %v4025_v51, %v8877_v33  ;;  %v4027_v59 = vpop.f32.mrb[58].mxu1  ;;  %5945 = vmatprep.mubr.bf16.mxu1 %v4254_v4  ;;  %5986 = vmatprep.mubr.bf16.mxu0 %v4235_v24 }
 0x41c   : > { %v4028_v63 = vadd.f32 %v4027_v59, %v8875_v53  ;;  %v4029_v35 = vpop.f32.mrb[59].mxu1  ;;  %5946 = vmatmul.mubr.bf16.gmra.mrb[96].mxu1 %v4253_v12  ;;  %5987 = vmatmul.mubr.bf16.vlgmr.msra.gmra.mrb[96].mxu0 %v4234_v48  ;;  %v4192_v13 = vmax.f32 %v4024_v21, 0.0 }
 0x41d   : > { %v4030_v43 = vadd.f32 %v4029_v35, %v8875_v53  ;;  %6752 = vmatpush3.bf16.msra.mxu1 %v6984_v27  ;;  %6794 = vmatpush3.bf16.msra.mxu0 %v9359_v15  ;;  %v4193_v37 = vmax.f32 %v4026_v56, 0.0  ;;  %v6989_v15 = vld [vmem:[%s9454_s6 + $0x4e8] sm:$0xff]  }
 0x41e   : > { %v4213_v3 = vmax.f32 %v4028_v63, 0.0  ;;  %6753 = vmatprep.subr.bf16.mxu1 %v6985_v50  ;;  %6795 = vmatprep.subr.bf16.mxu0 %v6996_v23 }
 0x41f   : > { %v4214_v49 = vmax.f32 %v4030_v43, 0.0 }
 0x420   : > { %v4255_v36 = vpack.c.bf16 %v4213_v3, %v4192_v13 }
 0x421   : > { %v4256_v17 = vpack.c.bf16 %v4214_v49, %v4193_v37  ;;  %6754 = vmatpush3.bf16.msra.mxu1 %v6986_v11  ;;  %6796 = vmatpush3.bf16.msra.mxu0 %v6996_v23 }
 0x422   : > { %6755 = vmatprep.subr.bf16.mxu1 %v6987_v55 }
 0x423   : > { %5994 = vmatprep.mubr.bf16.mxu0 %v4256_v17 }
 0x424   : > { %5995 = vmatmul.mubr.bf16.gmra.mrb[100].mxu0 %v4255_v36 }
 0x425   : > { %6756 = vmatpush3.bf16.msra.mxu1 %v6988_v32 }
 0x426   : > { %6757 = vmatprep.subr.bf16.mxu1 %v6989_v15 }
 0x429   : > { %6758 = vmatpush3.bf16.msra.mxu1 %v6990_v44 }
 0x42a   : > { %6759 = vmatprep.subr.bf16.mxu1 %v6991_v46 }
 0x42d   : > { %6760 = vmatpush3.bf16.msra.mxu1 %v6992_v10 }
 0x42e   : > { %6761 = vmatprep.subr.bf16.mxu1 %v6994_v54 }
 0x431   : > { %6762 = vmatpush3.bf16.msra.mxu1 %v6995_v25 }
 0x432   : > { %v4066_v57 = vpop.f32.mrb[56].mxu0 }
 0x433   : > { %v4067_v29 = vadd.f32 %v4066_v57, %v8845_v42  ;;  %v4068_v34 = vpop.f32.mrb[57].mxu0 }
 0x434   : > { %v4069_v16 = vadd.f32 %v4068_v34, %v8845_v42  ;;  %v4070_v52 = vpop.f32.mrb[58].mxu0 }
 0x435   : > { %v4071_v14 = vadd.f32 %v4070_v52, %v8843_v62  ;;  %v4072_v7 = vpop.f32.mrb[59].mxu0  ;;  %v4152_v20 = vmax.f32 %v4067_v29, 0.0 }
 0x436   : > { %v4073_v41 = vadd.f32 %v4072_v7, %v8843_v62  ;;  %v4153_v60 = vmax.f32 %v4069_v16, 0.0 }
 0x437   : > { %v4173_v2 = vmax.f32 %v4071_v14, 0.0  ;;  %v4119_v31 = vpop.f32.mrb[60].mxu1 }
 0x438   : > { %v4174_v8 = vmax.f32 %v4073_v41, 0.0  ;;  %v4120_v9 = vadd.f32 %v4119_v31, %v8845_v42  ;;  %v4121_v45 = vpop.f32.mrb[61].mxu1 }
 0x439   : > { %v4236_v22 = vpack.c.bf16 %v4173_v2, %v4152_v20  ;;  %v4122_v38 = vpop.f32.mrb[62].mxu1 }
 0x43a   : > { %v4237_v26 = vpack.c.bf16 %v4174_v8, %v4153_v60  ;;  %v4123_v39 = vadd.f32 %v4122_v38, %v8843_v62  ;;  %v4124_v6 = vpop.f32.mrb[63].mxu1  ;;  %v4076_v5 = vpop.f32.mrb[60].mxu0  ;;  %v4154_v47 = vmax.f32 %v4120_v9, 0.0 }
 0x43b   : > { %v4077_v1 = vadd.f32 %v4076_v5, %v8877_v33  ;;  %v4078_v18 = vpop.f32.mrb[61].mxu0 }
 0x43c   : > { %v4175_v30 = vmax.f32 %v4123_v39, 0.0  ;;  %v4079_v19 = vadd.f32 %v4078_v18, %v8877_v33  ;;  %v4080_v58 = vpop.f32.mrb[62].mxu0  ;;  %6035 = vmatprep.mubr.bf16.mxu1 %v4237_v26 }
 0x43d   : > { %v4081_v0 = vadd.f32 %v4080_v58, %v8875_v53  ;;  %v4082_v42 = vpop.f32.mrb[63].mxu0  ;;  %6036 = vmatmul.mubr.bf16.vlgmr.msra.gmra.mrb[100].mxu1 %v4236_v22  ;;  %v4194_v12 = vmax.f32 %v4077_v1, 0.0 }
 0x43e   : > { %v4238_v28 = vpack.c.bf16 %v4175_v30, %v4154_v47  ;;  %v4083_v40 = vadd.f32 %v4082_v42, %v8875_v53  ;;  %v4195_v4 = vmax.f32 %v4079_v19, 0.0 }
 0x43f   : > { %v4215_v62 = vmax.f32 %v4081_v0, 0.0  ;;  %v4127_v48 = vpop.f32.mrb[64].mxu1 }
 0x440   : > { %v4216_v24 = vmax.f32 %v4083_v40, 0.0  ;;  %v4128_v61 = vadd.f32 %v4127_v48, %v8877_v33  ;;  %v4129_v27 = vpop.f32.mrb[65].mxu1  ;;  %6797 = vmatprep.mubr.msk.bf16.mxu0 %vm2458_vm13, %v4238_v28 }
 0x441   : > { %v4257_v21 = vpack.c.bf16 %v4215_v62, %v4194_v12  ;;  %v4130_v51 = vpop.f32.mrb[66].mxu1 }
 0x442   : > { %v4258_v50 = vpack.c.bf16 %v4216_v24, %v4195_v4  ;;  %v4131_v23 = vadd.f32 %v4130_v51, %v8875_v53  ;;  %v4132_v56 = vpop.f32.mrb[67].mxu1  ;;  %v4196_v59 = vmax.f32 %v4128_v61, 0.0 }
 0x444   : > { %v4217_v63 = vmax.f32 %v4131_v23, 0.0  ;;  %6043 = vmatprep.mubr.bf16.mxu1 %v4258_v50 }
 0x445   : > { %6044 = vmatmul.mubr.bf16.gmra.mrb[104].mxu1 %v4257_v21 }
 0x446   : > { %v4259_v35 = vpack.c.bf16 %v4217_v63, %v4196_v59 }
 0x448   : > { %6798 = vmatmul.mubr.msk.bf16.vlgmr.msra.gmra.mrb[104].mxu0 %vm2458_vm13, %v4259_v35 }
 0x452   : > { %v6511_v43 = vpop.f32.mrb[64].mxu0 }
 0x453   : > { %v6512_v11 = vpop.f32.mrb[65].mxu0 }
 0x454   : > { %v6513_v13 = vadd.f32 %v6512_v11, %v6511_v43  ;;  %v6514_v33 = vpop.f32.mrb[66].mxu0 }
 0x455   : > { %v6515_v3 = vpop.f32.mrb[67].mxu0 }
 0x456   : > { %v6516_v55 = vadd.f32 %v6515_v3, %v6514_v33 }
 0x458   : > { %v6539_v37 = vpop.f32.mrb[68].mxu1 }
 0x459   : > { %v6540_v49 = vpop.f32.mrb[69].mxu1 }
 0x45a   : > { %v6541_v36 = vadd.f32 %v6540_v49, %v6539_v37  ;;  %v6542_v17 = vpop.f32.mrb[70].mxu1  ;;  %v6517_v32 = vpop.f32.mrb[68].mxu0 }
 0x45b   : > { %v6543_v53 = vpop.f32.mrb[71].mxu1  ;;  %v6518_v15 = vpop.f32.mrb[69].mxu0 }
 0x45c   : > { %v5646_v44 = vadd.f32 %v6541_v36, %v6513_v13  ;;  %v6544_v46 = vadd.f32 %v6543_v53, %v6542_v17  ;;  %v6519_v10 = vadd.f32 %v6518_v15, %v6517_v32  ;;  %v6520_v54 = vpop.f32.mrb[70].mxu0 }
 0x45d   : > { %v6521_v25 = vpop.f32.mrb[71].mxu0 }
 0x45e   : > { %v5649_v57 = vadd.f32 %v6544_v46, %v6516_v55  ;;  %v6522_v29 = vadd.f32 %v6521_v25, %v6520_v54 }
 0x460   : > { %v6545_v34 = vpop.f32.mrb[72].mxu1 }
 0x461   : > { %v6546_v16 = vpop.f32.mrb[73].mxu1 }
 0x462   : > { %v6547_v52 = vadd.f32 %v6546_v16, %v6545_v34  ;;  %v6548_v14 = vpop.f32.mrb[74].mxu1 }
 0x463   : > { %v6549_v7 = vpop.f32.mrb[75].mxu1 }
 0x464   : > { %v5654_v41 = vadd.f32 %v6547_v52, %v6519_v10  ;;  %v6550_v20 = vadd.f32 %v6549_v7, %v6548_v14 }
 0x466   : > { %v5657_v2 = vadd.f32 %v6550_v20, %v6522_v29 }
 0x472   : > { %v6567_v31 = vpop.f32.mrb[72].mxu0 }
 0x473   : > { %v6568_v60 = vpop.f32.mrb[73].mxu0 }
 0x474   : > { %v6569_v8 = vadd.f32 %v6568_v60, %v6567_v31  ;;  %v6570_v9 = vpop.f32.mrb[74].mxu0 }
 0x475   : > { %v6571_v45 = vpop.f32.mrb[75].mxu0 }
 0x476   : > { %v5695_v22 = vadd.f32 %v6569_v8, %v5646_v44  ;;  %v6572_v38 = vadd.f32 %v6571_v45, %v6570_v9 }
 0x478   : > { %v5698_v26 = vadd.f32 %v6572_v38, %v5649_v57  ;;  %v6595_v39 = vpop.f32.mrb[76].mxu1 }
 0x479   : > { %v6596_v6 = vpop.f32.mrb[77].mxu1 }
 0x47a   : > { %v6597_v5 = vadd.f32 %v6596_v6, %v6595_v39  ;;  %v6598_v1 = vpop.f32.mrb[78].mxu1  ;;  %v6573_v18 = vpop.f32.mrb[76].mxu0 }
 0x47b   : > { %v6599_v47 = vpop.f32.mrb[79].mxu1  ;;  %v6574_v30 = vpop.f32.mrb[77].mxu0 }
 0x47c   : > { %v5744_v19 = vadd.f32 %v6597_v5, %v5695_v22  ;;  %v6600_v58 = vadd.f32 %v6599_v47, %v6598_v1  ;;  %v6575_v0 = vadd.f32 %v6574_v30, %v6573_v18  ;;  %v6576_v42 = vpop.f32.mrb[78].mxu0 }
 0x47d   : > { %v6577_v28 = vpop.f32.mrb[79].mxu0 }
 0x47e   : > { %v5747_v40 = vadd.f32 %v6600_v58, %v5698_v26  ;;  %v5703_v12 = vadd.f32 %v6575_v0, %v5654_v41  ;;  %v6578_v62 = vadd.f32 %v6577_v28, %v6576_v42 }
 0x480   : > { %v5706_v48 = vadd.f32 %v6578_v62, %v5657_v2  ;;  %v6601_v4 = vpop.f32.mrb[80].mxu1 }
 0x481   : > { %v6602_v24 = vpop.f32.mrb[81].mxu1 }
 0x482   : > { %v6603_v61 = vadd.f32 %v6602_v24, %v6601_v4  ;;  %v6604_v27 = vpop.f32.mrb[82].mxu1 }
 0x483   : > { %v6605_v21 = vpop.f32.mrb[83].mxu1 }
 0x484   : > { %v5752_v51 = vadd.f32 %v6603_v61, %v5703_v12  ;;  %v6606_v50 = vadd.f32 %v6605_v21, %v6604_v27 }
 0x486   : > { %v5755_v23 = vadd.f32 %v6606_v50, %v5706_v48 }
 0x492   : > { %v6623_v56 = vpop.f32.mrb[80].mxu0 }
 0x493   : > { %v6624_v59 = vpop.f32.mrb[81].mxu0 }
 0x494   : > { %v6625_v63 = vadd.f32 %v6624_v59, %v6623_v56  ;;  %v6626_v35 = vpop.f32.mrb[82].mxu0 }
 0x495   : > { %v6627_v43 = vpop.f32.mrb[83].mxu0 }
 0x496   : > { %v5793_v11 = vadd.f32 %v6625_v63, %v5744_v19  ;;  %v6628_v13 = vadd.f32 %v6627_v43, %v6626_v35 }
 0x498   : > { %v5796_v33 = vadd.f32 %v6628_v13, %v5747_v40 }
 0x49a   : > { %v6629_v3 = vpop.f32.mrb[84].mxu0 }
 0x49b   : > { %v6630_v55 = vpop.f32.mrb[85].mxu0 }
 0x49c   : > { %v6631_v37 = vadd.f32 %v6630_v55, %v6629_v3  ;;  %v6632_v49 = vpop.f32.mrb[86].mxu0 }
 0x49d   : > { %v6633_v36 = vpop.f32.mrb[87].mxu0 }
 0x49e   : > { %v5801_v17 = vadd.f32 %v6631_v37, %v5752_v51  ;;  %v6634_v32 = vadd.f32 %v6633_v36, %v6632_v49 }
 0x4a0   : > { %v5804_v53 = vadd.f32 %v6634_v32, %v5755_v23 }
 0x4a7   : > { %v6651_v15 = vpop.f32.mrb[84].mxu1 }
 0x4a8   : > { %v6652_v44 = vpop.f32.mrb[85].mxu1 }
 0x4a9   : > { %v6653_v46 = vadd.f32 %v6652_v44, %v6651_v15  ;;  %v6654_v10 = vpop.f32.mrb[86].mxu1 }
 0x4aa   : > { %v6655_v54 = vpop.f32.mrb[87].mxu1 }
 0x4ab   : > { %v5842_v25 = vadd.f32 %v6653_v46, %v5793_v11  ;;  %v6656_v57 = vadd.f32 %v6655_v54, %v6654_v10 }
 0x4ad   : > { %v5845_v29 = vadd.f32 %v6656_v57, %v5796_v33 }
 0x4b0   : > { %v6657_v34 = vpop.f32.mrb[88].mxu1 }
 0x4b1   : > { %v6658_v16 = vpop.f32.mrb[89].mxu1 }
 0x4b2   : > { %v6659_v52 = vadd.f32 %v6658_v16, %v6657_v34  ;;  %v6660_v14 = vpop.f32.mrb[90].mxu1  ;;  %v6679_v7 = vpop.f32.mrb[88].mxu0 }
 0x4b3   : > { %v6661_v41 = vpop.f32.mrb[91].mxu1  ;;  %v6680_v20 = vpop.f32.mrb[89].mxu0 }
 0x4b4   : > { %v5850_v2 = vadd.f32 %v6659_v52, %v5801_v17  ;;  %v6662_v31 = vadd.f32 %v6661_v41, %v6660_v14  ;;  %v6681_v60 = vadd.f32 %v6680_v20, %v6679_v7  ;;  %v6682_v8 = vpop.f32.mrb[90].mxu0 }
 0x4b5   : > { %v6683_v9 = vpop.f32.mrb[91].mxu0 }
 0x4b6   : > { %v5853_v45 = vadd.f32 %v6662_v31, %v5804_v53  ;;  %v5891_v22 = vadd.f32 %v6681_v60, %v5842_v25  ;;  %v6684_v38 = vadd.f32 %v6683_v9, %v6682_v8 }
 0x4b8   : > { %v5894_v26 = vadd.f32 %v6684_v38, %v5845_v29 }
 0x4ba   : > { %v6685_v39 = vpop.f32.mrb[92].mxu0 }
 0x4bb   : > { %v6686_v6 = vpop.f32.mrb[93].mxu0 }
 0x4bc   : > { %v6687_v5 = vadd.f32 %v6686_v6, %v6685_v39  ;;  %v6688_v1 = vpop.f32.mrb[94].mxu0 }
 0x4bd   : > { %v6689_v18 = vpop.f32.mrb[95].mxu0 }
 0x4be   : > { %v5899_v47 = vadd.f32 %v6687_v5, %v5850_v2  ;;  %v6690_v30 = vadd.f32 %v6689_v18, %v6688_v1 }
 0x4c0   : > { %v5902_v19 = vadd.f32 %v6690_v30, %v5853_v45 }
 0x4e7   : > { %v6707_v58 = vpop.f32.mrb[92].mxu1 }
 0x4e8   : > { %v6708_v0 = vpop.f32.mrb[93].mxu1 }
 0x4e9   : > { %v6709_v42 = vadd.f32 %v6708_v0, %v6707_v58  ;;  %v6710_v28 = vpop.f32.mrb[94].mxu1 }
 0x4ea   : > { %v6711_v40 = vpop.f32.mrb[95].mxu1 }
 0x4eb   : > { %v5940_v12 = vadd.f32 %v6709_v42, %v5891_v22  ;;  %v6712_v62 = vadd.f32 %v6711_v40, %v6710_v28 }
 0x4ed   : > { %v5943_v48 = vadd.f32 %v6712_v62, %v5894_v26 }
 0x4ef   : > { %v6713_v4 = vpop.f32.mrb[96].mxu1  ;;  %v6735_v24 = vpop.f32.mrb[96].mxu0 }
 0x4f0   : > { %v6714_v61 = vpop.f32.mrb[97].mxu1  ;;  %v6736_v27 = vpop.f32.mrb[97].mxu0 }
 0x4f1   : > { %v6715_v21 = vadd.f32 %v6714_v61, %v6713_v4  ;;  %v6737_v51 = vadd.f32 %v6736_v27, %v6735_v24  ;;  %v6716_v50 = vpop.f32.mrb[98].mxu1  ;;  %v6738_v23 = vpop.f32.mrb[98].mxu0 }
 0x4f2   : > { %v6717_v56 = vpop.f32.mrb[99].mxu1  ;;  %v6739_v59 = vpop.f32.mrb[99].mxu0 }
 0x4f3   : > { %v5948_v63 = vadd.f32 %v6715_v21, %v5899_v47  ;;  %v5989_v35 = vadd.f32 %v6737_v51, %v5940_v12  ;;  %v6718_v43 = vadd.f32 %v6717_v56, %v6716_v50  ;;  %v6740_v11 = vadd.f32 %v6739_v59, %v6738_v23 }
 0x4f5   : > { %v5951_v13 = vadd.f32 %v6718_v43, %v5902_v19  ;;  %v5992_v33 = vadd.f32 %v6740_v11, %v5943_v48 }
 0x4f7   : > { %v6741_v3 = vpop.f32.mrb[100].mxu0 }
 0x4f8   : > { %v6742_v55 = vpop.f32.mrb[101].mxu0 }
 0x4f9   : > { %v6743_v37 = vadd.f32 %v6742_v55, %v6741_v3  ;;  %v6744_v49 = vpop.f32.mrb[102].mxu0 }
 0x4fa   : > { %v6745_v36 = vpop.f32.mrb[103].mxu0 }
 0x4fb   : > { %v5997_v17 = vadd.f32 %v6743_v37, %v5948_v63  ;;  %v6746_v32 = vadd.f32 %v6745_v36, %v6744_v49 }
 0x4fd   : > { %v6000_v53 = vadd.f32 %v6746_v32, %v5951_v13 }
 0x510   : > { %v6763_v15 = vpop.f32.mrb[100].mxu1 }
 0x511   : > { %v6764_v44 = vpop.f32.mrb[101].mxu1 }
 0x512   : > { %v6765_v46 = vadd.f32 %v6764_v44, %v6763_v15  ;;  %v6766_v10 = vpop.f32.mrb[102].mxu1 }
 0x513   : > { %v6767_v54 = vpop.f32.mrb[103].mxu1 }
 0x514   : > { %v6768_v25 = vadd.f32 %v6767_v54, %v6766_v10  ;;  %v6038_v57 = vadd.f32 %v6765_v46, %v5989_v35 }
 0x516   : > { %v6041_v29 = vadd.f32 %v6768_v25, %v5992_v33 }
 0x518   : > { %v6769_v34 = vpop.f32.mrb[104].mxu1 }
 0x519   : > { %v6770_v16 = vpop.f32.mrb[105].mxu1 }
 0x51a   : > { %v6771_v52 = vadd.f32 %v6770_v16, %v6769_v34  ;;  %v6772_v14 = vpop.f32.mrb[106].mxu1 }
 0x51b   : > { %v6799_v7 = vpop.f32.mrb[104].mxu0  ;;  %v6773_v41 = vpop.f32.mrb[107].mxu1 }
 0x51c   : > { %v6046_v20 = vadd.f32 %v6771_v52, %v5997_v17  ;;  %v6774_v2 = vadd.f32 %v6773_v41, %v6772_v14  ;;  %v6086_v31 = vpop.f32.mrb[105].mxu0 }
 0x51d   : > { %v6087_v60 = vadd.f32 %v6086_v31, %v6038_v57  ;;  %v6800_v8 = vpop.f32.mrb[106].mxu0 }
 0x51e   : > { %v6095_v9 = vadd.f32 %v6799_v7, %v6046_v20  ;;  %v6049_v45 = vadd.f32 %v6774_v2, %v6000_v53  ;;  %v6089_v22 = vpop.f32.mrb[107].mxu0 }
 0x51f   : > { %6102 = vst.msk [vmem:[%s278_s12] sm:$0xff] %vm6101_vm14, %v6087_v60  ;;  %v6090_v38 = vadd.f32 %v6089_v22, %v6041_v29 }
 0x520   : > { %6104 = vst.msk [vmem:[%s278_s12 + $0x10] sm:$0xff] %vm6101_vm14, %v6095_v9  ;;  %v6098_v26 = vadd.f32 %v6800_v8, %v6049_v45 }
 0x521   : > { %6103 = vst.msk [vmem:[%s278_s12 + $0x8] sm:$0xff] %vm6101_vm14, %v6090_v38 }
 0x522   : > { %6105 = vst.msk [vmem:[%s278_s12 + $0x18] sm:$0xff] %vm6101_vm14, %v6098_v26 }
 0x523 PF: > { %s17_s24 = sadd.s32 1, %s7013_s24  }
 0x524   : > { %p14_p4 = scmp.ge.s32.totalorder %s17_s24, 4  }
 0x526   :  { %16 = sbr.rel (!%p14_p4) target bundleno = 1 (0x1), region = 78 }

</bundles_post_ra>
